<compile_context>
chip_gen: v7x
topology: tpu7x:2x2x1
jax: 0.10.0
libtpu: 0.0.40
codegen_flags: <defaults>
</compile_context>

<pallas_src>
import numpy as np
import jax
import jax.numpy as jnp
from jax import lax
from jax.experimental import pallas as pl
from jax.experimental.pallas import tpu as pltpu

# ----------------- configuration (MBConvBlock3D defaults) -----------------
IN_C = 4
OUT_C = 4
K = 3
PAD = K // 2
STRIDE = 1                       # residual path requires stride == 1 (holds here)
EXPANSION = 6
SE_RATIO = 0.25
EXP_C = IN_C * EXPANSION         # 24
RED_C = int(IN_C * SE_RATIO)     # 1
KKK = K * K * K                  # 27
BN_EPS = 1e-5

N, D, H, W = 2, 8, 8, 8
DHW = D * H * W                  # 512 lanes -> fully dense
assert H & (H - 1) == 0 and W & (W - 1) == 0 and D & (D - 1) == 0
LOG_W = W.bit_length() - 1
LOG_HW = (H * W).bit_length() - 1

assert RED_C == 1, "packed SE parameter layout assumes RED_C == 1"
assert OUT_C + 3 <= 8, "row-pack layout assumes OUT_C + 3 SE rows fit in 8 sublanes"

# Row-pack (WROW) layout: rows [0:OUT_C] = wp (p_scale folded), row OUT_C = se_w2 row,
# row OUT_C+1 = se_b2 row, row OUT_C+2 = se_b1 (broadcast scalar), rest zero-pad.
WROW_ROWS = 8
R_SW2 = OUT_C
R_SB2 = OUT_C + 1
R_SB1 = OUT_C + 2
# Column-pack (PCOL) layout: cols [eb, db, se_w1, pb(padded to EXP_C rows)].
PCOL_COLS = 4


def _sigmoid(v):
    return 1.0 / (1.0 + jnp.exp(-v))


# ------------------------------ fused Pallas kernel ------------------------------
def _mbconv_kernel(x_ref, we_ref, dw_ref, wr_ref, pc_ref, o_ref):
    # x_ref: (IN_C, DHW) one batch element; channels in sublanes, spatial in lanes.
    x = x_ref[...]

    eb = pc_ref[:, 0:1]            # (EXP_C, 1) expansion BN bias
    db = pc_ref[:, 1:2]            # (EXP_C, 1) depthwise BN bias
    sw1 = pc_ref[:, 2:3]           # (EXP_C, 1) SE reduce weight (RED_C == 1)
    pb = pc_ref[0:OUT_C, 3:4]      # (OUT_C, 1) projection BN bias

    # --- 1x1x1 expansion conv (BN scale pre-folded into weight) + bias + SiLU ---
    y = jnp.dot(we_ref[...], x, preferred_element_type=jnp.float32) + eb
    y = y * _sigmoid(y)

    # --- hoisted per-axis boundary masks (computed ONCE, f32) ---
    pos = lax.broadcasted_iota(jnp.int32, (1, DHW), 1)
    w_i = pos & (W - 1)
    h_i = (pos >> LOG_W) & (H - 1)
    d_i = (pos >> LOG_HW) & (D - 1)
    d_lo = (d_i >= 1).astype(jnp.float32)
    d_hi = (d_i < D - 1).astype(jnp.float32)
    h_lo = (h_i >= 1).astype(jnp.float32)
    h_hi = (h_i < H - 1).astype(jnp.float32)
    w_lo = (w_i >= 1).astype(jnp.float32)
    w_hi = (w_i < W - 1).astype(jnp.float32)

    def axis_mask(k, lo, hi):
        if k == 0:
            return lo
        if k == K - 1:
            return hi
        return None  # center offset along this axis -> no mask needed

    # --- depthwise 3x3x3 conv (stride 1, pad 1): 27 lane-rolled, masked tap FMAs ---
    # Accumulator seeded from the unmasked center tap; remaining 26 taps alternate between
    # two partial accumulators to shorten the serial dependence chain.
    center = (PAD * K + PAD) * K + PAD
    accs = [y * dw_ref[:, center:center + 1], None]
    t = 0
    for kd in range(K):
        dd = kd - PAD
        for kh in range(K):
            dh = kh - PAD
            for kw in range(K):
                dw_off = kw - PAD
                kidx = (kd * K + kh) * K + kw
                if kidx == center:
                    continue
                delta = dd * H * W + dh * W + dw_off
                # shifted[p] == y[p + delta]; wrapped lanes are killed by the masks below.
                shifted = pltpu.roll(y, (-delta) % DHW, 1)
                factors = [m for m in (axis_mask(kd, d_lo, d_hi),
                                       axis_mask(kh, h_lo, h_hi),
                                       axis_mask(kw, w_lo, w_hi)) if m is not None]
                cm = factors[0]
                for f in factors[1:]:
                    cm = cm * f
                term = (shifted * cm) * dw_ref[:, kidx:kidx + 1]
                slot = t & 1
                accs[slot] = term if accs[slot] is None else accs[slot] + term
                t += 1
    acc = accs[0] + accs[1]

    # --- depthwise BN bias (scale pre-folded) + SiLU ---
    yd = acc + db
    yd = yd * _sigmoid(yd)

    # --- squeeze-and-excitation (tiny: VPU/XLU reductions, no MXU) ---
    s = jnp.sum(yd, axis=1, keepdims=True) * (1.0 / DHW)                   # (EXP_C, 1)
    hse = jnp.sum(s * sw1, axis=0, keepdims=True) + wr_ref[R_SB1:R_SB1 + 1, 0:1]  # (1, 1)
    hse = hse * _sigmoid(hse)
    g_row = _sigmoid(wr_ref[R_SW2:R_SW2 + 1, :] * hse
                     + wr_ref[R_SB2:R_SB2 + 1, :])                         # (1, EXP_C)

    # --- 1x1x1 projection conv: SE gate folded into wp columns, BN bias, residual ---
    wp_g = wr_ref[0:OUT_C, :] * g_row                                      # (OUT_C, EXP_C)
    z = jnp.dot(wp_g, yd, preferred_element_type=jnp.float32) + pb         # (OUT_C, DHW)
    o_ref[...] = z + x


# --------------------------------- wrapper ----------------------------------
def mbconv_block3d(x_ncdhw, params):
    # NCDHW is already channels-first: just flatten spatial into the lane dimension.
    x2 = x_ncdhw.reshape(N, IN_C, DHW).astype(jnp.float32)

    # Host-side BN folding: scales go into the conv weights, kernel only adds biases.
    we_f = params["we"].T * params["exp_scale"][:, None]                   # (EXP_C, IN_C)
    dw_f = params["dw"].reshape(KKK, EXP_C).T * params["dw_scale"][:, None]  # (EXP_C, KKK)
    wp_f = params["wp"].T * params["p_scale"][:, None]                     # (OUT_C, EXP_C)

    # Row-oriented parameter pack: projection weight + SE row params.
    wrow = jnp.zeros((WROW_ROWS, EXP_C), jnp.float32)
    wrow = wrow.at[0:OUT_C, :].set(wp_f)
    wrow = wrow.at[R_SW2, :].set(params["se_w2"][0, :])
    wrow = wrow.at[R_SB2, :].set(params["se_b2"])
    wrow = wrow.at[R_SB1, :].set(params["se_b1"][0])

    # Column-oriented parameter pack: per-channel biases + SE column weight.
    pcol = jnp.zeros((EXP_C, PCOL_COLS), jnp.float32)
    pcol = pcol.at[:, 0].set(params["exp_bias"])
    pcol = pcol.at[:, 1].set(params["dw_bias"])
    pcol = pcol.at[:, 2].set(params["se_w1"][:, 0])
    pcol = pcol.at[:, 3].set(jnp.pad(params["p_bias"], (0, EXP_C - OUT_C)))

    def full(shape):
        return pl.BlockSpec(shape, lambda n: (0,) * len(shape))

    out = pl.pallas_call(
        _mbconv_kernel,
        out_shape=jax.ShapeDtypeStruct((N, OUT_C, DHW), jnp.float32),
        grid_spec=pltpu.PrefetchScalarGridSpec(
            num_scalar_prefetch=0,
            grid=(N,),
            in_specs=[
                pl.BlockSpec((None, IN_C, DHW), lambda n: (n, 0, 0)),
                full((EXP_C, IN_C)),
                full((EXP_C, KKK)),
                full((WROW_ROWS, EXP_C)),
                full((EXP_C, PCOL_COLS)),
            ],
            out_specs=pl.BlockSpec((None, OUT_C, DHW), lambda n: (n, 0, 0)),
        ),
        compiler_params=pltpu.CompilerParams(dimension_semantics=("parallel",)),
    )(x2, we_f, dw_f, wrow, pcol)

    return out.reshape(N, OUT_C, D, H, W)


# ------------------------ deterministic parameter init ------------------------
def init_params(key):
    ks = jax.random.split(key, 20)

    def fold_bn(gamma, beta, mean, var):
        scale = gamma / jnp.sqrt(var + BN_EPS)
        return scale, beta - mean * scale

    def bn_params(k0, k1, k2, k3, c):
        gamma = 1.0 + 0.1 * jax.random.normal(k0, (c,), jnp.float32)
        beta = 0.1 * jax.random.normal(k1, (c,), jnp.float32)
        mean = 0.1 * jax.random.normal(k2, (c,), jnp.float32)
        var = jax.random.uniform(k3, (c,), jnp.float32, minval=0.5, maxval=1.5)
        return fold_bn(gamma, beta, mean, var)

    p = {}
    p["we"] = 0.1 * jax.random.normal(ks[0], (IN_C, EXP_C), jnp.float32)
    p["exp_scale"], p["exp_bias"] = bn_params(ks[1], ks[2], ks[3], ks[4], EXP_C)
    p["dw"] = 0.1 * jax.random.normal(ks[5], (K, K, K, EXP_C), jnp.float32)
    p["dw_scale"], p["dw_bias"] = bn_params(ks[6], ks[7], ks[8], ks[9], EXP_C)
    p["se_w1"] = 0.1 * jax.random.normal(ks[10], (EXP_C, RED_C), jnp.float32)
    p["se_b1"] = 0.1 * jax.random.normal(ks[11], (RED_C,), jnp.float32)
    p["se_w2"] = 0.1 * jax.random.normal(ks[12], (RED_C, EXP_C), jnp.float32)
    p["se_b2"] = 0.1 * jax.random.normal(ks[13], (EXP_C,), jnp.float32)
    p["wp"] = 0.1 * jax.random.normal(ks[14], (EXP_C, OUT_C), jnp.float32)
    p["p_scale"], p["p_bias"] = bn_params(ks[15], ks[16], ks[17], ks[18], OUT_C)
    return p


# ----------------------------- plain-JAX reference -----------------------------
def ref_forward(x_ncdhw, p):
    x = jnp.transpose(x_ncdhw, (0, 2, 3, 4, 1)).astype(jnp.float32)

    def silu(v):
        return v * jax.nn.sigmoid(v)

    y = jnp.einsum("ndhwc,ce->ndhwe", x, p["we"])
    y = silu(y * p["exp_scale"] + p["exp_bias"])
    yd = lax.conv_general_dilated(
        y, p["dw"].reshape(K, K, K, 1, EXP_C), window_strides=(1, 1, 1),
        padding="SAME", dimension_numbers=("NDHWC", "DHWIO", "NDHWC"),
        feature_group_count=EXP_C)
    yd = silu(yd * p["dw_scale"] + p["dw_bias"])
    s = jnp.mean(yd, axis=(1, 2, 3), keepdims=True)
    hse = silu(jnp.einsum("nabcd,de->nabce", s, p["se_w1"]) + p["se_b1"])
    g = jax.nn.sigmoid(jnp.einsum("nabcd,de->nabce", hse, p["se_w2"]) + p["se_b2"])
    yd = yd * g
    z = jnp.einsum("ndhwc,co->ndhwo", yd, p["wp"]) * p["p_scale"] + p["p_bias"]
    z = z + x                                      # use_residual (in==out, stride==1)
    return jnp.transpose(z, (0, 4, 1, 2, 3))


if __name__ == "__main__":
    key = jax.random.PRNGKey(0)
    kx, kp = jax.random.split(key)
    params = init_params(kp)
    x = jax.random.normal(kx, (N, IN_C, D, H, W), jnp.float32)

    out = jax.jit(lambda xx: mbconv_block3d(xx, params))(x)
    out = jax.block_until_ready(out)

    ref = ref_forward(x, params)
    np.testing.assert_allclose(np.asarray(out), np.asarray(ref), rtol=2e-3, atol=2e-3)
    print("KERNEL_OK")
</pallas_src>

<mosaic_0001>
module attributes {stable_mosaic.version = 11 : i64} {
  func.func @_mbconv_kernel(%arg0: i32, %arg1: memref<1x4x512xf32, #tpu.memory_space<vmem>>, %arg2: memref<24x4xf32, #tpu.memory_space<vmem>>, %arg3: memref<24x27xf32, #tpu.memory_space<vmem>>, %arg4: memref<8x24xf32, #tpu.memory_space<vmem>>, %arg5: memref<24x4xf32, #tpu.memory_space<vmem>>, %arg6: memref<1x4x512xf32, #tpu.memory_space<vmem>>) attributes {dimension_semantics = [#tpu.dimension_semantics<parallel>], iteration_bounds = array<i64: 2>, scalar_prefetch = 0 : i64, scratch_operands = 0 : i64, tpu.core_type = #tpu.core_type<tc>, window_params = [{transform_indices = @transform_0, window_bounds = array<i64: 1, 4, 512>}, {pipeline_mode = #tpu.pipeline_mode<synchronous>, transform_indices = @transform_1, window_bounds = array<i64: 24, 4>}, {pipeline_mode = #tpu.pipeline_mode<synchronous>, transform_indices = @transform_2, window_bounds = array<i64: 24, 27>}, {pipeline_mode = #tpu.pipeline_mode<synchronous>, transform_indices = @transform_3, window_bounds = array<i64: 8, 24>}, {pipeline_mode = #tpu.pipeline_mode<synchronous>, transform_indices = @transform_4, window_bounds = array<i64: 24, 4>}, {transform_indices = @transform_5, window_bounds = array<i64: 1, 4, 512>}]} {
    %c0 = arith.constant 0 : index
    %c0_0 = arith.constant 0 : index
    %c0_1 = arith.constant 0 : index
    %0 = vector.load %arg1[%c0, %c0_0, %c0_1] : memref<1x4x512xf32, #tpu.memory_space<vmem>>, vector<1x4x512xf32>
    %1 = vector.shape_cast %0 : vector<1x4x512xf32> to vector<4x512xf32>
    %c0_2 = arith.constant 0 : index
    %c0_3 = arith.constant 0 : index
    %2 = vector.load %arg5[%c0_2, %c0_3] : memref<24x4xf32, #tpu.memory_space<vmem>>, vector<24x1xf32>
    %c0_4 = arith.constant 0 : index
    %c1 = arith.constant 1 : index
    %3 = vector.load %arg5[%c0_4, %c1] : memref<24x4xf32, #tpu.memory_space<vmem>>, vector<24x1xf32>
    %c0_5 = arith.constant 0 : index
    %c2 = arith.constant 2 : index
    %4 = vector.load %arg5[%c0_5, %c2] : memref<24x4xf32, #tpu.memory_space<vmem>>, vector<24x1xf32>
    %c0_6 = arith.constant 0 : index
    %c3 = arith.constant 3 : index
    %5 = vector.load %arg5[%c0_6, %c3] : memref<24x4xf32, #tpu.memory_space<vmem>>, vector<4x1xf32>
    %c0_7 = arith.constant 0 : index
    %c0_8 = arith.constant 0 : index
    %6 = vector.load %arg2[%c0_7, %c0_8] : memref<24x4xf32, #tpu.memory_space<vmem>>, vector<24x4xf32>
    %cst = arith.constant dense<0.000000e+00> : vector<24x512xf32>
    %7 = tpu.matmul %6, %1, %cst {dimension_numbers = #tpu.dot_dimension_numbers<[1], [0], [0], [1], [0, 0, 1, 1], [], []>} : vector<24x4xf32>, vector<4x512xf32>, vector<24x512xf32> -> vector<24x512xf32>
    %8 = vector.broadcast %2 : vector<24x1xf32> to vector<24x512xf32>
    %9 = arith.addf %7, %8 : vector<24x512xf32>
    %cst_9 = arith.constant 0.000000e+00 : f32
    %10 = vector.broadcast %cst_9 : f32 to vector<24x512xf32>
    %11 = arith.subf %10, %9 : vector<24x512xf32>
    %12 = math.exp %11 : vector<24x512xf32>
    %cst_10 = arith.constant 1.000000e+00 : f32
    %13 = vector.broadcast %cst_10 : f32 to vector<24x512xf32>
    %14 = arith.addf %13, %12 : vector<24x512xf32>
    %cst_11 = arith.constant 1.000000e+00 : f32
    %15 = vector.broadcast %cst_11 : f32 to vector<24x512xf32>
    %16 = arith.divf %15, %14 : vector<24x512xf32>
    %17 = arith.mulf %9, %16 : vector<24x512xf32>
    %18 = tpu.iota {dimensions = array<i32: 1>} : vector<1x512xi32>
    %c7_i32 = arith.constant 7 : i32
    %19 = vector.broadcast %c7_i32 : i32 to vector<1x512xi32>
    %20 = arith.andi %18, %19 : vector<1x512xi32>
    %c3_i32 = arith.constant 3 : i32
    %21 = vector.broadcast %c3_i32 : i32 to vector<1x512xi32>
    %22 = arith.shrsi %18, %21 : vector<1x512xi32>
    %c7_i32_12 = arith.constant 7 : i32
    %23 = vector.broadcast %c7_i32_12 : i32 to vector<1x512xi32>
    %24 = arith.andi %22, %23 : vector<1x512xi32>
    %c6_i32 = arith.constant 6 : i32
    %25 = vector.broadcast %c6_i32 : i32 to vector<1x512xi32>
    %26 = arith.shrsi %18, %25 : vector<1x512xi32>
    %c7_i32_13 = arith.constant 7 : i32
    %27 = vector.broadcast %c7_i32_13 : i32 to vector<1x512xi32>
    %28 = arith.andi %26, %27 : vector<1x512xi32>
    %c1_i32 = arith.constant 1 : i32
    %29 = vector.broadcast %c1_i32 : i32 to vector<1x512xi32>
    %30 = arith.cmpi sge, %28, %29 : vector<1x512xi32>
    %31 = arith.extui %30 : vector<1x512xi1> to vector<1x512xi32>
    %32 = arith.sitofp %31 : vector<1x512xi32> to vector<1x512xf32>
    %c7_i32_14 = arith.constant 7 : i32
    %33 = vector.broadcast %c7_i32_14 : i32 to vector<1x512xi32>
    %34 = arith.cmpi slt, %28, %33 : vector<1x512xi32>
    %35 = arith.extui %34 : vector<1x512xi1> to vector<1x512xi32>
    %36 = arith.sitofp %35 : vector<1x512xi32> to vector<1x512xf32>
    %c1_i32_15 = arith.constant 1 : i32
    %37 = vector.broadcast %c1_i32_15 : i32 to vector<1x512xi32>
    %38 = arith.cmpi sge, %24, %37 : vector<1x512xi32>
    %39 = arith.extui %38 : vector<1x512xi1> to vector<1x512xi32>
    %40 = arith.sitofp %39 : vector<1x512xi32> to vector<1x512xf32>
    %c7_i32_16 = arith.constant 7 : i32
    %41 = vector.broadcast %c7_i32_16 : i32 to vector<1x512xi32>
    %42 = arith.cmpi slt, %24, %41 : vector<1x512xi32>
    %43 = arith.extui %42 : vector<1x512xi1> to vector<1x512xi32>
    %44 = arith.sitofp %43 : vector<1x512xi32> to vector<1x512xf32>
    %c1_i32_17 = arith.constant 1 : i32
    %45 = vector.broadcast %c1_i32_17 : i32 to vector<1x512xi32>
    %46 = arith.cmpi sge, %20, %45 : vector<1x512xi32>
    %47 = arith.extui %46 : vector<1x512xi1> to vector<1x512xi32>
    %48 = arith.sitofp %47 : vector<1x512xi32> to vector<1x512xf32>
    %c7_i32_18 = arith.constant 7 : i32
    %49 = vector.broadcast %c7_i32_18 : i32 to vector<1x512xi32>
    %50 = arith.cmpi slt, %20, %49 : vector<1x512xi32>
    %51 = arith.extui %50 : vector<1x512xi1> to vector<1x512xi32>
    %52 = arith.sitofp %51 : vector<1x512xi32> to vector<1x512xf32>
    %c0_19 = arith.constant 0 : index
    %c13 = arith.constant 13 : index
    %53 = vector.load %arg3[%c0_19, %c13] : memref<24x27xf32, #tpu.memory_space<vmem>>, vector<24x1xf32>
    %54 = vector.broadcast %53 : vector<24x1xf32> to vector<24x512xf32>
    %55 = arith.mulf %17, %54 : vector<24x512xf32>
    %c73_i32 = arith.constant 73 : i32
    %56 = tpu.dynamic_rotate %17 by %c73_i32 dim 1 : vector<24x512xf32>, i32 -> vector<24x512xf32>
    %57 = arith.mulf %32, %40 : vector<1x512xf32>
    %58 = arith.mulf %57, %48 : vector<1x512xf32>
    %59 = vector.broadcast %58 : vector<1x512xf32> to vector<24x512xf32>
    %60 = arith.mulf %56, %59 : vector<24x512xf32>
    %c0_20 = arith.constant 0 : index
    %c0_21 = arith.constant 0 : index
    %61 = vector.load %arg3[%c0_20, %c0_21] : memref<24x27xf32, #tpu.memory_space<vmem>>, vector<24x1xf32>
    %62 = vector.broadcast %61 : vector<24x1xf32> to vector<24x512xf32>
    %63 = arith.mulf %60, %62 : vector<24x512xf32>
    %64 = arith.addf %55, %63 : vector<24x512xf32>
    %c72_i32 = arith.constant 72 : i32
    %65 = tpu.dynamic_rotate %17 by %c72_i32 dim 1 : vector<24x512xf32>, i32 -> vector<24x512xf32>
    %66 = arith.mulf %32, %40 : vector<1x512xf32>
    %67 = vector.broadcast %66 : vector<1x512xf32> to vector<24x512xf32>
    %68 = arith.mulf %65, %67 : vector<24x512xf32>
    %c0_22 = arith.constant 0 : index
    %c1_23 = arith.constant 1 : index
    %69 = vector.load %arg3[%c0_22, %c1_23] : memref<24x27xf32, #tpu.memory_space<vmem>>, vector<24x1xf32>
    %70 = vector.broadcast %69 : vector<24x1xf32> to vector<24x512xf32>
    %71 = arith.mulf %68, %70 : vector<24x512xf32>
    %c71_i32 = arith.constant 71 : i32
    %72 = tpu.dynamic_rotate %17 by %c71_i32 dim 1 : vector<24x512xf32>, i32 -> vector<24x512xf32>
    %73 = arith.mulf %32, %40 : vector<1x512xf32>
    %74 = arith.mulf %73, %52 : vector<1x512xf32>
    %75 = vector.broadcast %74 : vector<1x512xf32> to vector<24x512xf32>
    %76 = arith.mulf %72, %75 : vector<24x512xf32>
    %c0_24 = arith.constant 0 : index
    %c2_25 = arith.constant 2 : index
    %77 = vector.load %arg3[%c0_24, %c2_25] : memref<24x27xf32, #tpu.memory_space<vmem>>, vector<24x1xf32>
    %78 = vector.broadcast %77 : vector<24x1xf32> to vector<24x512xf32>
    %79 = arith.mulf %76, %78 : vector<24x512xf32>
    %80 = arith.addf %64, %79 : vector<24x512xf32>
    %c65_i32 = arith.constant 65 : i32
    %81 = tpu.dynamic_rotate %17 by %c65_i32 dim 1 : vector<24x512xf32>, i32 -> vector<24x512xf32>
    %82 = arith.mulf %32, %48 : vector<1x512xf32>
    %83 = vector.broadcast %82 : vector<1x512xf32> to vector<24x512xf32>
    %84 = arith.mulf %81, %83 : vector<24x512xf32>
    %c0_26 = arith.constant 0 : index
    %c3_27 = arith.constant 3 : index
    %85 = vector.load %arg3[%c0_26, %c3_27] : memref<24x27xf32, #tpu.memory_space<vmem>>, vector<24x1xf32>
    %86 = vector.broadcast %85 : vector<24x1xf32> to vector<24x512xf32>
    %87 = arith.mulf %84, %86 : vector<24x512xf32>
    %88 = arith.addf %71, %87 : vector<24x512xf32>
    %c64_i32 = arith.constant 64 : i32
    %89 = tpu.dynamic_rotate %17 by %c64_i32 dim 1 : vector<24x512xf32>, i32 -> vector<24x512xf32>
    %90 = vector.broadcast %32 : vector<1x512xf32> to vector<24x512xf32>
    %91 = arith.mulf %89, %90 : vector<24x512xf32>
    %c0_28 = arith.constant 0 : index
    %c4 = arith.constant 4 : index
    %92 = vector.load %arg3[%c0_28, %c4] : memref<24x27xf32, #tpu.memory_space<vmem>>, vector<24x1xf32>
    %93 = vector.broadcast %92 : vector<24x1xf32> to vector<24x512xf32>
    %94 = arith.mulf %91, %93 : vector<24x512xf32>
    %95 = arith.addf %80, %94 : vector<24x512xf32>
    %c63_i32 = arith.constant 63 : i32
    %96 = tpu.dynamic_rotate %17 by %c63_i32 dim 1 : vector<24x512xf32>, i32 -> vector<24x512xf32>
    %97 = arith.mulf %32, %52 : vector<1x512xf32>
    %98 = vector.broadcast %97 : vector<1x512xf32> to vector<24x512xf32>
    %99 = arith.mulf %96, %98 : vector<24x512xf32>
    %c0_29 = arith.constant 0 : index
    %c5 = arith.constant 5 : index
    %100 = vector.load %arg3[%c0_29, %c5] : memref<24x27xf32, #tpu.memory_space<vmem>>, vector<24x1xf32>
    %101 = vector.broadcast %100 : vector<24x1xf32> to vector<24x512xf32>
    %102 = arith.mulf %99, %101 : vector<24x512xf32>
    %103 = arith.addf %88, %102 : vector<24x512xf32>
    %c57_i32 = arith.constant 57 : i32
    %104 = tpu.dynamic_rotate %17 by %c57_i32 dim 1 : vector<24x512xf32>, i32 -> vector<24x512xf32>
    %105 = arith.mulf %32, %44 : vector<1x512xf32>
    %106 = arith.mulf %105, %48 : vector<1x512xf32>
    %107 = vector.broadcast %106 : vector<1x512xf32> to vector<24x512xf32>
    %108 = arith.mulf %104, %107 : vector<24x512xf32>
    %c0_30 = arith.constant 0 : index
    %c6 = arith.constant 6 : index
    %109 = vector.load %arg3[%c0_30, %c6] : memref<24x27xf32, #tpu.memory_space<vmem>>, vector<24x1xf32>
    %110 = vector.broadcast %109 : vector<24x1xf32> to vector<24x512xf32>
    %111 = arith.mulf %108, %110 : vector<24x512xf32>
    %112 = arith.addf %95, %111 : vector<24x512xf32>
    %c56_i32 = arith.constant 56 : i32
    %113 = tpu.dynamic_rotate %17 by %c56_i32 dim 1 : vector<24x512xf32>, i32 -> vector<24x512xf32>
    %114 = arith.mulf %32, %44 : vector<1x512xf32>
    %115 = vector.broadcast %114 : vector<1x512xf32> to vector<24x512xf32>
    %116 = arith.mulf %113, %115 : vector<24x512xf32>
    %c0_31 = arith.constant 0 : index
    %c7 = arith.constant 7 : index
    %117 = vector.load %arg3[%c0_31, %c7] : memref<24x27xf32, #tpu.memory_space<vmem>>, vector<24x1xf32>
    %118 = vector.broadcast %117 : vector<24x1xf32> to vector<24x512xf32>
    %119 = arith.mulf %116, %118 : vector<24x512xf32>
    %120 = arith.addf %103, %119 : vector<24x512xf32>
    %c55_i32 = arith.constant 55 : i32
    %121 = tpu.dynamic_rotate %17 by %c55_i32 dim 1 : vector<24x512xf32>, i32 -> vector<24x512xf32>
    %122 = arith.mulf %32, %44 : vector<1x512xf32>
    %123 = arith.mulf %122, %52 : vector<1x512xf32>
    %124 = vector.broadcast %123 : vector<1x512xf32> to vector<24x512xf32>
    %125 = arith.mulf %121, %124 : vector<24x512xf32>
    %c0_32 = arith.constant 0 : index
    %c8 = arith.constant 8 : index
    %126 = vector.load %arg3[%c0_32, %c8] : memref<24x27xf32, #tpu.memory_space<vmem>>, vector<24x1xf32>
    %127 = vector.broadcast %126 : vector<24x1xf32> to vector<24x512xf32>
    %128 = arith.mulf %125, %127 : vector<24x512xf32>
    %129 = arith.addf %112, %128 : vector<24x512xf32>
    %c9_i32 = arith.constant 9 : i32
    %130 = tpu.dynamic_rotate %17 by %c9_i32 dim 1 : vector<24x512xf32>, i32 -> vector<24x512xf32>
    %131 = arith.mulf %40, %48 : vector<1x512xf32>
    %132 = vector.broadcast %131 : vector<1x512xf32> to vector<24x512xf32>
    %133 = arith.mulf %130, %132 : vector<24x512xf32>
    %c0_33 = arith.constant 0 : index
    %c9 = arith.constant 9 : index
    %134 = vector.load %arg3[%c0_33, %c9] : memref<24x27xf32, #tpu.memory_space<vmem>>, vector<24x1xf32>
    %135 = vector.broadcast %134 : vector<24x1xf32> to vector<24x512xf32>
    %136 = arith.mulf %133, %135 : vector<24x512xf32>
    %137 = arith.addf %120, %136 : vector<24x512xf32>
    %c8_i32 = arith.constant 8 : i32
    %138 = tpu.dynamic_rotate %17 by %c8_i32 dim 1 : vector<24x512xf32>, i32 -> vector<24x512xf32>
    %139 = vector.broadcast %40 : vector<1x512xf32> to vector<24x512xf32>
    %140 = arith.mulf %138, %139 : vector<24x512xf32>
    %c0_34 = arith.constant 0 : index
    %c10 = arith.constant 10 : index
    %141 = vector.load %arg3[%c0_34, %c10] : memref<24x27xf32, #tpu.memory_space<vmem>>, vector<24x1xf32>
    %142 = vector.broadcast %141 : vector<24x1xf32> to vector<24x512xf32>
    %143 = arith.mulf %140, %142 : vector<24x512xf32>
    %144 = arith.addf %129, %143 : vector<24x512xf32>
    %c7_i32_35 = arith.constant 7 : i32
    %145 = tpu.dynamic_rotate %17 by %c7_i32_35 dim 1 : vector<24x512xf32>, i32 -> vector<24x512xf32>
    %146 = arith.mulf %40, %52 : vector<1x512xf32>
    %147 = vector.broadcast %146 : vector<1x512xf32> to vector<24x512xf32>
    %148 = arith.mulf %145, %147 : vector<24x512xf32>
    %c0_36 = arith.constant 0 : index
    %c11 = arith.constant 11 : index
    %149 = vector.load %arg3[%c0_36, %c11] : memref<24x27xf32, #tpu.memory_space<vmem>>, vector<24x1xf32>
    %150 = vector.broadcast %149 : vector<24x1xf32> to vector<24x512xf32>
    %151 = arith.mulf %148, %150 : vector<24x512xf32>
    %152 = arith.addf %137, %151 : vector<24x512xf32>
    %c1_i32_37 = arith.constant 1 : i32
    %153 = tpu.dynamic_rotate %17 by %c1_i32_37 dim 1 : vector<24x512xf32>, i32 -> vector<24x512xf32>
    %154 = vector.broadcast %48 : vector<1x512xf32> to vector<24x512xf32>
    %155 = arith.mulf %153, %154 : vector<24x512xf32>
    %c0_38 = arith.constant 0 : index
    %c12 = arith.constant 12 : index
    %156 = vector.load %arg3[%c0_38, %c12] : memref<24x27xf32, #tpu.memory_space<vmem>>, vector<24x1xf32>
    %157 = vector.broadcast %156 : vector<24x1xf32> to vector<24x512xf32>
    %158 = arith.mulf %155, %157 : vector<24x512xf32>
    %159 = arith.addf %144, %158 : vector<24x512xf32>
    %c511_i32 = arith.constant 511 : i32
    %160 = tpu.dynamic_rotate %17 by %c511_i32 dim 1 : vector<24x512xf32>, i32 -> vector<24x512xf32>
    %161 = vector.broadcast %52 : vector<1x512xf32> to vector<24x512xf32>
    %162 = arith.mulf %160, %161 : vector<24x512xf32>
    %c0_39 = arith.constant 0 : index
    %c14 = arith.constant 14 : index
    %163 = vector.load %arg3[%c0_39, %c14] : memref<24x27xf32, #tpu.memory_space<vmem>>, vector<24x1xf32>
    %164 = vector.broadcast %163 : vector<24x1xf32> to vector<24x512xf32>
    %165 = arith.mulf %162, %164 : vector<24x512xf32>
    %166 = arith.addf %152, %165 : vector<24x512xf32>
    %c505_i32 = arith.constant 505 : i32
    %167 = tpu.dynamic_rotate %17 by %c505_i32 dim 1 : vector<24x512xf32>, i32 -> vector<24x512xf32>
    %168 = arith.mulf %44, %48 : vector<1x512xf32>
    %169 = vector.broadcast %168 : vector<1x512xf32> to vector<24x512xf32>
    %170 = arith.mulf %167, %169 : vector<24x512xf32>
    %c0_40 = arith.constant 0 : index
    %c15 = arith.constant 15 : index
    %171 = vector.load %arg3[%c0_40, %c15] : memref<24x27xf32, #tpu.memory_space<vmem>>, vector<24x1xf32>
    %172 = vector.broadcast %171 : vector<24x1xf32> to vector<24x512xf32>
    %173 = arith.mulf %170, %172 : vector<24x512xf32>
    %174 = arith.addf %159, %173 : vector<24x512xf32>
    %c504_i32 = arith.constant 504 : i32
    %175 = tpu.dynamic_rotate %17 by %c504_i32 dim 1 : vector<24x512xf32>, i32 -> vector<24x512xf32>
    %176 = vector.broadcast %44 : vector<1x512xf32> to vector<24x512xf32>
    %177 = arith.mulf %175, %176 : vector<24x512xf32>
    %c0_41 = arith.constant 0 : index
    %c16 = arith.constant 16 : index
    %178 = vector.load %arg3[%c0_41, %c16] : memref<24x27xf32, #tpu.memory_space<vmem>>, vector<24x1xf32>
    %179 = vector.broadcast %178 : vector<24x1xf32> to vector<24x512xf32>
    %180 = arith.mulf %177, %179 : vector<24x512xf32>
    %181 = arith.addf %166, %180 : vector<24x512xf32>
    %c503_i32 = arith.constant 503 : i32
    %182 = tpu.dynamic_rotate %17 by %c503_i32 dim 1 : vector<24x512xf32>, i32 -> vector<24x512xf32>
    %183 = arith.mulf %44, %52 : vector<1x512xf32>
    %184 = vector.broadcast %183 : vector<1x512xf32> to vector<24x512xf32>
    %185 = arith.mulf %182, %184 : vector<24x512xf32>
    %c0_42 = arith.constant 0 : index
    %c17 = arith.constant 17 : index
    %186 = vector.load %arg3[%c0_42, %c17] : memref<24x27xf32, #tpu.memory_space<vmem>>, vector<24x1xf32>
    %187 = vector.broadcast %186 : vector<24x1xf32> to vector<24x512xf32>
    %188 = arith.mulf %185, %187 : vector<24x512xf32>
    %189 = arith.addf %174, %188 : vector<24x512xf32>
    %c457_i32 = arith.constant 457 : i32
    %190 = tpu.dynamic_rotate %17 by %c457_i32 dim 1 : vector<24x512xf32>, i32 -> vector<24x512xf32>
    %191 = arith.mulf %36, %40 : vector<1x512xf32>
    %192 = arith.mulf %191, %48 : vector<1x512xf32>
    %193 = vector.broadcast %192 : vector<1x512xf32> to vector<24x512xf32>
    %194 = arith.mulf %190, %193 : vector<24x512xf32>
    %c0_43 = arith.constant 0 : index
    %c18 = arith.constant 18 : index
    %195 = vector.load %arg3[%c0_43, %c18] : memref<24x27xf32, #tpu.memory_space<vmem>>, vector<24x1xf32>
    %196 = vector.broadcast %195 : vector<24x1xf32> to vector<24x512xf32>
    %197 = arith.mulf %194, %196 : vector<24x512xf32>
    %198 = arith.addf %181, %197 : vector<24x512xf32>
    %c456_i32 = arith.constant 456 : i32
    %199 = tpu.dynamic_rotate %17 by %c456_i32 dim 1 : vector<24x512xf32>, i32 -> vector<24x512xf32>
    %200 = arith.mulf %36, %40 : vector<1x512xf32>
    %201 = vector.broadcast %200 : vector<1x512xf32> to vector<24x512xf32>
    %202 = arith.mulf %199, %201 : vector<24x512xf32>
    %c0_44 = arith.constant 0 : index
    %c19 = arith.constant 19 : index
    %203 = vector.load %arg3[%c0_44, %c19] : memref<24x27xf32, #tpu.memory_space<vmem>>, vector<24x1xf32>
    %204 = vector.broadcast %203 : vector<24x1xf32> to vector<24x512xf32>
    %205 = arith.mulf %202, %204 : vector<24x512xf32>
    %206 = arith.addf %189, %205 : vector<24x512xf32>
    %c455_i32 = arith.constant 455 : i32
    %207 = tpu.dynamic_rotate %17 by %c455_i32 dim 1 : vector<24x512xf32>, i32 -> vector<24x512xf32>
    %208 = arith.mulf %36, %40 : vector<1x512xf32>
    %209 = arith.mulf %208, %52 : vector<1x512xf32>
    %210 = vector.broadcast %209 : vector<1x512xf32> to vector<24x512xf32>
    %211 = arith.mulf %207, %210 : vector<24x512xf32>
    %c0_45 = arith.constant 0 : index
    %c20 = arith.constant 20 : index
    %212 = vector.load %arg3[%c0_45, %c20] : memref<24x27xf32, #tpu.memory_space<vmem>>, vector<24x1xf32>
    %213 = vector.broadcast %212 : vector<24x1xf32> to vector<24x512xf32>
    %214 = arith.mulf %211, %213 : vector<24x512xf32>
    %215 = arith.addf %198, %214 : vector<24x512xf32>
    %c449_i32 = arith.constant 449 : i32
    %216 = tpu.dynamic_rotate %17 by %c449_i32 dim 1 : vector<24x512xf32>, i32 -> vector<24x512xf32>
    %217 = arith.mulf %36, %48 : vector<1x512xf32>
    %218 = vector.broadcast %217 : vector<1x512xf32> to vector<24x512xf32>
    %219 = arith.mulf %216, %218 : vector<24x512xf32>
    %c0_46 = arith.constant 0 : index
    %c21 = arith.constant 21 : index
    %220 = vector.load %arg3[%c0_46, %c21] : memref<24x27xf32, #tpu.memory_space<vmem>>, vector<24x1xf32>
    %221 = vector.broadcast %220 : vector<24x1xf32> to vector<24x512xf32>
    %222 = arith.mulf %219, %221 : vector<24x512xf32>
    %223 = arith.addf %206, %222 : vector<24x512xf32>
    %c448_i32 = arith.constant 448 : i32
    %224 = tpu.dynamic_rotate %17 by %c448_i32 dim 1 : vector<24x512xf32>, i32 -> vector<24x512xf32>
    %225 = vector.broadcast %36 : vector<1x512xf32> to vector<24x512xf32>
    %226 = arith.mulf %224, %225 : vector<24x512xf32>
    %c0_47 = arith.constant 0 : index
    %c22 = arith.constant 22 : index
    %227 = vector.load %arg3[%c0_47, %c22] : memref<24x27xf32, #tpu.memory_space<vmem>>, vector<24x1xf32>
    %228 = vector.broadcast %227 : vector<24x1xf32> to vector<24x512xf32>
    %229 = arith.mulf %226, %228 : vector<24x512xf32>
    %230 = arith.addf %215, %229 : vector<24x512xf32>
    %c447_i32 = arith.constant 447 : i32
    %231 = tpu.dynamic_rotate %17 by %c447_i32 dim 1 : vector<24x512xf32>, i32 -> vector<24x512xf32>
    %232 = arith.mulf %36, %52 : vector<1x512xf32>
    %233 = vector.broadcast %232 : vector<1x512xf32> to vector<24x512xf32>
    %234 = arith.mulf %231, %233 : vector<24x512xf32>
    %c0_48 = arith.constant 0 : index
    %c23 = arith.constant 23 : index
    %235 = vector.load %arg3[%c0_48, %c23] : memref<24x27xf32, #tpu.memory_space<vmem>>, vector<24x1xf32>
    %236 = vector.broadcast %235 : vector<24x1xf32> to vector<24x512xf32>
    %237 = arith.mulf %234, %236 : vector<24x512xf32>
    %238 = arith.addf %223, %237 : vector<24x512xf32>
    %c441_i32 = arith.constant 441 : i32
    %239 = tpu.dynamic_rotate %17 by %c441_i32 dim 1 : vector<24x512xf32>, i32 -> vector<24x512xf32>
    %240 = arith.mulf %36, %44 : vector<1x512xf32>
    %241 = arith.mulf %240, %48 : vector<1x512xf32>
    %242 = vector.broadcast %241 : vector<1x512xf32> to vector<24x512xf32>
    %243 = arith.mulf %239, %242 : vector<24x512xf32>
    %c0_49 = arith.constant 0 : index
    %c24 = arith.constant 24 : index
    %244 = vector.load %arg3[%c0_49, %c24] : memref<24x27xf32, #tpu.memory_space<vmem>>, vector<24x1xf32>
    %245 = vector.broadcast %244 : vector<24x1xf32> to vector<24x512xf32>
    %246 = arith.mulf %243, %245 : vector<24x512xf32>
    %247 = arith.addf %230, %246 : vector<24x512xf32>
    %c440_i32 = arith.constant 440 : i32
    %248 = tpu.dynamic_rotate %17 by %c440_i32 dim 1 : vector<24x512xf32>, i32 -> vector<24x512xf32>
    %249 = arith.mulf %36, %44 : vector<1x512xf32>
    %250 = vector.broadcast %249 : vector<1x512xf32> to vector<24x512xf32>
    %251 = arith.mulf %248, %250 : vector<24x512xf32>
    %c0_50 = arith.constant 0 : index
    %c25 = arith.constant 25 : index
    %252 = vector.load %arg3[%c0_50, %c25] : memref<24x27xf32, #tpu.memory_space<vmem>>, vector<24x1xf32>
    %253 = vector.broadcast %252 : vector<24x1xf32> to vector<24x512xf32>
    %254 = arith.mulf %251, %253 : vector<24x512xf32>
    %255 = arith.addf %238, %254 : vector<24x512xf32>
    %c439_i32 = arith.constant 439 : i32
    %256 = tpu.dynamic_rotate %17 by %c439_i32 dim 1 : vector<24x512xf32>, i32 -> vector<24x512xf32>
    %257 = arith.mulf %36, %44 : vector<1x512xf32>
    %258 = arith.mulf %257, %52 : vector<1x512xf32>
    %259 = vector.broadcast %258 : vector<1x512xf32> to vector<24x512xf32>
    %260 = arith.mulf %256, %259 : vector<24x512xf32>
    %c0_51 = arith.constant 0 : index
    %c26 = arith.constant 26 : index
    %261 = vector.load %arg3[%c0_51, %c26] : memref<24x27xf32, #tpu.memory_space<vmem>>, vector<24x1xf32>
    %262 = vector.broadcast %261 : vector<24x1xf32> to vector<24x512xf32>
    %263 = arith.mulf %260, %262 : vector<24x512xf32>
    %264 = arith.addf %247, %263 : vector<24x512xf32>
    %265 = arith.addf %255, %264 : vector<24x512xf32>
    %266 = vector.broadcast %3 : vector<24x1xf32> to vector<24x512xf32>
    %267 = arith.addf %265, %266 : vector<24x512xf32>
    %cst_52 = arith.constant 0.000000e+00 : f32
    %268 = vector.broadcast %cst_52 : f32 to vector<24x512xf32>
    %269 = arith.subf %268, %267 : vector<24x512xf32>
    %270 = math.exp %269 : vector<24x512xf32>
    %cst_53 = arith.constant 1.000000e+00 : f32
    %271 = vector.broadcast %cst_53 : f32 to vector<24x512xf32>
    %272 = arith.addf %271, %270 : vector<24x512xf32>
    %cst_54 = arith.constant 1.000000e+00 : f32
    %273 = vector.broadcast %cst_54 : f32 to vector<24x512xf32>
    %274 = arith.divf %273, %272 : vector<24x512xf32>
    %275 = arith.mulf %267, %274 : vector<24x512xf32>
    %cst_55 = arith.constant dense<0.000000e+00> : vector<24xf32>
    %276 = vector.multi_reduction <add>, %275, %cst_55 [1] : vector<24x512xf32> to vector<24xf32>
    %277 = vector.shape_cast %276 : vector<24xf32> to vector<24x1xf32>
    %cst_56 = arith.constant 0.001953125 : f32
    %278 = vector.broadcast %cst_56 : f32 to vector<24x1xf32>
    %279 = arith.mulf %277, %278 : vector<24x1xf32>
    %280 = arith.mulf %279, %4 : vector<24x1xf32>
    %cst_57 = arith.constant dense<0.000000e+00> : vector<1xf32>
    %281 = vector.multi_reduction <add>, %280, %cst_57 [0] : vector<24x1xf32> to vector<1xf32>
    %282 = vector.shape_cast %281 : vector<1xf32> to vector<1x1xf32>
    %c6_58 = arith.constant 6 : index
    %c0_59 = arith.constant 0 : index
    %283 = vector.load %arg4[%c6_58, %c0_59] : memref<8x24xf32, #tpu.memory_space<vmem>>, vector<1x1xf32>
    %284 = arith.addf %282, %283 : vector<1x1xf32>
    %cst_60 = arith.constant 0.000000e+00 : f32
    %285 = vector.broadcast %cst_60 : f32 to vector<1x1xf32>
    %286 = arith.subf %285, %284 : vector<1x1xf32>
    %287 = math.exp %286 : vector<1x1xf32>
    %cst_61 = arith.constant 1.000000e+00 : f32
    %288 = vector.broadcast %cst_61 : f32 to vector<1x1xf32>
    %289 = arith.addf %288, %287 : vector<1x1xf32>
    %cst_62 = arith.constant 1.000000e+00 : f32
    %290 = vector.broadcast %cst_62 : f32 to vector<1x1xf32>
    %291 = arith.divf %290, %289 : vector<1x1xf32>
    %292 = arith.mulf %284, %291 : vector<1x1xf32>
    %c4_63 = arith.constant 4 : index
    %c0_64 = arith.constant 0 : index
    %293 = vector.load %arg4[%c4_63, %c0_64] : memref<8x24xf32, #tpu.memory_space<vmem>>, vector<1x24xf32>
    %294 = vector.broadcast %292 : vector<1x1xf32> to vector<1x24xf32>
    %295 = arith.mulf %293, %294 : vector<1x24xf32>
    %c5_65 = arith.constant 5 : index
    %c0_66 = arith.constant 0 : index
    %296 = vector.load %arg4[%c5_65, %c0_66] : memref<8x24xf32, #tpu.memory_space<vmem>>, vector<1x24xf32>
    %297 = arith.addf %295, %296 : vector<1x24xf32>
    %cst_67 = arith.constant 0.000000e+00 : f32
    %298 = vector.broadcast %cst_67 : f32 to vector<1x24xf32>
    %299 = arith.subf %298, %297 : vector<1x24xf32>
    %300 = math.exp %299 : vector<1x24xf32>
    %cst_68 = arith.constant 1.000000e+00 : f32
    %301 = vector.broadcast %cst_68 : f32 to vector<1x24xf32>
    %302 = arith.addf %301, %300 : vector<1x24xf32>
    %cst_69 = arith.constant 1.000000e+00 : f32
    %303 = vector.broadcast %cst_69 : f32 to vector<1x24xf32>
    %304 = arith.divf %303, %302 : vector<1x24xf32>
    %c0_70 = arith.constant 0 : index
    %c0_71 = arith.constant 0 : index
    %305 = vector.load %arg4[%c0_70, %c0_71] : memref<8x24xf32, #tpu.memory_space<vmem>>, vector<4x24xf32>
    %306 = vector.broadcast %304 : vector<1x24xf32> to vector<4x24xf32>
    %307 = arith.mulf %305, %306 : vector<4x24xf32>
    %cst_72 = arith.constant dense<0.000000e+00> : vector<4x512xf32>
    %308 = tpu.matmul %307, %275, %cst_72 {dimension_numbers = #tpu.dot_dimension_numbers<[1], [0], [0], [1], [0, 0, 1, 1], [], []>} : vector<4x24xf32>, vector<24x512xf32>, vector<4x512xf32> -> vector<4x512xf32>
    %309 = vector.broadcast %5 : vector<4x1xf32> to vector<4x512xf32>
    %310 = arith.addf %308, %309 : vector<4x512xf32>
    %311 = arith.addf %310, %1 : vector<4x512xf32>
    %c0_73 = arith.constant 0 : index
    %c0_74 = arith.constant 0 : index
    %c0_75 = arith.constant 0 : index
    %312 = vector.load %arg6[%c0_73, %c0_74, %c0_75] : memref<1x4x512xf32, #tpu.memory_space<vmem>>, vector<1x4x512xf32>
    %313 = vector.shape_cast %312 : vector<1x4x512xf32> to vector<4x512xf32>
    %314 = vector.shape_cast %311 : vector<4x512xf32> to vector<1x4x512xf32>
    tpu.vector_store %arg6[%c0_73, %c0_74, %c0_75], %314 {strides = array<i32>} : memref<1x4x512xf32, #tpu.memory_space<vmem>>, vector<1x4x512xf32>,
    return
  }
  func.func @transform_0(%arg0: i32) -> (i32, i32, i32) {
    %c0_i32 = arith.constant 0 : i32
    %c0_i32_0 = arith.constant 0 : i32
    %c0_i32_1 = arith.constant 0 : i32
    return %arg0, %c0_i32, %c0_i32_0 : i32, i32, i32
  }
  func.func @transform_1(%arg0: i32) -> (i32, i32) {
    %c0_i32 = arith.constant 0 : i32
    %c0_i32_0 = arith.constant 0 : i32
    %c0_i32_1 = arith.constant 0 : i32
    return %c0_i32, %c0_i32_0 : i32, i32
  }
  func.func @transform_2(%arg0: i32) -> (i32, i32) {
    %c0_i32 = arith.constant 0 : i32
    %c0_i32_0 = arith.constant 0 : i32
    %c0_i32_1 = arith.constant 0 : i32
    return %c0_i32, %c0_i32_0 : i32, i32
  }
  func.func @transform_3(%arg0: i32) -> (i32, i32) {
    %c0_i32 = arith.constant 0 : i32
    %c0_i32_0 = arith.constant 0 : i32
    %c0_i32_1 = arith.constant 0 : i32
    return %c0_i32, %c0_i32_0 : i32, i32
  }
  func.func @transform_4(%arg0: i32) -> (i32, i32) {
    %c0_i32 = arith.constant 0 : i32
    %c0_i32_0 = arith.constant 0 : i32
    %c0_i32_1 = arith.constant 0 : i32
    return %c0_i32, %c0_i32_0 : i32, i32
  }
  func.func @transform_5(%arg0: i32) -> (i32, i32, i32) {
    %c0_i32 = arith.constant 0 : i32
    %c0_i32_0 = arith.constant 0 : i32
    %c0_i32_1 = arith.constant 0 : i32
    return %arg0, %c0_i32, %c0_i32_0 : i32, i32, i32
  }
}

</mosaic_0001>

<bundles_post_ra>
// kernel: _lambda_.1
= control target key start
LH: loop header
LB: loop body
LE: loop exit
PB: predicated region body
PF: predicated region fallthrough
CT: control target
= control target key end

     0   :  { %s3378_s18 = smov 0   ;;  %s7623_s0 = inlined_call_operand.vmem [shape: f32[2,4,512], index: 0, kind: input, shape index: {}]   ;;  %s7624_s1 = inlined_call_operand.vmem [shape: f32[24,4], index: 1, kind: input, shape index: {}]   ;;  %s7625_s2 = inlined_call_operand.vmem [shape: f32[24,27], index: 2, kind: input, shape index: {}]   ;;  %s7626_s3 = inlined_call_operand.vmem [shape: f32[8,24], index: 3, kind: input, shape index: {}]   ;;  %s7627_s4 = inlined_call_operand.vmem [shape: f32[24,4], index: 4, kind: input, shape index: {}]   ;;  %s7628_s5 = inlined_call_operand.vmem [shape: f32[2,4,512], index: 5, kind: output, shape index: {}]  }
   0x1 LB: > { %s3003_s19 = sadd.s32 4294967295, %s3300_s18   ;;  %p3007_p0 = scmp.ge.s32.totalorder %s3300_s18, 1  ;;  %s3300_s18 = sphi %s3378_s18, %s15_s18  }
   0x2   : > { %p187_p1 = scmp.lt.s32.totalorder %s3300_s18, 3 }
   0x4   : > { %p188_p2 = pnand %p3007_p0, %p187_p1 }
   0x6   : > { %191 = sbr.rel (%p188_p2) target bundleno = 1620 (0x654), region = 40 }
   0xd   : > { %p215_p3 = scmp.lt.s32.totalorder %s3003_s19, 1  ;;  %v7634_v0 = vmov 0.0   ;;  %v3391_v1 = vld [vmem:[%s7625_s2 + $0x8] sm:$0xff]  ;;  %v3303_v2 = vmov 13   ;;  %v3304_v3 = vmov 0   ;;  %v229_v4 = vld [vmem:[%s7627_s4 + $0x10] sm:$0xff] }
   0xe   : > { %336 = vmatprep.mubr.f32.mxu0 %v7634_v0  ;;  %419 = vmatprep.mubr.f32.mxu1 %v7634_v0  ;;  %v227_v5 = vld [vmem:[%s7627_s4] sm:$0xff]  ;;  %vm263_vm0 = vcmask 1043456   ;;  %vm253_vm1 = vcmask 31744   ;;  %v228_v12 = vld [vmem:[%s7627_s4 + $0x8] sm:$0xff]  ;;  %v3433_v13 = vld [vmem:[%s7625_s2 + $0x10] sm:$0xff]  ;;  %v7632_v16 = vmov 1  }
   0xf   : > { %s9379_s19 = smov (!%p215_p3, %s3003_s19), 1  ;;  %3116 = vset.pattern.permute.xlu0 %v3303_v2  ;;  %3114 = vset.pattern.permute.xlu1 %v3304_v3  ;;  %v3413_v6 = vld [vmem:[%s7625_s2] sm:$0xff]  ;;  %v232_v14 = vld [vmem:[%s7624_s1 + $0x8] sm:$0xff]  ;;  %v233_v15 = vld [vmem:[%s7624_s1 + $0x10] sm:$0xff]  ;;  %v7629_v17 = vmov 2   ;;  %v7630_v18 = vmov 3  }
  0x10   : > { %629 = vperm.xlu0 %3116, %v3391_v1   ;;  %246 = vperm.xlu1 %3114, %v229_v4   ;;  %s3050_s24 = sshll.u32 %s9379_s19, 4  ;;  %v231_v11 = vld [vmem:[%s7624_s1] sm:$0xff]  ;;  %v3308_v19 = vmov 4   ;;  %v3309_v20 = vmov 5   ;;  %v3310_v21 = vmov 7   ;;  %v3311_v22 = vmov 6  }
  0x11   : > { %s3405_s27 = scalar_lea.vmem %s7623_s0, %s3050_s24  ;;  %v3312_v23 = vmov 8   ;;  %v3313_v24 = vmov 9   ;;  %v7636_v25 = vmov 10   ;;  %s3315_s17 = smov 73  }
  0x12   : > { %v225_v7 = vld [vmem:[%s3405_s27] sm:$0xff]  ;;  %v226_v8 = vld [vmem:[%s3405_s27 + $0x8] sm:$0xff]  ;;  %s3316_s20 = smov 72   ;;  %s3317_s21 = smov 71  }
  0x13   : > { %v3417_v9 = vcombine.high %v225_v7, %v225_v7  ;;  %v3419_v10 = vcombine.high %v226_v8, %v226_v8  ;;  %s3318_s22 = smov 65   ;;  %s3319_s23 = smov 64  }
  0x14   : > { %3117 = vset.pattern.permute.xlu0 %v3304_v3  ;;  %3115 = vset.pattern.permute.xlu1 %v3303_v2  ;;  %s3321_s25 = smov 63   ;;  %s3322_s26 = smov 57  }
  0x15   : > { %8132 = vst [vmem:[#allocation2_spill] sm:$0xff] %v3417_v9  ;;  %8133 = vst [vmem:[#allocation3_spill] sm:$0xff] %v3419_v10  ;;  %236 = vperm.xlu0 %3117, %v227_v5   ;;  %624 = vperm.xlu1 %3115, %v3413_v6   ;;  %s3323_s28 = smov 56   ;;  %s3324_s29 = smov 55  }
  0x16   : > { %3012 = vmatprep.subr.msk.mxu0 %vm263_vm0, %v3417_v9  ;;  %3017 = vmatprep.subr.msk.mxu1 %vm263_vm0, %v3419_v10  ;;  %s3325_s30 = smov 9   ;;  %s3328_s6 = smov 8  }
  0x17   : > { %3013 = vmatpush1.msk.msra.mxu0 %vm263_vm0, %v225_v7  ;;  %3018 = vmatpush1.msk.msra.mxu1 %vm263_vm0, %v226_v8  ;;  %s3329_s7 = smov 7   ;;  %s3332_s12 = smov 1  }
  0x18   : > { %3014 = vmatmul.mubr.msk.f32.vlgmr.msra.gmra.mrb[0].mxu0 %vm253_vm1, %v231_v11  ;;  %3019 = vmatmul.mubr.msk.f32.vlgmr.msra.gmra.mrb[0].mxu1 %vm253_vm1, %v231_v11  ;;  %s3333_s13 = smov 127   ;;  %s3335_s16 = smov 121  }
  0x19   : > { %342 = vmatprep.mubr.f32.mxu0 %v7634_v0  ;;  %425 = vmatprep.mubr.f32.mxu1 %v7634_v0  ;;  %s3347_s14 = smov 2   ;;  %s224_s10 = scalar_lea.vmem %s7628_s5, %s3050_s24 }
  0x1a   : > { %241 = vperm.xlu0 %3117, %v228_v12   ;;  %634 = vperm.xlu1 %3115, %v3433_v13  }
  0x1c   : > { %3015 = vmatmul.mubr.msk.f32.gmra.mrb[2].mxu0 %vm253_vm1, %v232_v14  ;;  %3020 = vmatmul.mubr.msk.f32.gmra.mrb[2].mxu1 %vm253_vm1, %v232_v14 }
  0x1d   : > { %348 = vmatprep.mubr.f32.mxu0 %v7634_v0  ;;  %431 = vmatprep.mubr.f32.mxu1 %v7634_v0 }
  0x1e   : > { %711 = vperm.xlu0 %3117, %v3391_v1   ;;  %3118 = vset.pattern.permute.xlu1 %v3304_v3 }
  0x1f   : > { %707 = vperm.xlu1 %3118, %v3413_v6  }
  0x20   : > { %3016 = vmatmul.mubr.msk.f32.gmra.mrb[4].mxu0 %vm253_vm1, %v233_v15  ;;  %3021 = vmatmul.mubr.msk.f32.gmra.mrb[4].mxu1 %vm253_vm1, %v233_v15 }
  0x21   : > { %2854 = vmatprep.mubr.f32.mxu0 %v7634_v0  ;;  %2925 = vmatprep.mubr.f32.mxu1 %v7634_v0 }
  0x22   : > { %3120 = vset.pattern.permute.xlu0 %v7632_v16 }
  0x23   : > { %715 = vperm.xlu1 %3118, %v3433_v13   ;;  %796 = vperm.xlu0 %3120, %v3391_v1  }
  0x27   : > { %3119 = vset.pattern.permute.xlu1 %v7632_v16  ;;  %3122 = vset.pattern.permute.xlu0 %v7629_v17 }
  0x28   : > { %792 = vperm.xlu1 %3119, %v3413_v6   ;;  %873 = vperm.xlu0 %3122, %v3391_v1  }
  0x2c   : > { %800 = vperm.xlu1 %3119, %v3433_v13   ;;  %3124 = vset.pattern.permute.xlu0 %v7630_v18 }
  0x2d   : > { %962 = vperm.xlu0 %3124, %v3391_v1  }
  0x30   : > { %3121 = vset.pattern.permute.xlu1 %v7629_v17 }
  0x31   : > { %869 = vperm.xlu1 %3121, %v3413_v6   ;;  %3126 = vset.pattern.permute.xlu0 %v3308_v19 }
  0x32   : > { %1047 = vperm.xlu0 %3126, %v3391_v1  }
  0x35   : > { %877 = vperm.xlu1 %3121, %v3433_v13  }
  0x36   : > { %3127 = vset.pattern.permute.xlu0 %v3309_v20 }
  0x37   : > { %1132 = vperm.xlu0 %3127, %v3413_v6  }
  0x39   : > { %3123 = vset.pattern.permute.xlu1 %v7630_v18 }
  0x3a   : > { %958 = vperm.xlu1 %3123, %v3413_v6  }
  0x3b   : > { %3131 = vset.pattern.permute.xlu0 %v3310_v21 }
  0x3c   : > { %1314 = vperm.xlu0 %3131, %v3391_v1  }
  0x3e   : > { %966 = vperm.xlu1 %3123, %v3433_v13  }
  0x40   : > { %3132 = vset.pattern.permute.xlu0 %v3311_v22 }
  0x41   : > { %1225 = vperm.xlu0 %3132, %v3413_v6  }
  0x42   : > { %3125 = vset.pattern.permute.xlu1 %v3308_v19 }
  0x43   : > { %1043 = vperm.xlu1 %3125, %v3413_v6  }
  0x45   : > { %1233 = vperm.xlu0 %3132, %v3433_v13  }
  0x47   : > { %1051 = vperm.xlu1 %3125, %v3433_v13  }
  0x49   : > { %3134 = vset.pattern.permute.xlu0 %v3312_v23 }
  0x4a   : > { %1403 = vperm.xlu0 %3134, %v3391_v1  }
  0x4b   : > { %3128 = vset.pattern.permute.xlu1 %v3309_v20 }
  0x4c   : > { %1136 = vperm.xlu1 %3128, %v3391_v1  }
  0x4e   : > { %3137 = vset.pattern.permute.xlu0 %v3313_v24 }
  0x4f   : > { %1496 = vperm.xlu0 %3137, %v3433_v13  }
  0x50   : > { %1140 = vperm.xlu1 %3128, %v3433_v13  }
  0x54   : > { %3129 = vset.pattern.permute.xlu1 %v3311_v22 }
  0x55   : > { %1229 = vperm.xlu1 %3129, %v3391_v1  }
  0x59   : > { %3130 = vset.pattern.permute.xlu1 %v3310_v21 }
  0x5a   : > { %1310 = vperm.xlu1 %3130, %v3413_v6  }
  0x5e   : > { %1318 = vperm.xlu1 %3130, %v3433_v13  }
  0x62   : > { %3133 = vset.pattern.permute.xlu1 %v3312_v23 }
  0x63   : > { %1399 = vperm.xlu1 %3133, %v3413_v6  }
  0x67   : > { %3135 = vset.pattern.permute.xlu1 %v3313_v24 }
  0x68   : > { %1488 = vperm.xlu1 %3135, %v3413_v6  }
  0x6c   : > { %1492 = vperm.xlu1 %3135, %v3391_v1  }
  0x70   : > { %3136 = vset.pattern.permute.xlu1 %v3312_v23 }
  0x71   : > { %1407 = vperm.xlu1 %3136, %v3433_v13  }
  0x75   : > { %3138 = vset.pattern.permute.xlu1 %v7636_v25 }
  0x76   : > { %1573 = vperm.xlu1 %3138, %v3413_v6  }
  0x8f   : > { %v3492_v26 = vpop.permute.xlu0 %629  ;;  %v3506_v52 = vpop.permute.xlu1 %246 }
  0x94   : > { %v237_v27 = vpop.permute.xlu0 %236  ;;  %v3508_v58 = vpop.permute.xlu1 %624 }
  0x99   : > { %v3510_v62 = vpop.permute.xlu1 %634  ;;  %v242_v12 = vpop.permute.xlu0 %241 }
  0x9e   : > { %v3512_v63 = vpop.permute.xlu1 %707 }
  0xa2   : > { %v3520_v8 = vpop.permute.xlu1 %715 }
  0xa3   : > { %8136 = vst [vmem:[#allocation6_spill] sm:$0xff] %v3520_v8 }
  0xa7   : > { %v3532_v22 = vpop.permute.xlu1 %792 }
  0xa8   : > { %8139 = vst [vmem:[#allocation9_spill] sm:$0xff] %v3532_v22 }
  0xeb   : > { %v338_v28 = vpop.f32.mrb[0].mxu0  ;;  %v421_v29 = vpop.f32.mrb[0].mxu1 }
  0xec   : > { %v339_v30 = vadd.f32 %v338_v28, %v237_v27  ;;  %v422_v31 = vadd.f32 %v421_v29, %v237_v27  ;;  %v340_v32 = vpop.f32.mrb[1].mxu0  ;;  %v423_v33 = vpop.f32.mrb[1].mxu1 }
  0xed   : > { %v341_v34 = vadd.f32 %v340_v32, %v237_v27  ;;  %v424_v35 = vadd.f32 %v423_v33, %v237_v27  ;;  %v3540_v27 = vpop.permute.xlu1 %800 }
  0xee   : > { %v438_v36 = vsub.f32 0.0, %v339_v30  ;;  %v440_v37 = vsub.f32 0.0, %v422_v31  ;;  %8140 = vst [vmem:[#allocation10_spill] sm:$0xff] %v3540_v27 }
  0xef   : > { %v439_v38 = vsub.f32 0.0, %v341_v34  ;;  %v441_v39 = vsub.f32 0.0, %v424_v35  ;;  %v344_v40 = vpop.f32.mrb[2].mxu0  ;;  %v427_v41 = vpop.f32.mrb[2].mxu1 }
  0xf0   : > { %v450_v42 = vmul.f32 1.442695, %v438_v36  ;;  %v454_v43 = vmul.f32 1.442695, %v440_v37  ;;  %v3494_v44 = vpop.f32.mrb[3].mxu0  ;;  %v3496_v45 = vpop.f32.mrb[3].mxu1  ;;  %v345_v15 = vadd.f32 %v344_v40, %v242_v12  ;;  %v428_v21 = vadd.f32 %v427_v41, %v242_v12 }
  0xf1   : > { %v452_v46 = vmul.f32 1.442695, %v439_v38  ;;  %v456_v47 = vmul.f32 1.442695, %v441_v39  ;;  %v3548_v29 = vpop.permute.xlu1 %869  ;;  %v347_v36 = vadd.f32 %v3494_v44, %v242_v12  ;;  %v430_v38 = vadd.f32 %v3496_v45, %v242_v12 }
  0xf2   : > { %3175 = vpow2.f32 %v450_v42  ;;  %v442_v20 = vsub.f32 0.0, %v345_v15  ;;  %v444_v24 = vsub.f32 0.0, %v428_v21  ;;  %8141 = vst [vmem:[#allocation11_spill] sm:$0xff] %v3548_v29  ;;  %v7637_v40 = vmov 11  }
  0xf3   : > { %3177 = vpow2.f32 %v454_v43  ;;  %v3498_v48 = vpop.f32.mrb[4].mxu0  ;;  %v3500_v49 = vpop.f32.mrb[4].mxu1  ;;  %v443_v37 = vsub.f32 0.0, %v347_v36  ;;  %3139 = vset.pattern.permute.xlu0 %v7637_v40  ;;  %v445_v42 = vsub.f32 0.0, %v430_v38 }
  0xf4   : > { %3179 = vpow2.f32 %v452_v46  ;;  %v3502_v50 = vpop.f32.mrb[5].mxu0  ;;  %v3504_v51 = vpop.f32.mrb[5].mxu1  ;;  %v458_v23 = vmul.f32 1.442695, %v442_v20  ;;  %v462_v28 = vmul.f32 1.442695, %v444_v24 }
  0xf5   : > { %3181 = vpow2.f32 %v456_v47  ;;  %v460_v41 = vmul.f32 1.442695, %v443_v37  ;;  %v464_v46 = vmul.f32 1.442695, %v445_v42 }
  0xfc   : > { %v3176_v53 = vpop.eup %3175 }
  0xfd   : > { %v3178_v54 = vpop.eup %3177  ;;  %v474_v55 = vadd.f32 1.0, %v3176_v53 }
  0xfe   : > { %v3180_v56 = vpop.eup %3179  ;;  %v476_v57 = vadd.f32 1.0, %v3178_v54 }
  0xff   : > { %v3182_v59 = vpop.eup %3181  ;;  %3183 = vrcp.f32 %v474_v55  ;;  %v475_v60 = vadd.f32 1.0, %v3180_v56  ;;  %v3599_v55 = vpop.permute.xlu0 %711 }
 0x100   : > { %3185 = vrcp.f32 %v476_v57  ;;  %v477_v61 = vadd.f32 1.0, %v3182_v59  ;;  %8149 = vst [vmem:[#allocation19_spill] sm:$0xff] %v3599_v55 }
 0x101   : > { %3187 = vrcp.f32 %v475_v60 }
 0x102   : > { %3189 = vrcp.f32 %v477_v61 }
 0x103   : > { %3191 = vpow2.f32 %v458_v23  ;;  %v3609_v59 = vpop.permute.xlu0 %796  ;;  %v3641_v23 = vadd.f32 %v3502_v50, %v3506_v52 }
 0x104   : > { %3193 = vpow2.f32 %v462_v28  ;;  %8151 = vst [vmem:[#allocation21_spill] sm:$0xff] %v3609_v59  ;;  %v8204_v59 = vmov 10  }
 0x109   : > { %v3184_v2 = vpop.eup %3183 }
 0x10a   : > { %v3186_v3 = vpop.eup %3185  ;;  %v3514_v4 = vmul.f32 %v3184_v2, %v339_v30 }
 0x10b   : > { %v3188_v5 = vpop.eup %3187  ;;  %v3522_v14 = vmul.f32 %v3186_v3, %v422_v31  ;;  %v3556_v31 = vpop.permute.xlu1 %877 }
 0x10c   : > { %8134 = vst [vmem:[#allocation4_spill] sm:$0xff] %v3514_v4  ;;  %v3516_v7 = vmul.f32 %v3188_v5, %v341_v34  ;;  %649 = vrot.lane.b32.xlu1 %v3514_v4, %s3315_s17  ;;  %v3190_v11 = vpop.eup %3189  ;;  %8142 = vst [vmem:[#allocation12_spill] sm:$0xff] %v3556_v31  ;;  %v3619_v5 = vpop.permute.xlu0 %873 }
 0x10d   : > { %8137 = vst [vmem:[#allocation7_spill] sm:$0xff] %v3522_v14  ;;  %v3526_v19 = vmul.f32 %v3190_v11, %v424_v35  ;;  %v3192_v30 = vpop.eup %3191  ;;  %8153 = vst [vmem:[#allocation23_spill] sm:$0xff] %v3619_v5 }
 0x10e   : > { %8135 = vst [vmem:[#allocation5_spill] sm:$0xff] %v3516_v7  ;;  %655 = vrot.lane.b32.xlu0 %v3516_v7, %s3315_s17  ;;  %v478_v32 = vadd.f32 1.0, %v3192_v30  ;;  %v3194_v33 = vpop.eup %3193 }
 0x10f   : > { %8138 = vst [vmem:[#allocation8_spill] sm:$0xff] %v3526_v19  ;;  %v3564_v34 = vpop.permute.xlu1 %958  ;;  %v480_v35 = vadd.f32 1.0, %v3194_v33  ;;  %v3654_v33 = vadd.f32 %v3504_v51, %v3506_v52  ;;  %v3673_v51 = vadd.f32 %v3500_v49, %v3506_v52 }
 0x110   : > { %661 = vrot.lane.b32.xlu1 %v3522_v14, %s3315_s17  ;;  %8143 = vst [vmem:[#allocation13_spill] sm:$0xff] %v3564_v34  ;;  %3195 = vrcp.f32 %v478_v32  ;;  %v3629_v12 = vpop.permute.xlu0 %962  ;;  %v447_v32 = vsub.f32 0.0, %v3641_v23 }
 0x111   : > { %3197 = vrcp.f32 %v480_v35  ;;  %8155 = vst [vmem:[#allocation25_spill] sm:$0xff] %v3629_v12  ;;  %v3662_v35 = vadd.f32 %v3498_v48, %v3506_v52 }
 0x112   : > { %667 = vrot.lane.b32.xlu0 %v3526_v19, %s3315_s17  ;;  %3199 = vpow2.f32 %v460_v41  ;;  %v468_v37 = vmul.f32 1.442695, %v447_v32 }
 0x113   : > { %v3574_v39 = vpop.permute.xlu1 %966  ;;  %3201 = vpow2.f32 %v464_v46  ;;  %v446_v41 = vsub.f32 0.0, %v3662_v35  ;;  %v448_v46 = vsub.f32 0.0, %v3673_v51 }
 0x114   : > { %742 = vrot.lane.b32.xlu1 %v3514_v4, %s3316_s20  ;;  %8144 = vst [vmem:[#allocation14_spill] sm:$0xff] %v3574_v39  ;;  %v3645_v24 = vpop.permute.xlu0 %1047 }
 0x115   : > { %8158 = vst [vmem:[#allocation28_spill] sm:$0xff] %v3645_v24  ;;  %v470_v52 = vmul.f32 1.442695, %v448_v46 }
 0x116   : > { %748 = vrot.lane.b32.xlu0 %v3516_v7, %s3316_s20 }
 0x117   : > { %v3583_v44 = vpop.permute.xlu1 %1043 }
 0x118   : > { %754 = vrot.lane.b32.xlu1 %v3522_v14, %s3316_s20  ;;  %8145 = vst [vmem:[#allocation15_spill] sm:$0xff] %v3583_v44 }
 0x11a   : > { %760 = vrot.lane.b32.xlu0 %v3526_v19, %s3316_s20  ;;  %v3196_v43 = vpop.eup %3195 }
 0x11b   : > { %v3585_v45 = vmul.f32 %v3196_v43, %v345_v15  ;;  %v3198_v47 = vpop.eup %3197  ;;  %v3595_v54 = vpop.permute.xlu1 %1051 }
 0x11c   : > { %815 = vrot.lane.b32.xlu1 %v3514_v4, %s3317_s21  ;;  %v3591_v53 = vmul.f32 %v3198_v47, %v428_v21  ;;  %8148 = vst [vmem:[#allocation18_spill] sm:$0xff] %v3595_v54  ;;  %v3200_v56 = vpop.eup %3199  ;;  %v466_v47 = vmul.f32 1.442695, %v446_v41 }
 0x11d   : > { %8146 = vst [vmem:[#allocation16_spill] sm:$0xff] %v3585_v45  ;;  %v479_v60 = vadd.f32 1.0, %v3200_v56  ;;  %v3202_v61 = vpop.eup %3201 }
 0x11e   : > { %821 = vrot.lane.b32.xlu0 %v3516_v7, %s3317_s21  ;;  %8147 = vst [vmem:[#allocation17_spill] sm:$0xff] %v3591_v53  ;;  %v481_v3 = vadd.f32 1.0, %v3202_v61 }
 0x11f   : > { %v3605_v57 = vpop.permute.xlu1 %1136  ;;  %3203 = vrcp.f32 %v479_v60 }
 0x120   : > { %827 = vrot.lane.b32.xlu1 %v3522_v14, %s3317_s21  ;;  %8150 = vst [vmem:[#allocation20_spill] sm:$0xff] %v3605_v57  ;;  %3205 = vrcp.f32 %v481_v3 }
 0x121   : > { %3207 = vpow2.f32 %v468_v37 }
 0x122   : > { %833 = vrot.lane.b32.xlu0 %v3526_v19, %s3317_s21 }
 0x123   : > { %v3615_v2 = vpop.permute.xlu1 %1140 }
 0x124   : > { %904 = vrot.lane.b32.xlu1 %v3514_v4, %s3318_s22  ;;  %8152 = vst [vmem:[#allocation22_spill] sm:$0xff] %v3615_v2 }
 0x126   : > { %910 = vrot.lane.b32.xlu0 %v3516_v7, %s3318_s22 }
 0x127   : > { %v3625_v11 = vpop.permute.xlu1 %1229 }
 0x128   : > { %916 = vrot.lane.b32.xlu1 %v3522_v14, %s3318_s22  ;;  %8154 = vst [vmem:[#allocation24_spill] sm:$0xff] %v3625_v11  ;;  %v8200_v11 = vmov 11  }
 0x129   : > { %v3204_v15 = vpop.eup %3203 }
 0x12a   : > { %922 = vrot.lane.b32.xlu0 %v3526_v19, %s3318_s22  ;;  %v3637_v21 = vmul.f32 %v3204_v15, %v347_v36  ;;  %v3206_v28 = vpop.eup %3205  ;;  %v3666_v36 = vpop.permute.xlu0 %1132 }
 0x12b   : > { %v3635_v20 = vpop.permute.xlu1 %1310  ;;  %v3649_v30 = vmul.f32 %v3206_v28, %v430_v38  ;;  %8161 = vst [vmem:[#allocation31_spill] sm:$0xff] %v3666_v36  ;;  %v449_v38 = vsub.f32 0.0, %v3654_v33  ;;  %v3208_v60 = vpop.eup %3207 }
 0x12c   : > { %993 = vrot.lane.b32.xlu1 %v3514_v4, %s3319_s23  ;;  %8156 = vst [vmem:[#allocation26_spill] sm:$0xff] %v3635_v20  ;;  %8157 = vst [vmem:[#allocation27_spill] sm:$0xff] %v3637_v21  ;;  %v483_v15 = vadd.f32 1.0, %v3208_v60 }
 0x12d   : > { %8159 = vst [vmem:[#allocation29_spill] sm:$0xff] %v3649_v30  ;;  %v472_v42 = vmul.f32 1.442695, %v449_v38 }
 0x12e   : > { %999 = vrot.lane.b32.xlu0 %v3516_v7, %s3319_s23  ;;  %v3682_v43 = vpop.permute.xlu0 %1314 }
 0x12f   : > { %v3658_v50 = vpop.permute.xlu1 %1318  ;;  %8163 = vst [vmem:[#allocation33_spill] sm:$0xff] %v3682_v43  ;;  %3209 = vpow2.f32 %v472_v42 }
 0x130   : > { %1005 = vrot.lane.b32.xlu1 %v3522_v14, %s3319_s23  ;;  %8160 = vst [vmem:[#allocation30_spill] sm:$0xff] %v3658_v50  ;;  %3211 = vpow2.f32 %v466_v47 }
 0x131   : > { %3213 = vpow2.f32 %v470_v52 }
 0x132   : > { %1011 = vrot.lane.b32.xlu0 %v3526_v19, %s3319_s23  ;;  %v3693_v56 = vpop.permute.xlu0 %1225  ;;  %3215 = vrcp.f32 %v483_v15 }
 0x133   : > { %v3678_v48 = vpop.permute.xlu1 %1399  ;;  %8165 = vst [vmem:[#allocation35_spill] sm:$0xff] %v3693_v56 }
 0x134   : > { %1078 = vrot.lane.b32.xlu1 %v3514_v4, %s3321_s25  ;;  %8162 = vst [vmem:[#allocation32_spill] sm:$0xff] %v3678_v48 }
 0x136   : > { %1084 = vrot.lane.b32.xlu0 %v3516_v7, %s3321_s25  ;;  %v3703_v3 = vpop.permute.xlu0 %1233 }
 0x137   : > { %v3689_v49 = vpop.permute.xlu1 %1488  ;;  %8167 = vst [vmem:[#allocation37_spill] sm:$0xff] %v3703_v3 }
 0x138   : > { %1090 = vrot.lane.b32.xlu1 %v3522_v14, %s3321_s25  ;;  %8164 = vst [vmem:[#allocation34_spill] sm:$0xff] %v3689_v49 }
 0x139   : > { %v3210_v28 = vpop.eup %3209 }
 0x13a   : > { %651 = vrot.lane.b32.xlu0 %v3585_v45, %s3315_s17  ;;  %v3212_v32 = vpop.eup %3211  ;;  %v485_v38 = vadd.f32 1.0, %v3210_v28  ;;  %v3713_v41 = vpop.permute.xlu0 %1403 }
 0x13b   : > { %v3699_v61 = vpop.permute.xlu1 %1492  ;;  %8169 = vst [vmem:[#allocation39_spill] sm:$0xff] %v3713_v41  ;;  %v482_v42 = vadd.f32 1.0, %v3212_v32  ;;  %v3214_v46 = vpop.eup %3213 }
 0x13c   : > { %1167 = vrot.lane.b32.xlu1 %v3514_v4, %s3322_s26  ;;  %8166 = vst [vmem:[#allocation36_spill] sm:$0xff] %v3699_v61  ;;  %3217 = vrcp.f32 %v485_v38  ;;  %v484_v52 = vadd.f32 1.0, %v3214_v46  ;;  %v3216_v15 = vpop.eup %3215 }
 0x13d   : > { %3219 = vrcp.f32 %v482_v42  ;;  %v3732_v32 = vmul.f32 %v3216_v15, %v3641_v23 }
 0x13e   : > { %663 = vrot.lane.b32.xlu0 %v3591_v53, %s3315_s17  ;;  %v3723_v60 = vpop.permute.xlu0 %1496  ;;  %3221 = vrcp.f32 %v484_v52 }
 0x13f   : > { %v3709_v37 = vpop.permute.xlu1 %1407  ;;  %8171 = vst [vmem:[#allocation41_spill] sm:$0xff] %v3723_v60  ;;  %8172 = vst [vmem:[#allocation42_spill] sm:$0xff] %v3732_v32 }
 0x140   : > { %1260 = vrot.lane.b32.xlu1 %v3514_v4, %s3323_s28  ;;  %8168 = vst [vmem:[#allocation38_spill] sm:$0xff] %v3709_v37 }
 0x142   : > { %744 = vrot.lane.b32.xlu0 %v3585_v45, %s3316_s20 }
 0x143   : > { %v3719_v47 = vpop.permute.xlu1 %1573 }
 0x144   : > { %1096 = vrot.lane.b32.xlu1 %v3526_v19, %s3321_s25  ;;  %8170 = vst [vmem:[#allocation40_spill] sm:$0xff] %v3719_v47 }
 0x146   : > { %756 = vrot.lane.b32.xlu0 %v3591_v53, %s3316_s20  ;;  %v3218_v42 = vpop.eup %3217 }
 0x147   : > { %v3220_v52 = vpop.eup %3219  ;;  %v3743_v17 = vmul.f32 %v3218_v42, %v3654_v33 }
 0x148   : > { %1173 = vrot.lane.b32.xlu1 %v3516_v7, %s3322_s26  ;;  %v3750_v23 = vmul.f32 %v3220_v52, %v3662_v35  ;;  %v3222_v16 = vpop.eup %3221 }
 0x149   : > { %8173 = vst [vmem:[#allocation43_spill] sm:$0xff] %v3743_v17  ;;  %v3761_v33 = vmul.f32 %v3222_v16, %v3673_v51 }
 0x14a   : > { %817 = vrot.lane.b32.xlu0 %v3585_v45, %s3317_s21  ;;  %8174 = vst [vmem:[#allocation44_spill] sm:$0xff] %v3750_v23 }
 0x14b   : > { %v4437_v22 = vmul.f32 %v3510_v62, %v3761_v33 }
 0x14c   : > { %1185 = vrot.lane.b32.xlu1 %v3526_v19, %s3322_s26 }
 0x14d   : > { %8341 = vst [vmem:[#allocation195_spill] sm:$0xff] %v4437_v22 }
 0x14e   : > { %829 = vrot.lane.b32.xlu0 %v3591_v53, %s3317_s21 }
 0x150   : > { %1266 = vrot.lane.b32.xlu1 %v3516_v7, %s3323_s28 }
 0x152   : > { %906 = vrot.lane.b32.xlu0 %v3585_v45, %s3318_s22 }
 0x154   : > { %1278 = vrot.lane.b32.xlu1 %v3526_v19, %s3323_s28 }
 0x156   : > { %918 = vrot.lane.b32.xlu0 %v3591_v53, %s3318_s22 }
 0x158   : > { %657 = vrot.lane.b32.xlu1 %v3637_v21, %s3315_s17 }
 0x15a   : > { %995 = vrot.lane.b32.xlu0 %v3585_v45, %s3319_s23 }
 0x15c   : > { %669 = vrot.lane.b32.xlu1 %v3649_v30, %s3315_s17 }
 0x15e   : > { %1007 = vrot.lane.b32.xlu0 %v3591_v53, %s3319_s23 }
 0x160   : > { %750 = vrot.lane.b32.xlu1 %v3637_v21, %s3316_s20 }
 0x162   : > { %1080 = vrot.lane.b32.xlu0 %v3585_v45, %s3321_s25 }
 0x164   : > { %762 = vrot.lane.b32.xlu1 %v3649_v30, %s3316_s20 }
 0x166   : > { %1092 = vrot.lane.b32.xlu0 %v3591_v53, %s3321_s25 }
 0x168   : > { %823 = vrot.lane.b32.xlu1 %v3637_v21, %s3317_s21 }
 0x16a   : > { %1169 = vrot.lane.b32.xlu0 %v3585_v45, %s3322_s26 }
 0x16c   : > { %835 = vrot.lane.b32.xlu1 %v3649_v30, %s3317_s21 }
 0x16e   : > { %1262 = vrot.lane.b32.xlu0 %v3585_v45, %s3323_s28 }
 0x170   : > { %912 = vrot.lane.b32.xlu1 %v3637_v21, %s3318_s22 }
 0x172   : > { %1175 = vrot.lane.b32.xlu0 %v3637_v21, %s3322_s26 }
 0x174   : > { %924 = vrot.lane.b32.xlu1 %v3649_v30, %s3318_s22 }
 0x176   : > { %1187 = vrot.lane.b32.xlu0 %v3649_v30, %s3322_s26 }
 0x178   : > { %1001 = vrot.lane.b32.xlu1 %v3637_v21, %s3319_s23 }
 0x17a   : > { %1268 = vrot.lane.b32.xlu0 %v3637_v21, %s3323_s28 }
 0x17c   : > { %1013 = vrot.lane.b32.xlu1 %v3649_v30, %s3319_s23 }
 0x17e   : > { %1280 = vrot.lane.b32.xlu0 %v3649_v30, %s3323_s28  ;;  %v3729_v28 = vpop.permute.xlu1 %649 }
 0x180   : > { %v3734_v38 = vpop.permute.xlu0 %655  ;;  %1086 = vrot.lane.b32.xlu1 %v3637_v21, %s3321_s25 }
 0x182   : > { %659 = vrot.lane.b32.xlu0 %v3732_v32, %s3315_s17  ;;  %v3740_v46 = vpop.permute.xlu1 %661 }
 0x184   : > { %v3745_v18 = vpop.permute.xlu0 %667  ;;  %1098 = vrot.lane.b32.xlu1 %v3649_v30, %s3321_s25 }
 0x186   : > { %671 = vrot.lane.b32.xlu0 %v3743_v17, %s3315_s17  ;;  %v3754_v15 = vpop.permute.xlu1 %742 }
 0x188   : > { %v3756_v0 = vpop.permute.xlu0 %748  ;;  %653 = vrot.lane.b32.xlu1 %v3750_v23, %s3315_s17 }
 0x18a   : > { %752 = vrot.lane.b32.xlu0 %v3732_v32, %s3316_s20  ;;  %v3765_v42 = vpop.permute.xlu1 %754 }
 0x18c   : > { %v3767_v35 = vpop.permute.xlu0 %760  ;;  %665 = vrot.lane.b32.xlu1 %v3761_v33, %s3315_s17  ;;  %s3337_s17 = smov 120  }
 0x18d   : > { %8175 = vst [vmem:[#allocation45_spill] sm:$0xff] %v3767_v35 }
 0x18e   : > { %764 = vrot.lane.b32.xlu0 %v3743_v17, %s3316_s20  ;;  %v3773_v52 = vpop.permute.xlu1 %815 }
 0x18f   : > { %8176 = vst [vmem:[#allocation46_spill] sm:$0xff] %v3773_v52  ;;  %v3336_v52 = vmov 18  }
 0x190   : > { %v3775_v25 = vpop.permute.xlu0 %821  ;;  %746 = vrot.lane.b32.xlu1 %v3750_v23, %s3316_s20 }
 0x191   : > { %8177 = vst [vmem:[#allocation47_spill] sm:$0xff] %v3775_v25 }
 0x192   : > { %825 = vrot.lane.b32.xlu0 %v3732_v32, %s3317_s21  ;;  %v3781_v16 = vpop.permute.xlu1 %827 }
 0x193   : > { %8178 = vst [vmem:[#allocation48_spill] sm:$0xff] %v3781_v16  ;;  %v4441_v16 = vmul.f32 %v3510_v62, %v3743_v17 }
 0x194   : > { %v3783_v51 = vpop.permute.xlu0 %833  ;;  %758 = vrot.lane.b32.xlu1 %v3761_v33, %s3316_s20  ;;  %s3340_s20 = smov 119  }
 0x195   : > { %8179 = vst [vmem:[#allocation49_spill] sm:$0xff] %v3783_v51  ;;  %8342 = vst [vmem:[#allocation196_spill] sm:$0xff] %v4441_v16 }
 0x196   : > { %837 = vrot.lane.b32.xlu0 %v3743_v17, %s3317_s21  ;;  %v3789_v40 = vpop.permute.xlu1 %904 }
 0x197   : > { %8180 = vst [vmem:[#allocation50_spill] sm:$0xff] %v3789_v40 }
 0x198   : > { %v3791_v10 = vpop.permute.xlu0 %910  ;;  %819 = vrot.lane.b32.xlu1 %v3750_v23, %s3317_s21 }
 0x199   : > { %8181 = vst [vmem:[#allocation51_spill] sm:$0xff] %v3791_v10 }
 0x19a   : > { %914 = vrot.lane.b32.xlu0 %v3732_v32, %s3318_s22  ;;  %v3797_v9 = vpop.permute.xlu1 %916 }
 0x19b   : > { %8182 = vst [vmem:[#allocation52_spill] sm:$0xff] %v3797_v9  ;;  %v8313_v9 = vmov 17  }
 0x19c   : > { %v3799_v60 = vpop.permute.xlu0 %922  ;;  %831 = vrot.lane.b32.xlu1 %v3761_v33, %s3317_s21 }
 0x19d   : > { %8183 = vst [vmem:[#allocation53_spill] sm:$0xff] %v3799_v60 }
 0x19e   : > { %926 = vrot.lane.b32.xlu0 %v3743_v17, %s3318_s22  ;;  %v3805_v41 = vpop.permute.xlu1 %993 }
 0x19f   : > { %8184 = vst [vmem:[#allocation54_spill] sm:$0xff] %v3805_v41 }
 0x1a0   : > { %v3807_v61 = vpop.permute.xlu0 %999  ;;  %908 = vrot.lane.b32.xlu1 %v3750_v23, %s3318_s22 }
 0x1a1   : > { %8185 = vst [vmem:[#allocation55_spill] sm:$0xff] %v3807_v61 }
 0x1a2   : > { %1003 = vrot.lane.b32.xlu0 %v3732_v32, %s3319_s23  ;;  %v3813_v49 = vpop.permute.xlu1 %1005 }
 0x1a3   : > { %8186 = vst [vmem:[#allocation56_spill] sm:$0xff] %v3813_v49 }
 0x1a4   : > { %v3815_v47 = vpop.permute.xlu0 %1011  ;;  %920 = vrot.lane.b32.xlu1 %v3761_v33, %s3318_s22 }
 0x1a5   : > { %8187 = vst [vmem:[#allocation57_spill] sm:$0xff] %v3815_v47 }
 0x1a6   : > { %1015 = vrot.lane.b32.xlu0 %v3743_v17, %s3319_s23  ;;  %v3821_v50 = vpop.permute.xlu1 %1078 }
 0x1a7   : > { %8188 = vst [vmem:[#allocation58_spill] sm:$0xff] %v3821_v50 }
 0x1a8   : > { %v3823_v48 = vpop.permute.xlu0 %1084  ;;  %997 = vrot.lane.b32.xlu1 %v3750_v23, %s3319_s23 }
 0x1a9   : > { %8189 = vst [vmem:[#allocation59_spill] sm:$0xff] %v3823_v48 }
 0x1aa   : > { %1088 = vrot.lane.b32.xlu0 %v3732_v32, %s3321_s25  ;;  %v3829_v2 = vpop.permute.xlu1 %1090 }
 0x1ab   : > { %8190 = vst [vmem:[#allocation60_spill] sm:$0xff] %v3829_v2 }
 0x1ac   : > { %v3831_v37 = vpop.permute.xlu0 %651  ;;  %1009 = vrot.lane.b32.xlu1 %v3761_v33, %s3319_s23 }
 0x1ad   : > { %8191 = vst [vmem:[#allocation61_spill] sm:$0xff] %v3831_v37 }
 0x1ae   : > { %1100 = vrot.lane.b32.xlu0 %v3743_v17, %s3321_s25  ;;  %v3837_v3 = vpop.permute.xlu1 %1167 }
 0x1af   : > { %8192 = vst [vmem:[#allocation62_spill] sm:$0xff] %v3837_v3 }
 0x1b0   : > { %v3839_v54 = vpop.permute.xlu0 %663  ;;  %1082 = vrot.lane.b32.xlu1 %v3750_v23, %s3321_s25 }
 0x1b1   : > { %8193 = vst [vmem:[#allocation63_spill] sm:$0xff] %v3839_v54 }
 0x1b2   : > { %1662 = vperm.xlu0 %3139, %v3413_v6   ;;  %v3844_v39 = vpop.permute.xlu1 %1260 }
 0x1b3   : > { %8194 = vst [vmem:[#allocation64_spill] sm:$0xff] %v3844_v39 }
 0x1b4   : > { %v3846_v27 = vpop.permute.xlu0 %744  ;;  %1094 = vrot.lane.b32.xlu1 %v3761_v33, %s3321_s25 }
 0x1b5   : > { %8195 = vst [vmem:[#allocation65_spill] sm:$0xff] %v3846_v27 }
 0x1b6   : > { %1177 = vrot.lane.b32.xlu0 %v3732_v32, %s3322_s26  ;;  %v3852_v31 = vpop.permute.xlu1 %1096 }
 0x1b7   : > { %8196 = vst [vmem:[#allocation66_spill] sm:$0xff] %v3852_v31 }
 0x1b8   : > { %v3854_v8 = vpop.permute.xlu0 %756  ;;  %1577 = vperm.xlu1 %3138, %v3391_v1  }
 0x1b9   : > { %8197 = vst [vmem:[#allocation67_spill] sm:$0xff] %v3854_v8 }
 0x1ba   : > { %1181 = vrot.lane.b32.xlu0 %v3591_v53, %s3322_s26  ;;  %v3859_v43 = vpop.permute.xlu1 %1173 }
 0x1bb   : > { %8198 = vst [vmem:[#allocation68_spill] sm:$0xff] %v3859_v43 }
 0x1bc   : > { %v3861_v57 = vpop.permute.xlu0 %817  ;;  %3140 = vset.pattern.permute.xlu1 %v8200_v11 }
 0x1bd   : > { %8199 = vst [vmem:[#allocation69_spill] sm:$0xff] %v3861_v57  ;;  %1666 = vperm.xlu1 %3140, %v3391_v1  }
 0x1be   : > { %1264 = vrot.lane.b32.xlu0 %v3750_v23, %s3323_s28  ;;  %v3867_v24 = vpop.permute.xlu1 %1185 }
 0x1bf   : > { %8201 = vst [vmem:[#allocation70_spill] sm:$0xff] %v3867_v24 }
 0x1c0   : > { %v3869_v12 = vpop.permute.xlu0 %829 }
 0x1c1   : > { %8202 = vst [vmem:[#allocation71_spill] sm:$0xff] %v3869_v12  ;;  %1171 = vrot.lane.b32.xlu1 %v3750_v23, %s3322_s26 }
 0x1c2   : > { %1272 = vrot.lane.b32.xlu0 %v3522_v14, %s3323_s28  ;;  %v3875_v5 = vpop.permute.xlu1 %1266  ;;  %3141 = vset.pattern.permute.xlu1 %v8204_v59 }
 0x1c3   : > { %8203 = vst [vmem:[#allocation72_spill] sm:$0xff] %v3875_v5 }
 0x1c4   : > { %v3878_v11 = vpop.permute.xlu0 %906 }
 0x1c5   : > { %8205 = vst [vmem:[#allocation73_spill] sm:$0xff] %v3878_v11  ;;  %1179 = vrot.lane.b32.xlu1 %v3522_v14, %s3322_s26 }
 0x1c6   : > { %1282 = vrot.lane.b32.xlu0 %v3743_v17, %s3323_s28  ;;  %v3884_v8 = vpop.permute.xlu1 %1278 }
 0x1c7   : > { %8206 = vst [vmem:[#allocation74_spill] sm:$0xff] %v3884_v8 }
 0x1c8   : > { %v3886_v12 = vpop.permute.xlu0 %918 }
 0x1c9   : > { %8207 = vst [vmem:[#allocation75_spill] sm:$0xff] %v3886_v12  ;;  %1189 = vrot.lane.b32.xlu1 %v3743_v17, %s3322_s26 }
 0x1ca   : > { %1347 = vrot.lane.b32.xlu0 %v3585_v45, %s3324_s29  ;;  %v3892_v59 = vpop.permute.xlu1 %657 }
 0x1cb   : > { %8208 = vst [vmem:[#allocation76_spill] sm:$0xff] %v3892_v59 }
 0x1cc   : > { %v3894_v11 = vpop.permute.xlu0 %995 }
 0x1cd   : > { %8209 = vst [vmem:[#allocation77_spill] sm:$0xff] %v3894_v11  ;;  %1270 = vrot.lane.b32.xlu1 %v3732_v32, %s3323_s28 }
 0x1ce   : > { %1353 = vrot.lane.b32.xlu0 %v3637_v21, %s3324_s29  ;;  %v3900_v57 = vpop.permute.xlu1 %669 }
 0x1cf   : > { %8210 = vst [vmem:[#allocation78_spill] sm:$0xff] %v3900_v57 }
 0x1d0   : > { %v3902_v12 = vpop.permute.xlu0 %1007 }
 0x1d1   : > { %8211 = vst [vmem:[#allocation79_spill] sm:$0xff] %v3902_v12  ;;  %1274 = vrot.lane.b32.xlu1 %v3591_v53, %s3323_s28 }
 0x1d2   : > { %1365 = vrot.lane.b32.xlu0 %v3649_v30, %s3324_s29  ;;  %v3908_v27 = vpop.permute.xlu1 %750 }
 0x1d3   : > { %8212 = vst [vmem:[#allocation80_spill] sm:$0xff] %v3908_v27 }
 0x1d4   : > { %v3910_v55 = vpop.permute.xlu0 %1080 }
 0x1d5   : > { %8213 = vst [vmem:[#allocation81_spill] sm:$0xff] %v3910_v55  ;;  %1345 = vrot.lane.b32.xlu1 %v3514_v4, %s3324_s29 }
 0x1d6   : > { %1436 = vrot.lane.b32.xlu0 %v3585_v45, %s3325_s30  ;;  %v3916_v11 = vpop.permute.xlu1 %762 }
 0x1d7   : > { %8214 = vst [vmem:[#allocation82_spill] sm:$0xff] %v3916_v11 }
 0x1d8   : > { %v3918_v12 = vpop.permute.xlu0 %1092 }
 0x1d9   : > { %8215 = vst [vmem:[#allocation83_spill] sm:$0xff] %v3918_v12  ;;  %1351 = vrot.lane.b32.xlu1 %v3516_v7, %s3324_s29 }
 0x1da   : > { %1442 = vrot.lane.b32.xlu0 %v3637_v21, %s3325_s30  ;;  %v3924_v27 = vpop.permute.xlu1 %823 }
 0x1db   : > { %8216 = vst [vmem:[#allocation84_spill] sm:$0xff] %v3924_v27 }
 0x1dc   : > { %v3926_v55 = vpop.permute.xlu0 %1169 }
 0x1dd   : > { %8217 = vst [vmem:[#allocation85_spill] sm:$0xff] %v3926_v55  ;;  %1363 = vrot.lane.b32.xlu1 %v3526_v19, %s3324_s29  ;;  %v3326_v55 = vmov 12  }
 0x1de   : > { %1454 = vrot.lane.b32.xlu0 %v3649_v30, %s3325_s30  ;;  %v3932_v57 = vpop.permute.xlu1 %835 }
 0x1df   : > { %8218 = vst [vmem:[#allocation86_spill] sm:$0xff] %v3932_v57 }
 0x1e0   : > { %v3934_v11 = vpop.permute.xlu0 %1262 }
 0x1e1   : > { %8219 = vst [vmem:[#allocation87_spill] sm:$0xff] %v3934_v11  ;;  %1434 = vrot.lane.b32.xlu1 %v3514_v4, %s3325_s30 }
 0x1e2   : > { %1670 = vperm.xlu0 %3139, %v3433_v13   ;;  %v3939_v12 = vpop.permute.xlu1 %912 }
 0x1e3   : > { %8220 = vst [vmem:[#allocation88_spill] sm:$0xff] %v3939_v12 }
 0x1e4   : > { %v3941_v27 = vpop.permute.xlu0 %1175 }
 0x1e5   : > { %8221 = vst [vmem:[#allocation89_spill] sm:$0xff] %v3941_v27  ;;  %1440 = vrot.lane.b32.xlu1 %v3516_v7, %s3325_s30 }
 0x1e6   : > { %3143 = vset.pattern.permute.xlu0 %v3326_v55  ;;  %v3945_v20 = vpop.permute.xlu1 %924 }
 0x1e7   : > { %8222 = vst [vmem:[#allocation90_spill] sm:$0xff] %v3945_v20  ;;  %1751 = vperm.xlu0 %3143, %v3391_v1  }
 0x1e8   : > { %v3948_v57 = vpop.permute.xlu0 %1187 }
 0x1e9   : > { %8223 = vst [vmem:[#allocation91_spill] sm:$0xff] %v3948_v57  ;;  %1452 = vrot.lane.b32.xlu1 %v3526_v19, %s3325_s30 }
 0x1ea   : > { %v3952_v11 = vpop.permute.xlu1 %1001 }
 0x1eb   : > { %8224 = vst [vmem:[#allocation92_spill] sm:$0xff] %v3952_v11  ;;  %1183 = vrot.lane.b32.xlu0 %v3761_v33, %s3322_s26 }
 0x1ec   : > { %v3956_v27 = vpop.permute.xlu0 %1268 }
 0x1ed   : > { %8225 = vst [vmem:[#allocation93_spill] sm:$0xff] %v3956_v27  ;;  %1581 = vperm.xlu1 %3141, %v3433_v13   ;;  %v3327_v27 = vmov 14  }
 0x1ee   : > { %v3959_v12 = vpop.permute.xlu1 %1013 }
 0x1ef   : > { %8226 = vst [vmem:[#allocation94_spill] sm:$0xff] %v3959_v12  ;;  %1349 = vrot.lane.b32.xlu0 %v3750_v23, %s3324_s29 }
 0x1f0   : > { %v3963_v20 = vpop.permute.xlu0 %1280 }
 0x1f1   : > { %8227 = vst [vmem:[#allocation95_spill] sm:$0xff] %v3963_v20  ;;  %3142 = vset.pattern.permute.xlu1 %v3326_v55 }
 0x1f2   : > { %1747 = vperm.xlu1 %3142, %v3413_v6   ;;  %v3966_v57 = vpop.permute.xlu1 %1086 }
 0x1f3   : > { %8228 = vst [vmem:[#allocation96_spill] sm:$0xff] %v3966_v57  ;;  %1357 = vrot.lane.b32.xlu0 %v3522_v14, %s3324_s29 }
 0x1f4   : > { %v3970_v11 = vpop.permute.xlu0 %659 }
 0x1f5   : > { %8229 = vst [vmem:[#allocation97_spill] sm:$0xff] %v3970_v11 }
 0x1f6   : > { %3144 = vset.pattern.permute.xlu1 %v3327_v27  ;;  %v3972_v56 = vpop.permute.xlu1 %1098 }
 0x1f7   : > { %8230 = vst [vmem:[#allocation98_spill] sm:$0xff] %v3972_v56  ;;  %1367 = vrot.lane.b32.xlu0 %v3743_v17, %s3324_s29  ;;  %1832 = vperm.xlu1 %3144, %v3413_v6  }
 0x1f8   : > { %v3977_v20 = vpop.permute.xlu0 %671 }
 0x1f9   : > { %8231 = vst [vmem:[#allocation99_spill] sm:$0xff] %v3977_v20 }
 0x1fa   : > { %v3979_v55 = vpop.permute.xlu1 %653 }
 0x1fb   : > { %8232 = vst [vmem:[#allocation100_spill] sm:$0xff] %v3979_v55  ;;  %1444 = vrot.lane.b32.xlu0 %v3732_v32, %s3325_s30  ;;  %1836 = vperm.xlu1 %3144, %v3391_v1  }
 0x1fc   : > { %v3984_v12 = vpop.permute.xlu0 %752 }
 0x1fd   : > { %8233 = vst [vmem:[#allocation101_spill] sm:$0xff] %v3984_v12 }
 0x1fe   : > { %v3986_v11 = vpop.permute.xlu1 %665 }
 0x1ff   : > { %8234 = vst [vmem:[#allocation102_spill] sm:$0xff] %v3986_v11  ;;  %1448 = vrot.lane.b32.xlu0 %v3591_v53, %s3325_s30  ;;  %1276 = vrot.lane.b32.xlu1 %v3761_v33, %s3323_s28 }
 0x200   : > { %v3992_v27 = vpop.permute.xlu0 %764 }
 0x201   : > { %8235 = vst [vmem:[#allocation103_spill] sm:$0xff] %v3992_v27 }
 0x202   : > { %v3994_v20 = vpop.permute.xlu1 %746 }
 0x203   : > { %8236 = vst [vmem:[#allocation104_spill] sm:$0xff] %v3994_v20  ;;  %1523 = vrot.lane.b32.xlu0 %v3514_v4, %s3328_s6  ;;  %1355 = vrot.lane.b32.xlu1 %v3732_v32, %s3324_s29 }
 0x204   : > { %v4000_v12 = vpop.permute.xlu0 %825 }
 0x205   : > { %8237 = vst [vmem:[#allocation105_spill] sm:$0xff] %v4000_v12 }
 0x206   : > { %v4002_v11 = vpop.permute.xlu1 %758 }
 0x207   : > { %8238 = vst [vmem:[#allocation106_spill] sm:$0xff] %v4002_v11  ;;  %1529 = vrot.lane.b32.xlu0 %v3516_v7, %s3328_s6  ;;  %1359 = vrot.lane.b32.xlu1 %v3591_v53, %s3324_s29 }
 0x208   : > { %v4008_v27 = vpop.permute.xlu0 %837 }
 0x209   : > { %8239 = vst [vmem:[#allocation107_spill] sm:$0xff] %v4008_v27 }
 0x20a   : > { %v4010_v20 = vpop.permute.xlu1 %819 }
 0x20b   : > { %8240 = vst [vmem:[#allocation108_spill] sm:$0xff] %v4010_v20  ;;  %1541 = vrot.lane.b32.xlu0 %v3526_v19, %s3328_s6  ;;  %1438 = vrot.lane.b32.xlu1 %v3750_v23, %s3325_s30  ;;  %v3330_v20 = vmov 16  }
 0x20c   : > { %v4016_v55 = vpop.permute.xlu0 %914 }
 0x20d   : > { %8241 = vst [vmem:[#allocation109_spill] sm:$0xff] %v4016_v55 }
 0x20e   : > { %v4020_v11 = vpop.permute.xlu1 %831 }
 0x20f   : > { %1608 = vrot.lane.b32.xlu0 %v3514_v4, %s3329_s7  ;;  %8242 = vst [vmem:[#allocation110_spill] sm:$0xff] %v4020_v11  ;;  %1446 = vrot.lane.b32.xlu1 %v3522_v14, %s3325_s30 }
 0x210   : > { %v4028_v12 = vpop.permute.xlu0 %926 }
 0x211   : > { %8243 = vst [vmem:[#allocation111_spill] sm:$0xff] %v4028_v12 }
 0x212   : > { %v4030_v27 = vpop.permute.xlu1 %908 }
 0x213   : > { %1614 = vrot.lane.b32.xlu0 %v3516_v7, %s3329_s7  ;;  %1456 = vrot.lane.b32.xlu1 %v3743_v17, %s3325_s30  ;;  %8244 = vst [vmem:[#allocation112_spill] sm:$0xff] %v4030_v27 }
 0x214   : > { %v4036_v55 = vpop.permute.xlu0 %1003 }
 0x215   : > { %8245 = vst [vmem:[#allocation113_spill] sm:$0xff] %v4036_v55  ;;  %v3331_v55 = vmov 15  }
 0x216   : > { %v4038_v11 = vpop.permute.xlu1 %920 }
 0x217   : > { %1626 = vrot.lane.b32.xlu0 %v3526_v19, %s3329_s7  ;;  %1525 = vrot.lane.b32.xlu1 %v3585_v45, %s3328_s6  ;;  %8246 = vst [vmem:[#allocation114_spill] sm:$0xff] %v4038_v11 }
 0x218   : > { %v4046_v12 = vpop.permute.xlu0 %1015 }
 0x219   : > { %8247 = vst [vmem:[#allocation115_spill] sm:$0xff] %v4046_v12 }
 0x21a   : > { %v4048_v27 = vpop.permute.xlu1 %997 }
 0x21b   : > { %1755 = vperm.xlu0 %3143, %v3433_v13   ;;  %1531 = vrot.lane.b32.xlu1 %v3637_v21, %s3328_s6  ;;  %8248 = vst [vmem:[#allocation116_spill] sm:$0xff] %v4048_v27  ;;  %v7734_v27 = vmov 17  }
 0x21c   : > { %v4053_v11 = vpop.permute.xlu0 %1088 }
 0x21d   : > { %8249 = vst [vmem:[#allocation117_spill] sm:$0xff] %v4053_v11 }
 0x21e   : > { %v4055_v56 = vpop.permute.xlu1 %1009 }
 0x21f   : > { %3147 = vset.pattern.permute.xlu0 %v3330_v20  ;;  %1543 = vrot.lane.b32.xlu1 %v3649_v30, %s3328_s6  ;;  %8250 = vst [vmem:[#allocation118_spill] sm:$0xff] %v4055_v56  ;;  %v4079_v56 = vld [vmem:[%s7625_s2 + $0x8] sm:$0xff] }
 0x220   : > { %2010 = vperm.xlu0 %3147, %v3391_v1   ;;  %v4063_v1 = vpop.permute.xlu0 %1100  ;;  %8255 = vst [vmem:[#allocation123_spill] sm:$0xff] %v4079_v56 }
 0x221   : > { %8251 = vst [vmem:[#allocation119_spill] sm:$0xff] %v4063_v1 }
 0x222   : > { %v4065_v12 = vpop.permute.xlu1 %1082 }
 0x223   : > { %1610 = vrot.lane.b32.xlu1 %v3585_v45, %s3329_s7  ;;  %8252 = vst [vmem:[#allocation120_spill] sm:$0xff] %v4065_v12 }
 0x224   : > { %3148 = vset.pattern.permute.xlu0 %v3331_v55 }
 0x225   : > { %1921 = vperm.xlu0 %3148, %v3413_v6  }
 0x226   : > { %v4074_v11 = vpop.permute.xlu1 %1094 }
 0x227   : > { %1616 = vrot.lane.b32.xlu1 %v3637_v21, %s3329_s7  ;;  %8254 = vst [vmem:[#allocation122_spill] sm:$0xff] %v4074_v11 }
 0x229   : > { %1527 = vrot.lane.b32.xlu0 %v3750_v23, %s3328_s6 }
 0x22b   : > { %1628 = vrot.lane.b32.xlu1 %v3649_v30, %s3329_s7 }
 0x22d   : > { %1535 = vrot.lane.b32.xlu0 %v3522_v14, %s3328_s6 }
 0x22f   : > { %1840 = vperm.xlu1 %3144, %v3433_v13  }
 0x231   : > { %v4070_v6 = vpop.permute.xlu0 %1662  ;;  %1545 = vrot.lane.b32.xlu0 %v3743_v17, %s3328_s6 }
 0x232   : > { %8253 = vst [vmem:[#allocation121_spill] sm:$0xff] %v4070_v6 }
 0x233   : > { %3145 = vset.pattern.permute.xlu1 %v3331_v55  ;;  %v4095_v55 = vld [vmem:[%s7625_s2] sm:$0xff] }
 0x234   : > { %1925 = vperm.xlu1 %3145, %v4079_v56   ;;  %8259 = vst [vmem:[#allocation127_spill] sm:$0xff] %v4095_v55 }
 0x235   : > { %v4082_v1 = vpop.permute.xlu0 %1177  ;;  %1618 = vrot.lane.b32.xlu0 %v3732_v32, %s3329_s7 }
 0x236   : > { %8256 = vst [vmem:[#allocation124_spill] sm:$0xff] %v4082_v1 }
 0x237   : > { %v4086_v13 = vpop.permute.xlu1 %1577 }
 0x238   : > { %8257 = vst [vmem:[#allocation125_spill] sm:$0xff] %v4086_v13  ;;  %3146 = vset.pattern.permute.xlu1 %v3330_v20 }
 0x239   : > { %v4088_v6 = vpop.permute.xlu0 %1181  ;;  %1622 = vrot.lane.b32.xlu0 %v3591_v53, %s3329_s7  ;;  %2006 = vperm.xlu1 %3146, %v4095_v55  }
 0x23a   : > { %8258 = vst [vmem:[#allocation126_spill] sm:$0xff] %v4088_v6 }
 0x23c   : > { %v4098_v11 = vpop.permute.xlu1 %1666 }
 0x23d   : > { %8260 = vst [vmem:[#allocation128_spill] sm:$0xff] %v4098_v11  ;;  %v4100_v1 = vpop.permute.xlu0 %1264  ;;  %1697 = vrot.lane.b32.xlu0 %v3514_v4, %s3332_s12  ;;  %1361 = vrot.lane.b32.xlu1 %v3761_v33, %s3324_s29 }
 0x23e   : > { %8261 = vst [vmem:[#allocation129_spill] sm:$0xff] %v4100_v1 }
 0x240   : > { %v4106_v20 = vpop.permute.xlu1 %1171 }
 0x241   : > { %8262 = vst [vmem:[#allocation130_spill] sm:$0xff] %v4106_v20  ;;  %v4108_v13 = vpop.permute.xlu0 %1272  ;;  %1703 = vrot.lane.b32.xlu0 %v3516_v7, %s3332_s12  ;;  %1450 = vrot.lane.b32.xlu1 %v3761_v33, %s3325_s30 }
 0x242   : > { %8263 = vst [vmem:[#allocation131_spill] sm:$0xff] %v4108_v13 }
 0x244   : > { %v4114_v11 = vpop.permute.xlu1 %1179 }
 0x245   : > { %8264 = vst [vmem:[#allocation132_spill] sm:$0xff] %v4114_v11  ;;  %v4116_v1 = vpop.permute.xlu0 %1282  ;;  %1715 = vrot.lane.b32.xlu0 %v3526_v19, %s3332_s12  ;;  %1533 = vrot.lane.b32.xlu1 %v3732_v32, %s3328_s6 }
 0x246   : > { %8265 = vst [vmem:[#allocation133_spill] sm:$0xff] %v4116_v1 }
 0x248   : > { %v4122_v6 = vpop.permute.xlu1 %1189 }
 0x249   : > { %8266 = vst [vmem:[#allocation134_spill] sm:$0xff] %v4122_v6  ;;  %v4124_v12 = vpop.permute.xlu0 %1347  ;;  %1782 = vrot.lane.b32.xlu0 %v3514_v4, %s3333_s13  ;;  %1537 = vrot.lane.b32.xlu1 %v3591_v53, %s3328_s6 }
 0x24a   : > { %8267 = vst [vmem:[#allocation135_spill] sm:$0xff] %v4124_v12 }
 0x24c   : > { %v4130_v11 = vpop.permute.xlu1 %1270 }
 0x24d   : > { %8268 = vst [vmem:[#allocation136_spill] sm:$0xff] %v4130_v11  ;;  %v4132_v1 = vpop.permute.xlu0 %1353  ;;  %1788 = vrot.lane.b32.xlu0 %v3516_v7, %s3333_s13  ;;  %1612 = vrot.lane.b32.xlu1 %v3750_v23, %s3329_s7 }
 0x24e   : > { %8269 = vst [vmem:[#allocation137_spill] sm:$0xff] %v4132_v1  ;;  %v4153_v1 = vld [vmem:[%s7625_s2 + $0x10] sm:$0xff] }
 0x24f   : > { %8274 = vst [vmem:[#allocation142_spill] sm:$0xff] %v4153_v1 }
 0x250   : > { %v4138_v13 = vpop.permute.xlu1 %1274 }
 0x251   : > { %8270 = vst [vmem:[#allocation138_spill] sm:$0xff] %v4138_v13  ;;  %v4140_v12 = vpop.permute.xlu0 %1365  ;;  %1794 = vrot.lane.b32.xlu0 %v3522_v14, %s3333_s13  ;;  %1620 = vrot.lane.b32.xlu1 %v3522_v14, %s3329_s7 }
 0x252   : > { %8271 = vst [vmem:[#allocation139_spill] sm:$0xff] %v4140_v12  ;;  %v7737_v12 = vlaneseq }
 0x254   : > { %v4146_v6 = vpop.permute.xlu1 %1345 }
 0x255   : > { %8272 = vst [vmem:[#allocation140_spill] sm:$0xff] %v4146_v6  ;;  %v4148_v11 = vpop.permute.xlu0 %1436  ;;  %1929 = vperm.xlu0 %3148, %v4153_v1   ;;  %1630 = vrot.lane.b32.xlu1 %v3743_v17, %s3329_s7 }
 0x256   : > { %8273 = vst [vmem:[#allocation141_spill] sm:$0xff] %v4148_v11  ;;  %v4167_v11 = vand.u32 127, %v7737_v12 }
 0x258   : > { %v4158_v13 = vpop.permute.xlu1 %1351  ;;  %v539_v12 = vshra.s32 %v4167_v11, 6  ;;  %v4193_v59 = vadd.s32 256, %v4167_v11  ;;  %vm673_vm1 = vcmp.lt.s32.totalorder %v4167_v11, 73  ;;  %v8320_v51 = vand.u32 7, %v4167_v11 }
 0x259   : > { %8275 = vst [vmem:[#allocation143_spill] sm:$0xff] %v4158_v13  ;;  %v4160_v20 = vpop.permute.xlu0 %1442  ;;  %3150 = vset.pattern.permute.xlu0 %v7734_v27  ;;  %1699 = vrot.lane.b32.xlu1 %v3585_v45, %s3332_s12  ;;  %v4178_v27 = vadd.s32 128, %v4167_v11 }
 0x25a   : > { %8276 = vst [vmem:[#allocation144_spill] sm:$0xff] %v4160_v20  ;;  %2099 = vperm.xlu0 %3150, %v4079_v56   ;;  %v4201_v54 = vand.u32 7, %v539_v12  ;;  %v533_v5 = vshra.s32 %v4193_v59, 3 }
 0x25b   : > { %v540_v37 = vshra.s32 %v4178_v27, 6 }
 0x25c   : > { %v4169_v6 = vpop.permute.xlu1 %1363  ;;  %vm559_vm2 = vcmp.lt.s32.totalorder %v4201_v54, 7  ;;  %vm547_vm12 = vcmp.ge.s32.totalorder %v4201_v54, 1 }
 0x25d   : > { %8277 = vst [vmem:[#allocation145_spill] sm:$0xff] %v4169_v6  ;;  %v4171_v57 = vpop.permute.xlu0 %1454  ;;  %1705 = vrot.lane.b32.xlu1 %v3637_v21, %s3332_s12  ;;  %v532_v6 = vshra.s32 %v4178_v27, 3  ;;  %v544_v39 = vand.u32 7, %v540_v37  ;;  %v4227_v37 = vand.u32 7, %v533_v5 }
 0x25e   : > { %8278 = vst [vmem:[#allocation146_spill] sm:$0xff] %v4171_v57  ;;  %1539 = vrot.lane.b32.xlu0 %v3761_v33, %s3328_s6  ;;  %v531_v57 = vshra.s32 %v4167_v11, 3 }
 0x25f   : > { %v4207_v36 = vand.u32 7, %v532_v6  ;;  %vm548_vm3 = vcmp.ge.s32.totalorder %v544_v39, 1  ;;  %8285 = vst [vmem:[#allocation153_spill] sm:$0xff] %v4227_v37  ;;  %vm560_vm6 = vcmp.lt.s32.totalorder %v544_v39, 7  ;;  %vm573_vm10 = vcmp.ge.s32.totalorder %v4227_v37, 1 }
 0x260   : > { %v4180_v20 = vpop.permute.xlu1 %1434  ;;  %v4205_v8 = vand.u32 7, %v531_v57 }
 0x261   : > { %8279 = vst [vmem:[#allocation147_spill] sm:$0xff] %v4180_v20  ;;  %v4182_v13 = vpop.permute.xlu0 %1670  ;;  %1717 = vrot.lane.b32.xlu1 %v3649_v30, %s3332_s12  ;;  %vm572_vm5 = vcmp.ge.s32.totalorder %v4207_v36, 1 }
 0x262   : > { %8280 = vst [vmem:[#allocation148_spill] sm:$0xff] %v4182_v13  ;;  %1701 = vrot.lane.b32.xlu0 %v3750_v23, %s3332_s12  ;;  %vm571_vm4 = vcmp.ge.s32.totalorder %v4205_v8, 1 }
 0x264   : > { %v4195_v20 = vpop.permute.xlu1 %1440 }
 0x265   : > { %8281 = vst [vmem:[#allocation149_spill] sm:$0xff] %v4195_v20  ;;  %1784 = vrot.lane.b32.xlu1 %v3585_v45, %s3333_s13  ;;  %v541_v20 = vshra.s32 %v4193_v59, 6 }
 0x266   : > { %v4197_v13 = vpop.permute.xlu0 %1751  ;;  %1709 = vrot.lane.b32.xlu0 %v3522_v14, %s3332_s12 }
 0x267   : > { %8282 = vst [vmem:[#allocation150_spill] sm:$0xff] %v4197_v13  ;;  %v4214_v13 = vadd.s32 384, %v4167_v11 }
 0x268   : > { %v4210_v24 = vpop.permute.xlu1 %1452 }
 0x269   : > { %8283 = vst [vmem:[#allocation151_spill] sm:$0xff] %v4210_v24  ;;  %1790 = vrot.lane.b32.xlu1 %v3637_v21, %s3333_s13  ;;  %v534_v57 = vshra.s32 %v4214_v13, 3  ;;  %v542_v12 = vshra.s32 %v4214_v13, 6  ;;  %v8287_v24 = vmov 0.0  }
 0x26a   : > { %v4216_v3 = vpop.permute.xlu0 %1183  ;;  %1719 = vrot.lane.b32.xlu0 %v3743_v17, %s3332_s12  ;;  %v4234_v43 = vsel %vm559_vm2, 1.0, %v8287_v24  ;;  %v4241_v2 = vsel %vm548_vm3, 1.0, %v8287_v24  ;;  %v4244_v5 = vsel %vm571_vm4, 1.0, %v8287_v24  ;;  %v4247_v39 = vsel %vm572_vm5, 1.0, %v8287_v24 }
 0x26b   : > { %8284 = vst [vmem:[#allocation152_spill] sm:$0xff] %v4216_v3  ;;  %v545_v3 = vand.u32 7, %v541_v20  ;;  %8288 = vst [vmem:[#allocation155_spill] sm:$0xff] %v4234_v43  ;;  %v529_v20 = vand.u32 7, %v4193_v59  ;;  %v4257_v50 = vsel %vm560_vm6, 1.0, %v8287_v24  ;;  %v4260_v48 = vand.u32 7, %v534_v57 }
 0x26c   : > { %v4229_v6 = vpop.permute.xlu1 %1581  ;;  %8290 = vst [vmem:[#allocation157_spill] sm:$0xff] %v4241_v2  ;;  %8291 = vst [vmem:[#allocation158_spill] sm:$0xff] %v4244_v5  ;;  %v546_v44 = vand.u32 7, %v542_v12  ;;  %v4266_v59 = vmul.f32 %v4247_v39, %v4241_v2  ;;  %v4296_v49 = vmul.f32 %v4247_v39, %v4257_v50  ;;  %vm4364_vm3 = vcmp.lt.s32.totalorder %v8320_v51, 7 }
 0x26d   : > { %8286 = vst [vmem:[#allocation154_spill] sm:$0xff] %v4229_v6  ;;  %8292 = vst [vmem:[#allocation159_spill] sm:$0xff] %v4247_v39  ;;  %1796 = vrot.lane.b32.xlu1 %v3591_v53, %s3333_s13  ;;  %v8293_v6 = vand.u32 7, %v4167_v11  ;;  %vm549_vm9 = vcmp.ge.s32.totalorder %v545_v3, 1  ;;  %vm4282_vm11 = vcmp.ge.s32.totalorder %v529_v20, 1  ;;  %vm561_vm14 = vcmp.lt.s32.totalorder %v545_v3, 7 }
 0x26e   : > { %v4236_v31 = vpop.permute.xlu0 %1349  ;;  %1792 = vrot.lane.b32.xlu0 %v3732_v32, %s3333_s13  ;;  %8295 = vst [vmem:[#allocation160_spill] sm:$0xff] %v4257_v50  ;;  %8297 = vst [vmem:[#allocation162_spill] sm:$0xff] %v4266_v59  ;;  %v4289_v34 = vsel %vm549_vm9, 1.0, %v8287_v24  ;;  %vm550_vm13 = vcmp.ge.s32.totalorder %v546_v44, 1  ;;  %vm562_vm15 = vcmp.lt.s32.totalorder %v546_v44, 7  ;;  %vm574_vm0 = vcmp.ge.s32.totalorder %v4260_v48, 1 }
 0x26f   : > { %8289 = vst [vmem:[#allocation156_spill] sm:$0xff] %v4236_v31  ;;  %vm595_vm7 = vcmp.ge.s32.totalorder %v8293_v6, 1  ;;  %v8294_v31 = vand.u32 7, %v4178_v27  ;;  %v4270_v6 = vmul.f32 %v4244_v5, %v4234_v43  ;;  %8305 = vst [vmem:[#allocation168_spill] sm:$0xff] %v4296_v49  ;;  %v4316_v39 = vmul.f32 %v3508_v58, %v3514_v4 }
 0x270   : > { %v4277_v37 = vsel %vm595_vm7, 1.0, %v8287_v24  ;;  %v4321_v29 = vsel %vm4282_vm11, 1.0, %v8287_v24  ;;  %v4338_v12 = vsel %vm561_vm14, 1.0, %v8287_v24  ;;  %v4342_v40 = vsel %vm562_vm15, 1.0, %v8287_v24 }
 0x271   : > { %vm596_vm8 = vcmp.ge.s32.totalorder %v8294_v31, 1  ;;  %v4262_v47 = vpop.permute.xlu1 %1747  ;;  %8298 = vst [vmem:[#allocation163_spill] sm:$0xff] %v4270_v6  ;;  %8300 = vst [vmem:[#allocation165_spill] sm:$0xff] %v4277_v37  ;;  %2014 = vperm.xlu1 %3146, %v4153_v1   ;;  %v4306_v41 = vmul.f32 %v4277_v37, %v4270_v6  ;;  %v4347_v10 = vsel %vm574_vm0, 1.0, %v8287_v24  ;;  %vm4374_vm5 = vcmp.lt.s32.totalorder %v529_v20, 7 }
 0x272   : > { %8296 = vst [vmem:[#allocation161_spill] sm:$0xff] %v4262_v47  ;;  %v4272_v31 = vpop.permute.xlu0 %1357  ;;  %1800 = vrot.lane.b32.xlu0 %v3526_v19, %s3333_s13  ;;  %v4280_v57 = vsel %vm596_vm8, 1.0, %v8287_v24  ;;  %v530_v47 = vand.u32 7, %v4214_v13  ;;  %8310 = vst [vmem:[#allocation173_spill] sm:$0xff] %v4316_v39  ;;  %v8323_v39 = vand.u32 7, %v4178_v27  ;;  %v4398_v20 = vmul.f32 %v3508_v58, %v3516_v7 }
 0x273   : > { %8299 = vst [vmem:[#allocation164_spill] sm:$0xff] %v4272_v31  ;;  %8301 = vst [vmem:[#allocation166_spill] sm:$0xff] %v4280_v57  ;;  %v4292_v31 = vsel %vm573_vm10, 1.0, %v8287_v24  ;;  %v4302_v13 = vmul.f32 %v4280_v57, %v4266_v59  ;;  %v4356_v3 = vmul.f32 %v4280_v57, %v4296_v49  ;;  %vm766_vm7 = vcmp.lt.s32.totalorder %v4167_v11, 72 }
 0x274   : > { %8304 = vst [vmem:[#allocation167_spill] sm:$0xff] %v4292_v31  ;;  %8307 = vst [vmem:[#allocation170_spill] sm:$0xff] %v4306_v41  ;;  %v4325_v60 = vmul.f32 %v4292_v31, %v4289_v34  ;;  %vm598_vm2 = vcmp.ge.s32.totalorder %v530_v47, 1  ;;  %vm4370_vm4 = vcmp.lt.s32.totalorder %v8323_v39, 7  ;;  %v4390_v27 = vmul.f32 %v4292_v31, %v4338_v12 }
 0x275   : > { %8306 = vst [vmem:[#allocation169_spill] sm:$0xff] %v4302_v13  ;;  %8311 = vst [vmem:[#allocation174_spill] sm:$0xff] %v4321_v29  ;;  %3149 = vset.pattern.permute.xlu1 %v8313_v9  ;;  %v4352_v9 = vmul.f32 %v3508_v58, %v3522_v14  ;;  %v4394_v39 = vmul.f32 %v4347_v10, %v4342_v40  ;;  %vm610_vm6 = vcmp.lt.s32.totalorder %v530_v47, 7  ;;  %v4409_v31 = vsel %vm598_vm2, 1.0, %v8287_v24 }
 0x276   : > { %v4308_v61 = vpop.permute.xlu0 %1367  ;;  %1867 = vrot.lane.b32.xlu0 %v3514_v4, %s3335_s16  ;;  %v4312_v54 = vpop.permute.xlu1 %1832  ;;  %8312 = vst [vmem:[#allocation175_spill] sm:$0xff] %v4325_v60  ;;  %8314 = vst [vmem:[#allocation176_spill] sm:$0xff] %v4338_v12  ;;  %2095 = vperm.xlu1 %3149, %v4095_v55   ;;  %v4413_v47 = vmul.f32 %v3510_v62, %v3750_v23  ;;  %vm583_vm8 = vcmp.lt.s32.totalorder %v4205_v8, 7  ;;  %vm584_vm9 = vcmp.lt.s32.totalorder %v4207_v36, 7  ;;  %vm586_vm10 = vcmp.lt.s32.totalorder %v4260_v48, 7 }
 0x277   : > { %8308 = vst [vmem:[#allocation171_spill] sm:$0xff] %v4308_v61  ;;  %8309 = vst [vmem:[#allocation172_spill] sm:$0xff] %v4312_v54  ;;  %v4328_v61 = vsel %vm547_vm12, 1.0, %v8287_v24  ;;  %v4334_v54 = vsel %vm550_vm13, 1.0, %v8287_v24  ;;  %vm839_vm11 = vcmp.lt.s32.totalorder %v4167_v11, 71  ;;  %v677_v48 = vsel %vm673_vm1, %v3734_v38, %v3740_v46 }
 0x278   : > { %8315 = vst [vmem:[#allocation177_spill] sm:$0xff] %v4342_v40  ;;  %8316 = vst [vmem:[#allocation178_spill] sm:$0xff] %v4347_v10  ;;  %v4360_v44 = vmul.f32 %v4244_v5, %v4328_v61  ;;  %v4386_v51 = vmul.f32 %v4347_v10, %v4334_v54  ;;  %v4418_v10 = vsel %vm4364_vm3, 1.0, %v8287_v24  ;;  %v674_v8 = vsel %vm673_vm1, %v3740_v46, %v3745_v18 }
 0x279   : > { %8317 = vst [vmem:[#allocation179_spill] sm:$0xff] %v4352_v9  ;;  %8318 = vst [vmem:[#allocation180_spill] sm:$0xff] %v4356_v3  ;;  %v4475_v16 = vmul.f32 %v4418_v10, %v4270_v6  ;;  %v683_v36 = vsel %vm673_vm1, %v3745_v18, %v3729_v28  ;;  %v4592_v46 = vmul.f32 %v3492_v26, %v3591_v53  ;;  %vm928_vm12 = vcmp.lt.s32.totalorder %v4167_v11, 65 }
 0x27a   : > { %8319 = vst [vmem:[#allocation181_spill] sm:$0xff] %v4360_v44  ;;  %v4378_v9 = vpop.permute.xlu0 %1444  ;;  %1873 = vrot.lane.b32.xlu0 %v3516_v7, %s3335_s16  ;;  %v4382_v5 = vpop.permute.xlu1 %1836  ;;  %8330 = vst [vmem:[#allocation184_spill] sm:$0xff] %v4386_v51  ;;  %3151 = vset.pattern.permute.xlu1 %v3336_v52  ;;  %v4433_v52 = vmul.f32 %v3510_v62, %v3732_v32  ;;  %v4458_v22 = vmul.f32 %v4409_v31, %v4386_v51  ;;  %vm1017_vm13 = vcmp.lt.s32.totalorder %v4167_v11, 64 }
 0x27b   : > { %8328 = vst [vmem:[#allocation182_spill] sm:$0xff] %v4378_v9  ;;  %8329 = vst [vmem:[#allocation183_spill] sm:$0xff] %v4382_v5  ;;  %v4402_v5 = vmul.f32 %v3508_v58, %v3526_v19  ;;  %v4406_v9 = vmul.f32 %v4321_v29, %v4325_v60  ;;  %v4423_v58 = vsel %vm4370_vm4, 1.0, %v8287_v24  ;;  %v4428_v19 = vsel %vm4374_vm5, 1.0, %v8287_v24  ;;  %2151 = vperm.xlu1 %3151, %v4095_v55  }
 0x27c   : > { %8331 = vst [vmem:[#allocation185_spill] sm:$0xff] %v4390_v27  ;;  %8332 = vst [vmem:[#allocation186_spill] sm:$0xff] %v4394_v39  ;;  %v4462_v62 = vmul.f32 %v4321_v29, %v4390_v27  ;;  %v4479_v17 = vmul.f32 %v4428_v19, %v4325_v60  ;;  %v4483_v23 = vmul.f32 %v4423_v58, %v4296_v49  ;;  %vm1102_vm14 = vcmp.lt.s32.totalorder %v4167_v11, 63 }
 0x27d   : > { %8333 = vst [vmem:[#allocation187_spill] sm:$0xff] %v4402_v5  ;;  %8334 = vst [vmem:[#allocation188_spill] sm:$0xff] %v4406_v9  ;;  %v4487_v5 = vmul.f32 %v4418_v10, %v4360_v44  ;;  %v4596_v18 = vmul.f32 %v3492_v26, %v3585_v45  ;;  %vm1191_vm15 = vcmp.lt.s32.totalorder %v4167_v11, 57  ;;  %vm1284_vm0 = vcmp.lt.s32.totalorder %v4167_v11, 56 }
 0x27e   : > { %8335 = vst [vmem:[#allocation189_spill] sm:$0xff] %v4409_v31  ;;  %8336 = vst [vmem:[#allocation190_spill] sm:$0xff] %v4413_v47  ;;  %v4444_v47 = vsel %vm610_vm6, 1.0, %v8287_v24  ;;  %v4446_v35 = vpop.permute.xlu0 %1448  ;;  %1879 = vrot.lane.b32.xlu0 %v3522_v14, %s3335_s16  ;;  %v4450_v55 = vpop.permute.xlu1 %1276  ;;  %vm1721_vm3 = vcmp.lt.s32.totalorder %v4167_v11, 1  ;;  %vm1806_vm4 = vcmp.lt.s32.totalorder %v4167_v11, 127  ;;  %vm1369_vm5 = vcmp.lt.s32.totalorder %v4167_v11, 55 }
 0x27f   : > { %8337 = vst [vmem:[#allocation191_spill] sm:$0xff] %v4418_v10  ;;  %8338 = vst [vmem:[#allocation192_spill] sm:$0xff] %v4423_v58  ;;  %v4491_v25 = vmul.f32 %v4444_v47, %v4386_v51  ;;  %2155 = vperm.xlu1 %3151, %v4079_v56   ;;  %vm1458_vm6 = vcmp.lt.s32.totalorder %v4167_v11, 9 }
 0x280   : > { %8339 = vst [vmem:[#allocation193_spill] sm:$0xff] %v4428_v19  ;;  %8340 = vst [vmem:[#allocation194_spill] sm:$0xff] %v4433_v52  ;;  %v4454_v52 = vmul.f32 %v4277_v37, %v4360_v44 }
 0x281   : > { %8343 = vst [vmem:[#allocation197_spill] sm:$0xff] %v4444_v47  ;;  %8344 = vst [vmem:[#allocation198_spill] sm:$0xff] %v4446_v35  ;;  %v4466_v35 = vmul.f32 %v4409_v31, %v4394_v39 }
 0x282   : > { %8345 = vst [vmem:[#allocation199_spill] sm:$0xff] %v4450_v55  ;;  %8346 = vst [vmem:[#allocation200_spill] sm:$0xff] %v4454_v52  ;;  %v4471_v55 = vmul.f32 %v4423_v58, %v4266_v59  ;;  %1956 = vrot.lane.b32.xlu0 %v3514_v4, %s3337_s17  ;;  %v4542_v4 = vmul.f32 %v4321_v29, %v4338_v12 }
 0x283   : > { %8347 = vst [vmem:[#allocation201_spill] sm:$0xff] %v4458_v22  ;;  %8348 = vst [vmem:[#allocation202_spill] sm:$0xff] %v4462_v62  ;;  %1624 = vrot.lane.b32.xlu1 %v3761_v33, %s3329_s7 }
 0x284   : > { %8349 = vst [vmem:[#allocation203_spill] sm:$0xff] %v4466_v35  ;;  %8350 = vst [vmem:[#allocation204_spill] sm:$0xff] %v4471_v55  ;;  %v4495_v55 = vmul.f32 %v4428_v19, %v4390_v27 }
 0x285   : > { %8351 = vst [vmem:[#allocation205_spill] sm:$0xff] %v4475_v16  ;;  %8352 = vst [vmem:[#allocation206_spill] sm:$0xff] %v4479_v17  ;;  %v4499_v16 = vmul.f32 %v4444_v47, %v4394_v39  ;;  %v680_v39 = vsel %vm673_vm1, %v3729_v28, %v3734_v38  ;;  %v4578_v38 = vsel %vm586_vm10, 1.0, %v8287_v24  ;;  %v4600_v28 = vmul.f32 %v3492_v26, %v3649_v30 }
 0x286   : > { %8353 = vst [vmem:[#allocation207_spill] sm:$0xff] %v4483_v23  ;;  %8354 = vst [vmem:[#allocation208_spill] sm:$0xff] %v4487_v5  ;;  %v4504_v23 = vmul.f32 %v4280_v57, %v4241_v2  ;;  %v4508_v5 = vmul.f32 %v4277_v37, %v4234_v43  ;;  %1962 = vrot.lane.b32.xlu0 %v3516_v7, %s3337_s17  ;;  %vm2065_vm10 = vcmp.lt.s32.totalorder %v4167_v11, 119 }
 0x287   : > { %8355 = vst [vmem:[#allocation209_spill] sm:$0xff] %v4491_v25  ;;  %8356 = vst [vmem:[#allocation210_spill] sm:$0xff] %v4495_v55  ;;  %v4514_v55 = vpop.permute.xlu0 %1523  ;;  %1707 = vrot.lane.b32.xlu1 %v3732_v32, %s3332_s12 }
 0x288   : > { %8357 = vst [vmem:[#allocation211_spill] sm:$0xff] %v4499_v16  ;;  %8358 = vst [vmem:[#allocation212_spill] sm:$0xff] %v4504_v23  ;;  %v4516_v16 = vpop.permute.xlu1 %1355  ;;  %v4528_v23 = vmul.f32 %v4280_v57, %v4257_v50 }
 0x289   : > { %8359 = vst [vmem:[#allocation213_spill] sm:$0xff] %v4508_v5  ;;  %8360 = vst [vmem:[#allocation214_spill] sm:$0xff] %v4514_v55  ;;  %v4524_v5 = vmul.f32 %v4321_v29, %v4289_v34  ;;  %v4538_v55 = vmul.f32 %v4409_v31, %v4334_v54  ;;  %v4564_v29 = vmul.f32 %v3492_v26, %v3637_v21 }
 0x28a   : > { %8361 = vst [vmem:[#allocation215_spill] sm:$0xff] %v4516_v16  ;;  %8363 = vst [vmem:[#allocation217_spill] sm:$0xff] %v4528_v23  ;;  %v4534_v16 = vmul.f32 %v4277_v37, %v4328_v61  ;;  %v4555_v23 = vsel %vm583_vm8, 1.0, %v8287_v24  ;;  %v697_v26 = vmul.f32 %v4458_v22, %v674_v8  ;;  %v4635_v22 = vmul.f32 %v4423_v58, %v4257_v50 }
 0x28b   : > { %8362 = vst [vmem:[#allocation216_spill] sm:$0xff] %v4524_v5  ;;  %8365 = vst [vmem:[#allocation219_spill] sm:$0xff] %v4538_v55  ;;  %v4546_v5 = vmul.f32 %v4409_v31, %v4342_v40  ;;  %v4560_v55 = vsel %vm584_vm9, 1.0, %v8287_v24  ;;  %v4610_v7 = vmul.f32 %v4555_v23, %v4234_v43  ;;  %1968 = vrot.lane.b32.xlu0 %v3522_v14, %s3337_s17  ;;  %1711 = vrot.lane.b32.xlu1 %v3591_v53, %s3332_s12 }
 0x28c   : > { %8364 = vst [vmem:[#allocation218_spill] sm:$0xff] %v4534_v16  ;;  %8366 = vst [vmem:[#allocation220_spill] sm:$0xff] %v4542_v4  ;;  %v4584_v21 = vpop.permute.xlu1 %1359  ;;  %vm1891_vm8 = vcmp.lt.s32.totalorder %v4167_v11, 121  ;;  %vm1980_vm9 = vcmp.lt.s32.totalorder %v4167_v11, 120 }
 0x28d   : > { %8367 = vst [vmem:[#allocation221_spill] sm:$0xff] %v4546_v5  ;;  %8368 = vst [vmem:[#allocation222_spill] sm:$0xff] %v4555_v23  ;;  %v695_v5 = vmul.f32 %v4302_v13, %v680_v39  ;;  %v4588_v13 = vmul.f32 %v4423_v58, %v4241_v2  ;;  %v4654_v58 = vmul.f32 %v4444_v47, %v4334_v54 }
 0x28e   : > { %8369 = vst [vmem:[#allocation223_spill] sm:$0xff] %v4560_v55  ;;  %8370 = vst [vmem:[#allocation224_spill] sm:$0xff] %v4564_v29  ;;  %v4582_v29 = vpop.permute.xlu0 %1529  ;;  %v4671_v24 = vmul.f32 %v4277_v37, %v4610_v7 }
 0x28f   : > { %8371 = vst [vmem:[#allocation225_spill] sm:$0xff] %v4578_v38  ;;  %8372 = vst [vmem:[#allocation226_spill] sm:$0xff] %v4582_v29  ;;  %v696_v29 = vmul.f32 %v4406_v9, %v677_v48  ;;  %v719_v9 = vmul.f32 %v3512_v63, %v695_v5  ;;  %v773_v5 = vsel %vm766_vm7, %v3754_v15, %v3756_v0  ;;  %2103 = vperm.xlu0 %3150, %v4153_v1  }
 0x290   : > { %8373 = vst [vmem:[#allocation227_spill] sm:$0xff] %v4584_v21  ;;  %8374 = vst [vmem:[#allocation228_spill] sm:$0xff] %v4588_v13  ;;  %v4606_v21 = vmul.f32 %v4560_v55, %v4241_v2  ;;  %v4624_v55 = vmul.f32 %v4578_v38, %v4342_v40  ;;  %v4645_v32 = vpop.permute.xlu1 %1438 }
 0x291   : > { %8375 = vst [vmem:[#allocation229_spill] sm:$0xff] %v4592_v46  ;;  %8376 = vst [vmem:[#allocation230_spill] sm:$0xff] %v4596_v18  ;;  %v4614_v46 = vmul.f32 %v4555_v23, %v4328_v61  ;;  %v694_v18 = vmul.f32 %v4454_v52, %v683_v36  ;;  %v4631_v23 = vmul.f32 %v4428_v19, %v4289_v34 }
 0x292   : > { %8377 = vst [vmem:[#allocation231_spill] sm:$0xff] %v4600_v28  ;;  %8378 = vst [vmem:[#allocation232_spill] sm:$0xff] %v4606_v21  ;;  %v4620_v28 = vmul.f32 %v4418_v10, %v4234_v43  ;;  %v4639_v52 = vmul.f32 %v4418_v10, %v4328_v61  ;;  %v4643_v38 = vpop.permute.xlu0 %1541  ;;  %v4658_v10 = vmul.f32 %v4428_v19, %v4338_v12 }
 0x293   : > { %8379 = vst [vmem:[#allocation233_spill] sm:$0xff] %v4610_v7  ;;  %8380 = vst [vmem:[#allocation234_spill] sm:$0xff] %v4614_v46  ;;  %v4667_v14 = vmul.f32 %v4280_v57, %v4606_v21  ;;  %v718_v19 = vmul.f32 %v3512_v63, %v694_v18  ;;  %v4690_v7 = vadd.f32 %v719_v9, %v4398_v20  ;;  %v8397_v20 = vld [vmem:[#allocation47_spill] sm:$0xff] }
 0x294   : > { %8381 = vst [vmem:[#allocation235_spill] sm:$0xff] %v4620_v28  ;;  %8382 = vst [vmem:[#allocation236_spill] sm:$0xff] %v4624_v55  ;;  %v780_v18 = vmul.f32 %v773_v5, %v4266_v59  ;;  %v4708_v9 = vmul.f32 %v4466_v35, %v683_v36  ;;  %v8402_v36 = vld [vmem:[#allocation173_spill] sm:$0xff] }
 0x295   : > { %8383 = vst [vmem:[#allocation237_spill] sm:$0xff] %v4635_v22  ;;  %8384 = vst [vmem:[#allocation238_spill] sm:$0xff] %v4643_v38  ;;  %v4662_v38 = vmul.f32 %v4444_v47, %v4342_v40  ;;  %v4675_v22 = vmul.f32 %v4277_v37, %v4614_v46  ;;  %v4685_v47 = vmul.f32 %v4409_v31, %v4624_v55  ;;  %v8400_v37 = vld [vmem:[#allocation45_spill] sm:$0xff] }
 0x296   : > { %8385 = vst [vmem:[#allocation239_spill] sm:$0xff] %v4645_v32  ;;  %8386 = vst [vmem:[#allocation240_spill] sm:$0xff] %v4658_v10  ;;  %v720_v32 = vmul.f32 %v3512_v63, %v696_v29  ;;  %v721_v10 = vmul.f32 %v3512_v63, %v697_v26  ;;  %v770_v29 = vsel %vm766_vm7, %v3756_v0, %v3765_v42  ;;  %v4700_v0 = vpop.permute.xlu0 %1608  ;;  %v4702_v26 = vpop.permute.xlu1 %1446  ;;  %v8406_v35 = vld [vmem:[#allocation9_spill] sm:$0xff] }
 0x297   : > { %8387 = vst [vmem:[#allocation241_spill] sm:$0xff] %v4662_v38  ;;  %8388 = vst [vmem:[#allocation242_spill] sm:$0xff] %v4667_v14  ;;  %v4696_v63 = vmul.f32 %v4356_v3, %v677_v48  ;;  %v4705_v55 = vmul.f32 %v4462_v62, %v674_v8  ;;  %v4740_v1 = vmul.f32 %v8406_v35, %v780_v18  ;;  %v8413_v62 = vld [vmem:[#allocation50_spill] sm:$0xff]  ;;  %v8427_v31 = vld [vmem:[#allocation205_spill] sm:$0xff] }
 0x298   : > { %8389 = vst [vmem:[#allocation243_spill] sm:$0xff] %v4671_v24  ;;  %8390 = vst [vmem:[#allocation244_spill] sm:$0xff] %v4685_v47  ;;  %v4693_v24 = vmul.f32 %v4306_v41, %v680_v39  ;;  %v8398_v39 = vld [vmem:[#allocation46_spill] sm:$0xff]  ;;  %v8399_v47 = vld [vmem:[#allocation179_spill] sm:$0xff]  ;;  %v4757_v18 = vmul.f32 %v4296_v49, %v770_v29 }
 0x299   : > { %8392 = vst [vmem:[#allocation246_spill] sm:$0xff] %v4696_v63  ;;  %8393 = vst [vmem:[#allocation247_spill] sm:$0xff] %v4700_v0  ;;  %v846_v48 = vsel %vm839_vm11, %v8398_v39, %v8397_v20  ;;  %v732_v63 = vadd.f32 %v720_v32, %v8399_v47  ;;  %v8401_v0 = vld [vmem:[#allocation48_spill] sm:$0xff]  ;;  %v4731_v32 = vmul.f32 %v4270_v6, %v773_v5  ;;  %v7881_v5 = vmov 20  }
 0x29a   : > { %8391 = vst [vmem:[#allocation245_spill] sm:$0xff] %v4693_v24  ;;  %8394 = vst [vmem:[#allocation248_spill] sm:$0xff] %v4702_v26  ;;  %v781_v24 = vmul.f32 %v770_v29, %v4325_v60  ;;  %v776_v26 = vsel %vm766_vm7, %v8400_v37, %v3754_v15  ;;  %v843_v8 = vsel %vm839_vm11, %v8397_v20, %v8401_v0  ;;  %v8405_v15 = vld [vmem:[#allocation44_spill] sm:$0xff]  ;;  %3154 = vset.pattern.permute.xlu0 %v7881_v5 }
 0x29b   : > { %8395 = vst [vmem:[#allocation249_spill] sm:$0xff] %v4705_v55  ;;  %8396 = vst [vmem:[#allocation250_spill] sm:$0xff] %v4708_v9  ;;  %v4725_v9 = vadd.f32 %v718_v19, %v8402_v36  ;;  %v8403_v55 = vld [vmem:[#allocation187_spill] sm:$0xff]  ;;  %v767_v47 = vsel %vm766_vm7, %v3765_v42, %v8400_v37  ;;  %1786 = vrot.lane.b32.xlu1 %v8405_v15, %s3333_s13  ;;  %v8407_v20 = vld [vmem:[#allocation204_spill] sm:$0xff]  ;;  %v4752_v42 = vpop.permute.xlu0 %1614  ;;  %v4754_v37 = vpop.permute.xlu1 %1456  ;;  %v779_v6 = vmul.f32 %v776_v26, %v4360_v44 }
 0x29c   : > { %v4728_v57 = vadd.f32 %v721_v10, %v8403_v55  ;;  %8404 = vst [vmem:[#allocation47_spill] sm:$0xff] %v4731_v32  ;;  %v857_v19 = vmul.f32 %v8407_v20, %v846_v48  ;;  %v8408_v36 = vld [vmem:[#allocation49_spill] sm:$0xff]  ;;  %8409 = vst [vmem:[#allocation46_spill] sm:$0xff] %v4752_v42  ;;  %v858_v32 = vmul.f32 %v4479_v17, %v843_v8  ;;  %2255 = vperm.xlu0 %3154, %v4079_v56   ;;  %v8414_v5 = vld [vmem:[#allocation52_spill] sm:$0xff] }
 0x29d   : > { %v840_v10 = vsel %vm839_vm11, %v8401_v0, %v8408_v36  ;;  %v849_v55 = vsel %vm839_vm11, %v8408_v36, %v8398_v39  ;;  %8410 = vst [vmem:[#allocation179_spill] sm:$0xff] %v4754_v37  ;;  %8411 = vst [vmem:[#allocation45_spill] sm:$0xff] %v4757_v18  ;;  %v8412_v0 = vld [vmem:[#allocation51_spill] sm:$0xff]  ;;  %v805_v39 = vmul.f32 %v8406_v35, %v781_v24  ;;  %v8415_v49 = vld [vmem:[#allocation208_spill] sm:$0xff] }
 0x29e   : > { %v935_v60 = vsel %vm928_vm12, %v8413_v62, %v8412_v0  ;;  %v782_v36 = vmul.f32 %v767_v47, %v4386_v51  ;;  %v932_v29 = vsel %vm928_vm12, %v8412_v0, %v8414_v5  ;;  %v856_v18 = vmul.f32 %v8415_v49, %v849_v55  ;;  %v8416_v42 = vld [vmem:[#allocation53_spill] sm:$0xff]  ;;  %v8418_v0 = vld [vmem:[#allocation11_spill] sm:$0xff]  ;;  %v8419_v51 = vld [vmem:[#allocation212_spill] sm:$0xff] }
 0x29f   : > { %v859_v37 = vmul.f32 %v4491_v25, %v840_v10  ;;  %v929_v44 = vsel %vm928_vm12, %v8414_v5, %v8416_v42  ;;  %v938_v24 = vsel %vm928_vm12, %v8416_v42, %v8413_v62  ;;  %1798 = vrot.lane.b32.xlu1 %v3761_v33, %s3333_s13  ;;  %v4786_v56 = vmul.f32 %v4390_v27, %v767_v47  ;;  %v8420_v17 = vld [vmem:[#allocation55_spill] sm:$0xff]  ;;  %v8421_v20 = vld [vmem:[#allocation54_spill] sm:$0xff]  ;;  %v4794_v59 = vpop.permute.xlu0 %1626  ;;  %v4796_v3 = vpop.permute.xlu1 %1525 }
 0x2a0   : > { %v881_v49 = vmul.f32 %v8418_v0, %v857_v19  ;;  %v946_v25 = vmul.f32 %v8419_v51, %v935_v60  ;;  %v1024_v5 = vsel %vm1017_vm13, %v8421_v20, %v8420_v17  ;;  %8422 = vst [vmem:[#allocation173_spill] sm:$0xff] %v4794_v59  ;;  %8423 = vst [vmem:[#allocation187_spill] sm:$0xff] %v4796_v3  ;;  %v8424_v42 = vld [vmem:[#allocation186_spill] sm:$0xff]  ;;  %v7910_v27 = vmov 19   ;;  %v8429_v3 = vld [vmem:[#allocation219_spill] sm:$0xff] }
 0x2a1   : > { %8417 = vst [vmem:[#allocation48_spill] sm:$0xff] %v4786_v56  ;;  %v803_v62 = vmul.f32 %v8406_v35, %v779_v6  ;;  %v4800_v41 = vmul.f32 %v8424_v42, %v776_v26  ;;  %v882_v47 = vmul.f32 %v8418_v0, %v858_v32  ;;  %v8426_v56 = vld [vmem:[#allocation216_spill] sm:$0xff]  ;;  %3155 = vset.pattern.permute.xlu0 %v7910_v27  ;;  %v8430_v6 = vld [vmem:[#allocation127_spill] sm:$0xff] }
 0x2a2   : > { %v947_v19 = vmul.f32 %v8426_v56, %v932_v29  ;;  %v806_v51 = vmul.f32 %v8406_v35, %v782_v36  ;;  %v4807_v38 = vmul.f32 %v8427_v31, %v846_v48  ;;  %v945_v59 = vmul.f32 %v4534_v16, %v938_v24  ;;  %2199 = vperm.xlu0 %3155, %v8430_v6   ;;  %v8431_v35 = vld [vmem:[#allocation56_spill] sm:$0xff]  ;;  %v8439_v56 = vld [vmem:[#allocation211_spill] sm:$0xff] }
 0x2a3   : > { %8425 = vst [vmem:[#allocation44_spill] sm:$0xff] %v4800_v41  ;;  %v948_v46 = vmul.f32 %v8429_v3, %v929_v44  ;;  %v880_v26 = vmul.f32 %v8418_v0, %v856_v18  ;;  %v883_v32 = vmul.f32 %v8418_v0, %v859_v37  ;;  %v1031_v27 = vmul.f32 %v4241_v2, %v1024_v5  ;;  %v8432_v41 = vld [vmem:[#allocation207_spill] sm:$0xff]  ;;  %v8434_v3 = vld [vmem:[#allocation210_spill] sm:$0xff]  ;;  %v8436_v18 = vld [vmem:[#allocation13_spill] sm:$0xff]  ;;  %v4831_v0 = vpop.permute.xlu1 %1531  ;;  %v4833_v2 = vpop.permute.xlu0 %1755 }
 0x2a4   : > { %8428 = vst [vmem:[#allocation9_spill] sm:$0xff] %v4807_v38  ;;  %v1021_v48 = vsel %vm1017_vm13, %v8420_v17, %v8431_v35  ;;  %1802 = vrot.lane.b32.xlu1 %v3649_v30, %s3333_s13  ;;  %v893_v36 = vadd.f32 %v881_v49, %v4690_v7  ;;  %v4825_v38 = vmul.f32 %v8432_v41, %v843_v8  ;;  %8437 = vst [vmem:[#allocation50_spill] sm:$0xff] %v4831_v0  ;;  %v8441_v7 = vld [vmem:[#allocation57_spill] sm:$0xff] }
 0x2a5   : > { %v4828_v6 = vmul.f32 %v8434_v3, %v840_v10  ;;  %v970_v37 = vmul.f32 %v8436_v18, %v946_v25  ;;  %8438 = vst [vmem:[#allocation52_spill] sm:$0xff] %v4833_v2  ;;  %v894_v16 = vadd.f32 %v882_v47, %v732_v63  ;;  %v4836_v17 = vmul.f32 %v8439_v56, %v849_v55 }
 0x2a6   : > { %8433 = vst [vmem:[#allocation49_spill] sm:$0xff] %v4825_v38  ;;  %v971_v31 = vmul.f32 %v8436_v18, %v947_v19  ;;  %v1027_v49 = vsel %vm1017_vm13, %v8441_v7, %v8421_v20  ;;  %v969_v8 = vmul.f32 %v8436_v18, %v945_v59  ;;  %v972_v10 = vmul.f32 %v8436_v18, %v948_v46  ;;  %v8442_v19 = vld [vmem:[#allocation213_spill] sm:$0xff]  ;;  %v8444_v59 = vld [vmem:[#allocation15_spill] sm:$0xff]  ;;  %v8448_v38 = vld [vmem:[#allocation58_spill] sm:$0xff] }
 0x2a7   : > { %8435 = vst [vmem:[#allocation51_spill] sm:$0xff] %v4828_v6  ;;  %8440 = vst [vmem:[#allocation53_spill] sm:$0xff] %v4836_v17  ;;  %v1032_v25 = vmul.f32 %v4289_v34, %v1021_v48  ;;  %v1018_v63 = vsel %vm1017_vm13, %v8431_v35, %v8441_v7  ;;  %1871 = vrot.lane.b32.xlu0 %v8405_v15, %s3335_s16  ;;  %v892_v55 = vadd.f32 %v880_v26, %v4725_v9  ;;  %v8445_v18 = vld [vmem:[#allocation217_spill] sm:$0xff]  ;;  %v8447_v7 = vld [vmem:[#allocation59_spill] sm:$0xff]  ;;  %v4869_v9 = vpop.permute.xlu1 %1543 }
 0x2a8   : > { %v895_v47 = vadd.f32 %v883_v32, %v4728_v57  ;;  %v4855_v20 = vmul.f32 %v8442_v19, %v935_v60  ;;  %v1055_v17 = vmul.f32 %v8444_v59, %v1031_v27  ;;  %1869 = vrot.lane.b32.xlu1 %v3585_v45, %s3335_s16  ;;  %v982_v46 = vadd.f32 %v970_v37, %v4740_v1  ;;  %v8451_v26 = vld [vmem:[#allocation221_spill] sm:$0xff] }
 0x2a9   : > { %v4862_v6 = vmul.f32 %v8445_v18, %v932_v29  ;;  %v1030_v35 = vmul.f32 %v4328_v61, %v1027_v49  ;;  %v1109_v57 = vsel %vm1102_vm14, %v8448_v38, %v8447_v7  ;;  %8449 = vst [vmem:[#allocation54_spill] sm:$0xff] %v4869_v9  ;;  %v4871_v60 = vadd.f32 %v971_v31, %v805_v39  ;;  %v4880_v29 = vpop.permute.xlu0 %2010  ;;  %v8485_v9 = vld [vmem:[#allocation76_spill] sm:$0xff] }
 0x2aa   : > { %8443 = vst [vmem:[#allocation11_spill] sm:$0xff] %v4855_v20  ;;  %v4874_v27 = vmul.f32 %v4542_v4, %v929_v44  ;;  %v4877_v32 = vmul.f32 %v8451_v26, %v938_v24  ;;  %v1033_v1 = vmul.f32 %v4334_v54, %v1018_v63  ;;  %8453 = vst [vmem:[#allocation57_spill] sm:$0xff] %v4880_v29  ;;  %v8479_v29 = vld [vmem:[#allocation237_spill] sm:$0xff] }
 0x2ab   : > { %8446 = vst [vmem:[#allocation55_spill] sm:$0xff] %v4862_v6  ;;  %v4882_v37 = vadd.f32 %v969_v8, %v803_v62  ;;  %v4884_v6 = vadd.f32 %v972_v10, %v806_v51  ;;  %v4887_v20 = vmul.f32 %v4234_v43, %v1024_v5  ;;  %v1056_v31 = vmul.f32 %v8444_v59, %v1032_v25  ;;  %v8457_v5 = vld [vmem:[#allocation27_spill] sm:$0xff]  ;;  %v4916_v10 = vpop.permute.xlu1 %1610 }
 0x2ac   : > { %8450 = vst [vmem:[#allocation56_spill] sm:$0xff] %v4874_v27  ;;  %8452 = vst [vmem:[#allocation13_spill] sm:$0xff] %v4877_v32  ;;  %1883 = vrot.lane.b32.xlu0 %v3761_v33, %s3335_s16  ;;  %v4892_v44 = vadd.f32 %v1055_v17, %v893_v36  ;;  %v4895_v39 = vmul.f32 %v4257_v50, %v1021_v48  ;;  %v1120_v24 = vmul.f32 %v4588_v13, %v1109_v57  ;;  %v8456_v32 = vld [vmem:[#allocation60_spill] sm:$0xff]  ;;  %v8459_v36 = vld [vmem:[#allocation66_spill] sm:$0xff] }
 0x2ad   : > { %8454 = vst [vmem:[#allocation15_spill] sm:$0xff] %v4887_v20  ;;  %v1106_v51 = vsel %vm1102_vm14, %v8447_v7, %v8456_v32  ;;  %1875 = vrot.lane.b32.xlu1 %v8457_v5, %s3335_s16  ;;  %v1054_v62 = vmul.f32 %v8444_v59, %v1030_v35  ;;  %v4906_v8 = vmul.f32 %v4338_v12, %v1018_v63  ;;  %8460 = vst [vmem:[#allocation60_spill] sm:$0xff] %v4916_v10  ;;  %v8461_v7 = vld [vmem:[#allocation68_spill] sm:$0xff]  ;;  %v8462_v27 = vld [vmem:[#allocation62_spill] sm:$0xff] }
 0x2ae   : > { %8455 = vst [vmem:[#allocation59_spill] sm:$0xff] %v4895_v39  ;;  %v1103_v48 = vsel %vm1102_vm14, %v8456_v32, %v8459_v36  ;;  %v1112_v17 = vsel %vm1102_vm14, %v8459_v36, %v8448_v38  ;;  %v1057_v25 = vmul.f32 %v8444_v59, %v1033_v1  ;;  %v4923_v63 = vsel %vm1191_vm15, %v8462_v27, %v8461_v7  ;;  %v8464_v35 = vld [vmem:[#allocation70_spill] sm:$0xff]  ;;  %v8467_v39 = vld [vmem:[#allocation64_spill] sm:$0xff]  ;;  %v8471_v20 = vld [vmem:[#allocation153_spill] sm:$0xff] }
 0x2af   : > { %8458 = vst [vmem:[#allocation58_spill] sm:$0xff] %v4906_v8  ;;  %8463 = vst [vmem:[#allocation66_spill] sm:$0xff] %v4923_v63  ;;  %v4929_v32 = vsel %vm1191_vm15, %v8464_v35, %v8462_v27  ;;  %v8466_v8 = vld [vmem:[#allocation72_spill] sm:$0xff]  ;;  %v4937_v36 = vadd.f32 %v1056_v31, %v894_v16  ;;  %v4940_v59 = vmul.f32 %v4342_v40, %v1027_v49  ;;  %vm585_vm2 = vcmp.lt.s32.totalorder %v8471_v20, 7  ;;  %v4946_v27 = vpop.permute.xlu0 %1921  ;;  %v8473_v43 = vld [vmem:[#allocation31_spill] sm:$0xff]  ;;  %v4965_v19 = vpop.permute.xlu1 %1616 }
 0x2b0   : > { %8465 = vst [vmem:[#allocation62_spill] sm:$0xff] %v4929_v32  ;;  %v4935_v38 = vsel %vm1284_vm0, %v8467_v39, %v8466_v8  ;;  %v1121_v1 = vmul.f32 %v4631_v23, %v1106_v51  ;;  %1887 = vrot.lane.b32.xlu0 %v3649_v30, %s3335_s16  ;;  %8472 = vst [vmem:[#allocation153_spill] sm:$0xff] %v4946_v27  ;;  %v1144_v26 = vmul.f32 %v8473_v43, %v1120_v24  ;;  %v8474_v16 = vld [vmem:[#allocation74_spill] sm:$0xff]  ;;  %v8484_v10 = vld [vmem:[#allocation63_spill] sm:$0xff] }
 0x2b1   : > { %8468 = vst [vmem:[#allocation64_spill] sm:$0xff] %v4935_v38  ;;  %8469 = vst [vmem:[#allocation251_spill] sm:$0xff] %v4937_v36  ;;  %v1119_v4 = vmul.f32 %v4639_v52, %v1112_v17  ;;  %v1122_v18 = vmul.f32 %v4654_v58, %v1103_v48  ;;  %v4955_v49 = vsel %vm1284_vm0, %v8474_v16, %v8467_v39  ;;  %1881 = vrot.lane.b32.xlu1 %v3591_v53, %s3335_s16  ;;  %v8501_v35 = vld [vmem:[#allocation8_spill] sm:$0xff]  ;;  %v8542_v16 = vld [vmem:[#allocation206_spill] sm:$0xff] }
 0x2b2   : > { %8470 = vst [vmem:[#allocation252_spill] sm:$0xff] %v4940_v59  ;;  %8475 = vst [vmem:[#allocation31_spill] sm:$0xff] %v4955_v49  ;;  %v1066_v31 = vadd.f32 %v1054_v62, %v892_v55  ;;  %v1213_v59 = vmul.f32 %v4667_v14, %v4923_v63  ;;  %v1212_v24 = vmul.f32 %v4675_v22, %v4929_v32  ;;  %v8481_v55 = vmov 0.0   ;;  %v8483_v63 = vld [vmem:[#allocation234_spill] sm:$0xff] }
 0x2b3   : > { %v1298_v40 = vmul.f32 %v4935_v38, %v4606_v21  ;;  %8476 = vst [vmem:[#allocation253_spill] sm:$0xff] %v4965_v19  ;;  %v4967_v12 = vadd.f32 %v1057_v25, %v895_v47  ;;  %v4970_v39 = vmul.f32 %v4620_v28, %v1109_v57  ;;  %v4973_v0 = vmul.f32 %v8479_v29, %v1106_v51  ;;  %v8486_v57 = vld [vmem:[#allocation61_spill] sm:$0xff]  ;;  %v8487_v25 = vld [vmem:[#allocation42_spill] sm:$0xff]  ;;  %v4993_v20 = vpop.permute.xlu0 %1527  ;;  %v8490_v28 = vld [vmem:[#allocation35_spill] sm:$0xff] }
 0x2b4   : > { %v4978_v62 = vsel %vm585_vm2, 1.0, %v8481_v55  ;;  %v1145_v32 = vmul.f32 %v8473_v43, %v1121_v1  ;;  %v1297_v38 = vmul.f32 %v4955_v49, %v8483_v63  ;;  %v678_v47 = vsel %vm673_vm1, %v8485_v9, %v8484_v10  ;;  %1966 = vrot.lane.b32.xlu0 %v8487_v25, %s3337_s17  ;;  %8488 = vst [vmem:[#allocation234_spill] sm:$0xff] %v4993_v20  ;;  %v8491_v19 = vld [vmem:[#allocation26_spill] sm:$0xff]  ;;  %v8550_v20 = vld [vmem:[#allocation88_spill] sm:$0xff] }
 0x2b5   : > { %8477 = vst [vmem:[#allocation254_spill] sm:$0xff] %v4967_v12  ;;  %8478 = vst [vmem:[#allocation255_spill] sm:$0xff] %v4970_v39  ;;  %v681_v51 = vsel %vm673_vm1, %v8486_v57, %v8485_v9  ;;  %v1156_v55 = vadd.f32 %v1144_v26, %v982_v46  ;;  %v1143_v1 = vmul.f32 %v8473_v43, %v1119_v4  ;;  %v8489_v39 = vld [vmem:[#allocation225_spill] sm:$0xff]  ;;  %1958 = vrot.lane.b32.xlu1 %v3585_v45, %s3337_s17  ;;  %v5010_v4 = vpop.permute.xlu1 %1628  ;;  %v8494_v26 = vld [vmem:[#allocation188_spill] sm:$0xff] }
 0x2b6   : > { %8480 = vst [vmem:[#allocation256_spill] sm:$0xff] %v4973_v0  ;;  %8482 = vst [vmem:[#allocation257_spill] sm:$0xff] %v4978_v62  ;;  %v1146_v0 = vmul.f32 %v8473_v43, %v1122_v18  ;;  %v4999_v29 = vmul.f32 %v8489_v39, %v4334_v54  ;;  %v1237_v49 = vmul.f32 %v8490_v28, %v1213_v59  ;;  %v8493_v43 = vld [vmem:[#allocation169_spill] sm:$0xff]  ;;  %v8495_v12 = vld [vmem:[#allocation78_spill] sm:$0xff] }
 0x2b7   : > { %v1236_v9 = vmul.f32 %v8490_v28, %v1212_v24  ;;  %v1322_v27 = vmul.f32 %v8491_v19, %v1298_v40  ;;  %v5008_v46 = vmul.f32 %v4978_v62, %v4289_v34  ;;  %8492 = vst [vmem:[#allocation63_spill] sm:$0xff] %v5010_v4  ;;  %v699_v18 = vmul.f32 %v8493_v43, %v681_v51  ;;  %v8497_v24 = vld [vmem:[#allocation240_spill] sm:$0xff]  ;;  %v8499_v4 = vld [vmem:[#allocation241_spill] sm:$0xff] }
 0x2b8   : > { %v700_v39 = vmul.f32 %v8494_v26, %v678_v47  ;;  %v675_v36 = vsel %vm673_vm1, %v8484_v10, %v8495_v12  ;;  %v684_v40 = vsel %vm673_vm1, %v8495_v12, %v8486_v57  ;;  %v5023_v59 = vadd.f32 %v1145_v32, %v4871_v60  ;;  %1974 = vrot.lane.b32.xlu0 %v8501_v35, %s3337_s17  ;;  %v5034_v10 = vpop.permute.xlu0 %1535  ;;  %v8504_v60 = vld [vmem:[#allocation189_spill] sm:$0xff]  ;;  %v8509_v57 = vld [vmem:[#allocation200_spill] sm:$0xff] }
 0x2b9   : > { %v5026_v62 = vmul.f32 %v8497_v24, %v1103_v48  ;;  %v5029_v28 = vmul.f32 %v8499_v4, %v1112_v17  ;;  %v1321_v2 = vmul.f32 %v8491_v19, %v1297_v38  ;;  %8502 = vst [vmem:[#allocation169_spill] sm:$0xff] %v5034_v10  ;;  %v1155_v7 = vadd.f32 %v1143_v1, %v4882_v37  ;;  %v8506_v48 = vld [vmem:[#allocation223_spill] sm:$0xff]  ;;  %v8510_v37 = vld [vmem:[#allocation201_spill] sm:$0xff]  ;;  %v8538_v19 = vld [vmem:[#allocation162_spill] sm:$0xff] }
 0x2ba   : > { %8496 = vst [vmem:[#allocation76_spill] sm:$0xff] %v5023_v59  ;;  %v5038_v12 = vadd.f32 %v1146_v0, %v4884_v6  ;;  %v5042_v32 = vmul.f32 %v8504_v60, %v4999_v29  ;;  %v5046_v17 = vmul.f32 %v8506_v48, %v4257_v50  ;;  %1964 = vrot.lane.b32.xlu1 %v8457_v5, %s3337_s17  ;;  %v8511_v6 = vld [vmem:[#allocation174_spill] sm:$0xff]  ;;  %v8516_v50 = vld [vmem:[#allocation19_spill] sm:$0xff]  ;;  %v8520_v48 = vld [vmem:[#allocation80_spill] sm:$0xff] }
 0x2bb   : > { %8498 = vst [vmem:[#allocation61_spill] sm:$0xff] %v5026_v62  ;;  %8500 = vst [vmem:[#allocation42_spill] sm:$0xff] %v5029_v28  ;;  %v5051_v38 = vadd.f32 %v1237_v49, %v4892_v44  ;;  %v698_v28 = vmul.f32 %v8509_v57, %v684_v40  ;;  %v701_v1 = vmul.f32 %v8510_v37, %v675_v36  ;;  %v5059_v62 = vpop.permute.xlu1 %1840  ;;  %v8518_v49 = vld [vmem:[#allocation170_spill] sm:$0xff] }
 0x2bc   : > { %8503 = vst [vmem:[#allocation188_spill] sm:$0xff] %v5038_v12  ;;  %8505 = vst [vmem:[#allocation78_spill] sm:$0xff] %v5042_v32  ;;  %v5057_v0 = vmul.f32 %v8511_v6, %v5008_v46  ;;  %v5061_v4 = vadd.f32 %v1236_v9, %v1066_v31  ;;  %v5063_v24 = vadd.f32 %v1322_v27, %v1156_v55  ;;  %v8521_v12 = vld [vmem:[#allocation65_spill] sm:$0xff]  ;;  %v8525_v55 = vld [vmem:[#allocation4_spill] sm:$0xff] }
 0x2bd   : > { %8507 = vst [vmem:[#allocation258_spill] sm:$0xff] %v5046_v17  ;;  %8508 = vst [vmem:[#allocation259_spill] sm:$0xff] %v5051_v38  ;;  %v723_v17 = vmul.f32 %v8516_v50, %v699_v18  ;;  %v724_v10 = vmul.f32 %v8516_v50, %v700_v39  ;;  %v5067_v44 = vadd.f32 %v1321_v2, %v1155_v7  ;;  %v8524_v31 = vld [vmem:[#allocation69_spill] sm:$0xff]  ;;  %2041 = vrot.lane.b32.xlu0 %v8525_v55, %s3340_s20  ;;  %v5084_v2 = vpop.permute.xlu0 %1545  ;;  %v8527_v7 = vld [vmem:[#allocation180_spill] sm:$0xff] }
 0x2be   : > { %8512 = vst [vmem:[#allocation200_spill] sm:$0xff] %v5057_v0  ;;  %8513 = vst [vmem:[#allocation201_spill] sm:$0xff] %v5059_v62  ;;  %v5070_v38 = vmul.f32 %v8518_v49, %v681_v51  ;;  %v5076_v59 = vsel %vm766_vm7, %v8521_v12, %v8520_v48  ;;  %v8523_v62 = vld [vmem:[#allocation84_spill] sm:$0xff]  ;;  %v5087_v39 = vmul.f32 %v8527_v7, %v678_v47  ;;  %v8529_v51 = vld [vmem:[#allocation67_spill] sm:$0xff]  ;;  %1970 = vrot.lane.b32.xlu1 %v3591_v53, %s3337_s17 }
 0x2bf   : > { %8514 = vst [vmem:[#allocation260_spill] sm:$0xff] %v5061_v4  ;;  %8515 = vst [vmem:[#allocation261_spill] sm:$0xff] %v5063_v24  ;;  %v847_v27 = vsel %vm839_vm11, %v8524_v31, %v8523_v62  ;;  %v5093_v9 = vsel %vm766_vm7, %v8520_v48, %v8529_v51  ;;  %v8531_v18 = vld [vmem:[#allocation71_spill] sm:$0xff]  ;;  %v722_v47 = vmul.f32 %v8516_v50, %v698_v28  ;;  %v8534_v7 = vld [vmem:[#allocation82_spill] sm:$0xff] }
 0x2c0   : > { %8517 = vst [vmem:[#allocation19_spill] sm:$0xff] %v5067_v44  ;;  %8519 = vst [vmem:[#allocation262_spill] sm:$0xff] %v5070_v38  ;;  %v844_v49 = vsel %vm839_vm11, %v8523_v62, %v8531_v18  ;;  %v8532_v38 = vld [vmem:[#allocation192_spill] sm:$0xff]  ;;  %v725_v55 = vmul.f32 %v8516_v50, %v701_v1  ;;  %v5111_v48 = vsel %vm766_vm7, %v8529_v51, %v8534_v7  ;;  %v8537_v4 = vld [vmem:[#allocation229_spill] sm:$0xff]  ;;  %v5122_v1 = vpop.permute.xlu1 %1925 }
 0x2c1   : > { %8522 = vst [vmem:[#allocation80_spill] sm:$0xff] %v5076_v59  ;;  %8526 = vst [vmem:[#allocation65_spill] sm:$0xff] %v5084_v2  ;;  %v5101_v24 = vmul.f32 %v8532_v38, %v4606_v21  ;;  %v777_v62 = vsel %vm766_vm7, %v8534_v7, %v8521_v12  ;;  %v784_v28 = vmul.f32 %v5076_v59, %v8538_v19  ;;  %v8539_v32 = vld [vmem:[#allocation204_spill] sm:$0xff]  ;;  %v8541_v0 = vld [vmem:[#allocation175_spill] sm:$0xff] }
 0x2c2   : > { %8528 = vst [vmem:[#allocation84_spill] sm:$0xff] %v5087_v39  ;;  %8530 = vst [vmem:[#allocation69_spill] sm:$0xff] %v5093_v9  ;;  %v8536_v39 = vld [vmem:[#allocation224_spill] sm:$0xff]  ;;  %v861_v50 = vmul.f32 %v8539_v32, %v847_v27  ;;  %v785_v51 = vmul.f32 %v5093_v9, %v8541_v0  ;;  %v862_v8 = vmul.f32 %v8542_v16, %v844_v49  ;;  %v8543_v53 = vld [vmem:[#allocation86_spill] sm:$0xff] }
 0x2c3   : > { %8533 = vst [vmem:[#allocation4_spill] sm:$0xff] %v5101_v24  ;;  %8535 = vst [vmem:[#allocation67_spill] sm:$0xff] %v5111_v48  ;;  %v735_v44 = vadd.f32 %v723_v17, %v8536_v39  ;;  %v736_v24 = vadd.f32 %v724_v10, %v8537_v4  ;;  %v841_v12 = vsel %vm839_vm11, %v8531_v18, %v8543_v53  ;;  %v8544_v10 = vld [vmem:[#allocation5_spill] sm:$0xff]  ;;  %v5137_v17 = vpop.permute.xlu0 %1618  ;;  %v8546_v7 = vld [vmem:[#allocation202_spill] sm:$0xff] }
 0x2c4   : > { %8540 = vst [vmem:[#allocation71_spill] sm:$0xff] %v5122_v1  ;;  %v850_v4 = vsel %vm839_vm11, %v8543_v53, %v8524_v31  ;;  %2047 = vrot.lane.b32.xlu0 %v8544_v10, %s3340_s20  ;;  %8545 = vst [vmem:[#allocation82_spill] sm:$0xff] %v5137_v17  ;;  %v5140_v39 = vmul.f32 %v8546_v7, %v675_v36  ;;  %v8548_v9 = vld [vmem:[#allocation181_spill] sm:$0xff]  ;;  %v8549_v1 = vld [vmem:[#allocation184_spill] sm:$0xff] }
 0x2c5   : > { %v783_v59 = vmul.f32 %v777_v62, %v8548_v9  ;;  %v786_v5 = vmul.f32 %v5111_v48, %v8549_v1  ;;  %v8551_v18 = vld [vmem:[#allocation73_spill] sm:$0xff]  ;;  %v8553_v53 = vld [vmem:[#allocation142_spill] sm:$0xff]  ;;  %v8555_v38 = vld [vmem:[#allocation231_spill] sm:$0xff] }
 0x2c6   : > { %8547 = vst [vmem:[#allocation224_spill] sm:$0xff] %v5140_v39  ;;  %v5149_v45 = vsel %vm928_vm12, %v8551_v18, %v8550_v20  ;;  %2159 = vperm.xlu1 %3151, %v8553_v53   ;;  %v8554_v31 = vld [vmem:[#allocation230_spill] sm:$0xff]  ;;  %v737_v17 = vadd.f32 %v725_v55, %v8555_v38  ;;  %v8556_v2 = vld [vmem:[#allocation203_spill] sm:$0xff]  ;;  %v8560_v48 = vld [vmem:[#allocation21_spill] sm:$0xff] }
 0x2c7   : > { %8552 = vst [vmem:[#allocation229_spill] sm:$0xff] %v5149_v45  ;;  %v734_v10 = vadd.f32 %v722_v47, %v8554_v31  ;;  %v5155_v36 = vmul.f32 %v8556_v2, %v684_v40  ;;  %v8558_v7 = vld [vmem:[#allocation191_spill] sm:$0xff]  ;;  %v808_v1 = vmul.f32 %v8560_v48, %v784_v28  ;;  %v8562_v32 = vld [vmem:[#allocation208_spill] sm:$0xff]  ;;  %v8563_v9 = vld [vmem:[#allocation209_spill] sm:$0xff]  ;;  %v5166_v30 = vmul.f32 %v8560_v48, %v785_v51 }
 0x2c8   : > { %v5159_v39 = vmul.f32 %v8558_v7, %v8483_v63  ;;  %v8561_v0 = vld [vmem:[#allocation23_spill] sm:$0xff]  ;;  %v860_v19 = vmul.f32 %v8562_v32, %v850_v4  ;;  %v863_v60 = vmul.f32 %v8563_v9, %v841_v12  ;;  %v8564_v40 = vld [vmem:[#allocation212_spill] sm:$0xff]  ;;  %v8566_v31 = vld [vmem:[#allocation166_spill] sm:$0xff]  ;;  %v5182_v7 = vmul.f32 %v8560_v48, %v783_v59 }
 0x2c9   : > { %8557 = vst [vmem:[#allocation86_spill] sm:$0xff] %v5155_v36  ;;  %v885_v16 = vmul.f32 %v8561_v0, %v861_v50  ;;  %v886_v38 = vmul.f32 %v8561_v0, %v862_v8  ;;  %v950_v47 = vmul.f32 %v8564_v40, %v5149_v45  ;;  %v8565_v55 = vld [vmem:[#allocation159_spill] sm:$0xff]  ;;  %v5177_v50 = vpop.permute.xlu0 %1622  ;;  %v5179_v36 = vpop.permute.xlu1 %2006  ;;  %v5185_v51 = vmul.f32 %v8560_v48, %v786_v5  ;;  %v8578_v5 = vld [vmem:[#allocation90_spill] sm:$0xff] }
 0x2ca   : > { %8559 = vst [vmem:[#allocation5_spill] sm:$0xff] %v5159_v39  ;;  %v5173_v2 = vmul.f32 %v8566_v31, %v8565_v55  ;;  %v8568_v28 = vld [vmem:[#allocation7_spill] sm:$0xff]  ;;  %8569 = vst [vmem:[#allocation73_spill] sm:$0xff] %v5177_v50  ;;  %v5188_v8 = vmul.f32 %v8424_v42, %v777_v62  ;;  %v8575_v50 = vld [vmem:[#allocation205_spill] sm:$0xff]  ;;  %v5201_v59 = vmul.f32 %v8432_v41, %v844_v49 }
 0x2cb   : > { %2053 = vrot.lane.b32.xlu0 %v8568_v28, %s3340_s20  ;;  %8570 = vst [vmem:[#allocation142_spill] sm:$0xff] %v5179_v36  ;;  %v8572_v45 = vld [vmem:[#allocation75_spill] sm:$0xff]  ;;  %v8574_v28 = vmov 19   ;;  %v5198_v31 = vmul.f32 %v8575_v50, %v847_v27  ;;  %v5207_v48 = vsel %vm928_vm12, %v8578_v5, %v8551_v18  ;;  %v8580_v62 = vld [vmem:[#allocation158_spill] sm:$0xff]  ;;  %v8581_v42 = vld [vmem:[#allocation165_spill] sm:$0xff]  ;;  %v5214_v36 = vadd.f32 %v885_v16, %v735_v44 }
 0x2cc   : > { %8567 = vst [vmem:[#allocation88_spill] sm:$0xff] %v5173_v2  ;;  %8571 = vst [vmem:[#allocation230_spill] sm:$0xff] %v5188_v8  ;;  %v5194_v2 = vsel %vm928_vm12, %v8550_v20, %v8572_v45  ;;  %3152 = vset.pattern.permute.xlu1 %v8574_v28  ;;  %v5211_v8 = vmul.f32 %v8581_v42, %v8580_v62  ;;  %v8583_v20 = vld [vmem:[#allocation123_spill] sm:$0xff]  ;;  %v884_v27 = vmul.f32 %v8561_v0, %v860_v19  ;;  %v8584_v49 = vld [vmem:[#allocation92_spill] sm:$0xff] }
 0x2cd   : > { %8573 = vst [vmem:[#allocation231_spill] sm:$0xff] %v5194_v2  ;;  %8576 = vst [vmem:[#allocation21_spill] sm:$0xff] %v5198_v31  ;;  %2203 = vperm.xlu1 %3152, %v8583_v20   ;;  %v887_v28 = vmul.f32 %v8561_v0, %v863_v60  ;;  %v8585_v41 = vld [vmem:[#allocation77_spill] sm:$0xff]  ;;  %v5224_v18 = vadd.f32 %v886_v38, %v736_v24  ;;  %v8588_v31 = vld [vmem:[#allocation216_spill] sm:$0xff]  ;;  %v1698_v19 = vpop.permute.xlu0 %1697  ;;  %v5233_v60 = vpop.permute.xlu1 %1361  ;;  %v5239_v0 = vsel %vm928_vm12, %v8572_v45, %v8578_v5 }
 0x2ce   : > { %8577 = vst [vmem:[#allocation23_spill] sm:$0xff] %v5201_v59  ;;  %8579 = vst [vmem:[#allocation208_spill] sm:$0xff] %v5207_v48  ;;  %v5222_v50 = vsel %vm1017_vm13, %v8585_v41, %v8584_v49  ;;  %v5227_v59 = vmul.f32 %v8434_v3, %v841_v12  ;;  %v951_v20 = vmul.f32 %v8588_v31, %v5194_v2  ;;  %v8589_v16 = vld [vmem:[#allocation25_spill] sm:$0xff]  ;;  %v8592_v24 = vld [vmem:[#allocation218_spill] sm:$0xff] }
 0x2cf   : > { %8582 = vst [vmem:[#allocation209_spill] sm:$0xff] %v5211_v8  ;;  %8586 = vst [vmem:[#allocation212_spill] sm:$0xff] %v5222_v50  ;;  %v974_v44 = vmul.f32 %v8589_v16, %v950_v47  ;;  %2207 = vperm.xlu0 %3155, %v8553_v53   ;;  %v949_v12 = vmul.f32 %v8592_v24, %v5207_v48  ;;  %v8593_v38 = vld [vmem:[#allocation79_spill] sm:$0xff]  ;;  %v5250_v53 = vmul.f32 %v8439_v56, %v850_v4  ;;  %v8596_v47 = vld [vmem:[#allocation89_spill] sm:$0xff] }
 0x2d0   : > { %8587 = vst [vmem:[#allocation7_spill] sm:$0xff] %v5227_v59  ;;  %8590 = vst [vmem:[#allocation75_spill] sm:$0xff] %v5233_v60  ;;  %v5247_v3 = vsel %vm1017_vm13, %v8584_v49, %v8593_v38  ;;  %v8597_v2 = vld [vmem:[#allocation85_spill] sm:$0xff]  ;;  %v8600_v60 = vmov 20   ;;  %v5262_v48 = vadd.f32 %v884_v27, %v734_v10  ;;  %v5264_v49 = vadd.f32 %v887_v28, %v737_v17  ;;  %v8602_v4 = vld [vmem:[#allocation91_spill] sm:$0xff] }
 0x2d1   : > { %8591 = vst [vmem:[#allocation90_spill] sm:$0xff] %v5239_v0  ;;  %8594 = vst [vmem:[#allocation123_spill] sm:$0xff] %v5247_v3  ;;  %v5256_v59 = vsel %vm1191_vm15, %v8597_v2, %v8596_v47  ;;  %v8599_v45 = vld [vmem:[#allocation157_spill] sm:$0xff]  ;;  %3153 = vset.pattern.permute.xlu1 %v8600_v60  ;;  %v5270_v56 = vsel %vm1191_vm15, %v8602_v4, %v8597_v2  ;;  %v975_v60 = vmul.f32 %v8589_v16, %v951_v20  ;;  %v8608_v10 = vld [vmem:[#allocation219_spill] sm:$0xff]  ;;  %v5291_v47 = vpop.permute.xlu0 %1703 }
 0x2d2   : > { %8595 = vst [vmem:[#allocation92_spill] sm:$0xff] %v5250_v53  ;;  %8598 = vst [vmem:[#allocation77_spill] sm:$0xff] %v5256_v59  ;;  %v1035_v5 = vmul.f32 %v8599_v45, %v5222_v50  ;;  %v8604_v53 = vld [vmem:[#allocation96_spill] sm:$0xff]  ;;  %v8605_v8 = vld [vmem:[#allocation81_spill] sm:$0xff]  ;;  %v952_v17 = vmul.f32 %v8608_v10, %v5239_v0  ;;  %v1036_v27 = vmul.f32 %v4289_v34, %v5247_v3 }
 0x2d3   : > { %8601 = vst [vmem:[#allocation216_spill] sm:$0xff] %v5262_v48  ;;  %8603 = vst [vmem:[#allocation25_spill] sm:$0xff] %v5270_v56  ;;  %v5276_v42 = vsel %vm1102_vm14, %v8605_v8, %v8604_v53  ;;  %v8607_v50 = vld [vmem:[#allocation127_spill] sm:$0xff]  ;;  %v8609_v28 = vld [vmem:[#allocation98_spill] sm:$0xff]  ;;  %v7976_v48 = vmov 21   ;;  %v986_v20 = vadd.f32 %v974_v44, %v808_v1  ;;  %v1217_v0 = vmul.f32 %v4667_v14, %v5256_v59 }
 0x2d4   : > { %8606 = vst [vmem:[#allocation218_spill] sm:$0xff] %v5276_v42  ;;  %2251 = vperm.xlu1 %3153, %v8607_v50   ;;  %v5288_v2 = vsel %vm1102_vm14, %v8609_v28, %v8605_v8  ;;  %3157 = vset.pattern.permute.xlu0 %v7976_v48  ;;  %8611 = vst [vmem:[#allocation85_spill] sm:$0xff] %v5291_v47  ;;  %v5293_v50 = vpop.permute.xlu1 %1450  ;;  %v973_v4 = vmul.f32 %v8589_v16, %v949_v12  ;;  %v5306_v8 = vld [vmem:[%s7625_s2 + $0x8] sm:$0xff]  ;;  %v8615_v44 = vld [vmem:[#allocation28_spill] sm:$0xff] }
 0x2d5   : > { %8610 = vst [vmem:[#allocation79_spill] sm:$0xff] %v5288_v2  ;;  %8612 = vst [vmem:[#allocation157_spill] sm:$0xff] %v5293_v50  ;;  %v5301_v3 = vsel %vm1721_vm3, %v1698_v19, %v5291_v47  ;;  %2307 = vperm.xlu0 %3157, %v5306_v8   ;;  %v1216_v1 = vmul.f32 %v4675_v22, %v5270_v56  ;;  %v1059_v48 = vmul.f32 %v8615_v44, %v1035_v5  ;;  %v8616_v59 = vld [vmem:[#allocation94_spill] sm:$0xff]  ;;  %v8621_v47 = vld [vmem:[#allocation93_spill] sm:$0xff] }
 0x2d6   : > { %8613 = vst [vmem:[#allocation96_spill] sm:$0xff] %v5301_v3  ;;  %8614 = vst [vmem:[#allocation81_spill] sm:$0xff] %v5306_v8  ;;  %v5316_v12 = vsel %vm1017_vm13, %v8593_v38, %v8616_v59  ;;  %v1124_v50 = vmul.f32 %v4588_v13, %v5276_v42  ;;  %v8618_v3 = vld [vmem:[#allocation83_spill] sm:$0xff]  ;;  %v1123_v56 = vmul.f32 %v4639_v52, %v5288_v2 }
 0x2d7   : > { %8617 = vst [vmem:[#allocation127_spill] sm:$0xff] %v5316_v12  ;;  %v5324_v14 = vsel %vm1102_vm14, %v8604_v53, %v8618_v3  ;;  %v5330_v5 = vsel %vm1102_vm14, %v8618_v3, %v8609_v28  ;;  %v976_v38 = vmul.f32 %v8589_v16, %v952_v17  ;;  %v1060_v42 = vmul.f32 %v8615_v44, %v1036_v27  ;;  %v8622_v8 = vld [vmem:[#allocation87_spill] sm:$0xff]  ;;  %v5350_v28 = vpop.permute.xlu0 %1715  ;;  %v8626_v17 = vld [vmem:[#allocation24_spill] sm:$0xff] }
 0x2d8   : > { %8619 = vst [vmem:[#allocation219_spill] sm:$0xff] %v5324_v14  ;;  %8620 = vst [vmem:[#allocation98_spill] sm:$0xff] %v5330_v5  ;;  %1713 = vrot.lane.b32.xlu1 %v3761_v33, %s3332_s12  ;;  %v5342_v53 = vsel %vm1284_vm0, %v8622_v8, %v8621_v47  ;;  %v5348_v3 = vsel %vm1017_vm13, %v8616_v59, %v8585_v41  ;;  %v5352_v2 = vpop.permute.xlu1 %1533  ;;  %v987_v16 = vadd.f32 %v975_v60, %v5166_v30  ;;  %v8628_v13 = vld [vmem:[#allocation43_spill] sm:$0xff] }
 0x2d9   : > { %8623 = vst [vmem:[#allocation28_spill] sm:$0xff] %v5342_v53  ;;  %8624 = vst [vmem:[#allocation94_spill] sm:$0xff] %v5348_v3  ;;  %v1241_v27 = vmul.f32 %v8626_v17, %v1217_v0  ;;  %v1037_v62 = vmul.f32 %v4334_v54, %v5316_v12  ;;  %v5361_v47 = vsel %vm1721_vm3, %v5350_v28, %v1698_v19  ;;  %1889 = vrot.lane.b32.xlu0 %v8628_v13, %s3335_s16  ;;  %v8629_v41 = vld [vmem:[#allocation95_spill] sm:$0xff]  ;;  %v8631_v0 = vld [vmem:[#allocation20_spill] sm:$0xff] }
 0x2da   : > { %8625 = vst [vmem:[#allocation83_spill] sm:$0xff] %v5352_v2  ;;  %8627 = vst [vmem:[#allocation87_spill] sm:$0xff] %v5361_v47  ;;  %v5369_v59 = vsel %vm1284_vm0, %v8629_v41, %v8622_v8  ;;  %v1125_v30 = vmul.f32 %v4631_v23, %v5324_v14  ;;  %v1148_v60 = vmul.f32 %v8631_v0, %v1124_v50  ;;  %v7992_v2 = vmov 22  }
 0x2db   : > { %8630 = vst [vmem:[#allocation24_spill] sm:$0xff] %v5369_v59  ;;  %v1126_v12 = vmul.f32 %v4654_v58, %v5330_v5  ;;  %3160 = vset.pattern.permute.xlu0 %v7992_v2  ;;  %v1071_v19 = vadd.f32 %v1059_v48, %v5214_v36  ;;  %v1302_v47 = vmul.f32 %v5342_v53, %v4606_v21  ;;  %v5393_v48 = vpop.permute.xlu0 %1782  ;;  %v8634_v53 = vld [vmem:[#allocation97_spill] sm:$0xff]  ;;  %v8635_v21 = vld [vmem:[#allocation100_spill] sm:$0xff] }
 0x2dc   : > { %v1034_v8 = vmul.f32 %v4328_v61, %v5348_v3  ;;  %v1147_v41 = vmul.f32 %v8631_v0, %v1123_v56  ;;  %1804 = vrot.lane.b32.xlu1 %v8628_v13, %s3333_s13  ;;  %v985_v50 = vadd.f32 %v973_v4, %v5182_v7  ;;  %v988_v5 = vadd.f32 %v976_v38, %v5185_v51  ;;  %v5395_v2 = vpop.permute.xlu1 %1537  ;;  %v8637_v51 = vld [vmem:[#allocation99_spill] sm:$0xff] }
 0x2dd   : > { %v5388_v14 = vmul.f32 %v8626_v17, %v1216_v1  ;;  %v5391_v36 = vadd.f32 %v1060_v42, %v5224_v18  ;;  %8633 = vst [vmem:[#allocation20_spill] sm:$0xff] %v5395_v2  ;;  %v1061_v3 = vmul.f32 %v8615_v44, %v1037_v62  ;;  %v1301_v56 = vmul.f32 %v5369_v59, %v8483_v63  ;;  %v8639_v1 = vld [vmem:[#allocation33_spill] sm:$0xff] }
 0x2de   : > { %v5404_v7 = vsel %vm673_vm1, %v8635_v21, %v8634_v53  ;;  %v5410_v42 = vsel %vm673_vm1, %v8637_v51, %v8635_v21  ;;  %2045 = vrot.lane.b32.xlu0 %v8405_v15, %s3340_s20  ;;  %v1149_v62 = vmul.f32 %v8631_v0, %v1125_v30  ;;  %v1160_v18 = vadd.f32 %v1148_v60, %v986_v20  ;;  %v8646_v30 = vld [vmem:[#allocation193_spill] sm:$0xff] }
 0x2df   : > { %8632 = vst [vmem:[#allocation43_spill] sm:$0xff] %v5388_v14  ;;  %8636 = vst [vmem:[#allocation97_spill] sm:$0xff] %v5404_v7  ;;  %v1150_v4 = vmul.f32 %v8631_v0, %v1126_v12  ;;  %v1326_v38 = vmul.f32 %v8639_v1, %v1302_v47  ;;  %v5419_v59 = vmul.f32 %v8615_v44, %v1034_v8  ;;  %v8642_v12 = vld [vmem:[#allocation102_spill] sm:$0xff] }
 0x2e0   : > { %8638 = vst [vmem:[#allocation100_spill] sm:$0xff] %v5410_v42  ;;  %v1159_v14 = vadd.f32 %v1147_v41, %v985_v50  ;;  %v5421_v2 = vadd.f32 %v1241_v27, %v1071_v19  ;;  %1877 = vrot.lane.b32.xlu1 %v8487_v25, %s3335_s16  ;;  %v702_v21 = vmul.f32 %v8509_v57, %v5410_v42  ;;  %v1789_v27 = vpop.permute.xlu0 %1788  ;;  %v5441_v41 = vpop.permute.xlu1 %1612  ;;  %v8660_v42 = vld [vmem:[#allocation103_spill] sm:$0xff] }
 0x2e1   : > { %8640 = vst [vmem:[#allocation99_spill] sm:$0xff] %v5419_v59  ;;  %v703_v20 = vmul.f32 %v8493_v43, %v5404_v7  ;;  %v5433_v47 = vsel %vm673_vm1, %v8642_v12, %v8637_v51  ;;  %v5439_v44 = vsel %vm673_vm1, %v8634_v53, %v8642_v12  ;;  %8645 = vst [vmem:[#allocation264_spill] sm:$0xff] %v5441_v41  ;;  %v8653_v51 = vld [vmem:[#allocation108_spill] sm:$0xff]  ;;  %v8654_v12 = vld [vmem:[#allocation107_spill] sm:$0xff]  ;;  %vm1547_vm1 = vcmp.lt.s32.totalorder %v4167_v11, 8 }
 0x2e2   : > { %8641 = vst [vmem:[#allocation33_spill] sm:$0xff] %v5421_v2  ;;  %8643 = vst [vmem:[#allocation102_spill] sm:$0xff] %v5433_v47  ;;  %v5444_v57 = vadd.f32 %v1061_v3, %v5264_v49  ;;  %v1325_v43 = vmul.f32 %v8639_v1, %v1301_v56  ;;  %v5449_v0 = vmul.f32 %v8646_v30, %v5008_v46  ;;  %2057 = vrot.lane.b32.xlu0 %v3761_v33, %s3340_s20  ;;  %v8651_v3 = vld [vmem:[#allocation197_spill] sm:$0xff]  ;;  %v8668_v41 = vld [vmem:[#allocation110_spill] sm:$0xff] }
 0x2e3   : > { %8644 = vst [vmem:[#allocation263_spill] sm:$0xff] %v5439_v44  ;;  %v5454_v60 = vsel %vm1806_vm4, %v5393_v48, %v1789_v27  ;;  %v5458_v53 = vadd.f32 %v1149_v62, %v987_v16  ;;  %v5460_v19 = vadd.f32 %v1150_v4, %v988_v5  ;;  %v5462_v49 = vadd.f32 %v1326_v38, %v1160_v18  ;;  %v8656_v5 = vld [vmem:[#allocation167_spill] sm:$0xff]  ;;  %v8658_v18 = vld [vmem:[#allocation6_spill] sm:$0xff]  ;;  %v8659_v38 = vld [vmem:[#allocation104_spill] sm:$0xff] }
 0x2e4   : > { %8647 = vst [vmem:[#allocation265_spill] sm:$0xff] %v5449_v0  ;;  %v5466_v8 = vmul.f32 %v8651_v3, %v4999_v29  ;;  %v704_v50 = vmul.f32 %v8494_v26, %v5439_v44  ;;  %v705_v56 = vmul.f32 %v8510_v37, %v5433_v47  ;;  %v5476_v16 = vsel %vm839_vm11, %v8654_v12, %v8653_v51  ;;  %v5494_v2 = vpop.permute.xlu0 %1794  ;;  %v5496_v44 = vpop.permute.xlu1 %1620  ;;  %v8664_v7 = vld [vmem:[#allocation101_spill] sm:$0xff] }
 0x2e5   : > { %8648 = vst [vmem:[#allocation266_spill] sm:$0xff] %v5458_v53  ;;  %8649 = vst [vmem:[#allocation267_spill] sm:$0xff] %v5460_v19  ;;  %v5480_v62 = vmul.f32 %v8511_v6, %v8656_v5  ;;  %1885 = vrot.lane.b32.xlu1 %v8501_v35, %s3335_s16  ;;  %v726_v4 = vmul.f32 %v8658_v18, %v702_v21  ;;  %v727_v26 = vmul.f32 %v8658_v18, %v703_v20  ;;  %v8666_v21 = vld [vmem:[#allocation105_spill] sm:$0xff]  ;;  %v8688_v19 = vld [vmem:[#allocation194_spill] sm:$0xff] }
 0x2e6   : > { %8650 = vst [vmem:[#allocation268_spill] sm:$0xff] %v5462_v49  ;;  %8652 = vst [vmem:[#allocation269_spill] sm:$0xff] %v5466_v8  ;;  %v5490_v37 = vsel %vm766_vm7, %v8660_v42, %v8659_v38  ;;  %v5492_v47 = vadd.f32 %v1325_v43, %v1159_v14  ;;  %v5502_v59 = vsel %vm766_vm7, %v8659_v38, %v8664_v7  ;;  %v8670_v38 = vld [vmem:[#allocation29_spill] sm:$0xff] }
 0x2e7   : > { %8655 = vst [vmem:[#allocation108_spill] sm:$0xff] %v5476_v16  ;;  %8657 = vst [vmem:[#allocation107_spill] sm:$0xff] %v5480_v62  ;;  %v5508_v20 = vsel %vm839_vm11, %v8653_v51, %v8666_v21  ;;  %v5514_v14 = vsel %vm839_vm11, %v8666_v21, %v8668_v41  ;;  %v5519_v43 = vsel %vm1806_vm4, %v1789_v27, %v5494_v2  ;;  %2061 = vrot.lane.b32.xlu0 %v8670_v38, %s3340_s20  ;;  %v8674_v27 = vld [vmem:[#allocation178_spill] sm:$0xff]  ;;  %v8675_v62 = vld [vmem:[#allocation189_spill] sm:$0xff] }
 0x2e8   : > { %8661 = vst [vmem:[#allocation6_spill] sm:$0xff] %v5490_v37  ;;  %8662 = vst [vmem:[#allocation104_spill] sm:$0xff] %v5492_v47  ;;  %v864_v6 = vmul.f32 %v8562_v32, %v5476_v16  ;;  %v5535_v21 = vsel %vm839_vm11, %v8668_v41, %v8654_v12  ;;  %v5539_v8 = vmul.f32 %v8675_v62, %v8674_v27  ;;  %v8677_v49 = vld [vmem:[#allocation181_spill] sm:$0xff]  ;;  %v8679_v41 = vld [vmem:[#allocation162_spill] sm:$0xff]  ;;  %vm2735_vm11 = vcmask 23568  }
 0x2e9   : > { %8663 = vst [vmem:[#allocation103_spill] sm:$0xff] %v5496_v44  ;;  %8665 = vst [vmem:[#allocation101_spill] sm:$0xff] %v5502_v59  ;;  %v8671_v44 = vld [vmem:[#allocation106_spill] sm:$0xff]  ;;  %v728_v0 = vmul.f32 %v8658_v18, %v704_v50  ;;  %v729_v47 = vmul.f32 %v8658_v18, %v705_v56  ;;  %1960 = vrot.lane.b32.xlu1 %v8405_v15, %s3337_s17  ;;  %v788_v12 = vmul.f32 %v5502_v59, %v8679_v41  ;;  %v8680_v16 = vld [vmem:[#allocation204_spill] sm:$0xff] }
 0x2ea   : > { %8667 = vst [vmem:[#allocation105_spill] sm:$0xff] %v5508_v20  ;;  %8669 = vst [vmem:[#allocation110_spill] sm:$0xff] %v5514_v14  ;;  %v5527_v51 = vsel %vm766_vm7, %v8664_v7, %v8671_v44  ;;  %v787_v7 = vmul.f32 %v5490_v37, %v8677_v49  ;;  %v5549_v32 = vsel %vm766_vm7, %v8671_v44, %v8660_v42  ;;  %v8681_v56 = vld [vmem:[#allocation206_spill] sm:$0xff]  ;;  %v8682_v62 = vld [vmem:[#allocation112_spill] sm:$0xff]  ;;  %v5565_v42 = vpop.permute.xlu0 %1929  ;;  %v5567_v44 = vpop.permute.xlu1 %1630  ;;  %vm1632_vm7 = vcmp.lt.s32.totalorder %v4167_v11, 7 }
 0x2eb   : > { %8672 = vst [vmem:[#allocation29_spill] sm:$0xff] %v5527_v51  ;;  %8673 = vst [vmem:[#allocation106_spill] sm:$0xff] %v5535_v21  ;;  %v865_v50 = vmul.f32 %v8680_v16, %v5508_v20  ;;  %v866_v18 = vmul.f32 %v8681_v56, %v5514_v14  ;;  %v8683_v49 = vld [vmem:[#allocation111_spill] sm:$0xff]  ;;  %v8687_v15 = vld [vmem:[#allocation190_spill] sm:$0xff]  ;;  %v739_v41 = vadd.f32 %v727_v26, %v8688_v19 }
 0x2ec   : > { %8676 = vst [vmem:[#allocation270_spill] sm:$0xff] %v5539_v8  ;;  %8678 = vst [vmem:[#allocation181_spill] sm:$0xff] %v5549_v32  ;;  %v5563_v37 = vsel %vm928_vm12, %v8683_v49, %v8682_v62  ;;  %v738_v8 = vadd.f32 %v726_v4, %v8687_v15  ;;  %v8689_v59 = vld [vmem:[#allocation175_spill] sm:$0xff]  ;;  %v867_v56 = vmul.f32 %v8563_v9, %v5535_v21  ;;  %v5578_v14 = vld [vmem:[%s7625_s2 + $0x10] sm:$0xff] }
 0x2ed   : > { %8684 = vst [vmem:[#allocation162_spill] sm:$0xff] %v5563_v37  ;;  %8685 = vst [vmem:[#allocation204_spill] sm:$0xff] %v5565_v42  ;;  %v789_v16 = vmul.f32 %v5527_v51, %v8689_v59  ;;  %2359 = vperm.xlu0 %3160, %v5578_v14   ;;  %v8690_v20 = vld [vmem:[#allocation184_spill] sm:$0xff]  ;;  %v8692_v15 = vld [vmem:[#allocation109_spill] sm:$0xff]  ;;  %v953_v35 = vmul.f32 %v8592_v24, %v5563_v37  ;;  %1972 = vrot.lane.b32.xlu1 %v3761_v33, %s3337_s17 }
 0x2ee   : > { %8686 = vst [vmem:[#allocation206_spill] sm:$0xff] %v5567_v44  ;;  %v790_v42 = vmul.f32 %v5549_v32, %v8690_v20  ;;  %v8691_v44 = vld [vmem:[#allocation12_spill] sm:$0xff]  ;;  %v5588_v59 = vsel %vm928_vm12, %v8682_v62, %v8692_v15  ;;  %v8694_v19 = vld [vmem:[#allocation195_spill] sm:$0xff]  ;;  %v8696_v51 = vld [vmem:[#allocation10_spill] sm:$0xff]  ;;  %v5601_v62 = vpop.permute.xlu1 %1699 }
 0x2ef   : > { %v888_v4 = vmul.f32 %v8691_v44, %v864_v6  ;;  %8693 = vst [vmem:[#allocation112_spill] sm:$0xff] %v5588_v59  ;;  %v740_v9 = vadd.f32 %v728_v0, %v8694_v19  ;;  %v8695_v26 = vld [vmem:[#allocation196_spill] sm:$0xff]  ;;  %v811_v53 = vmul.f32 %v8696_v51, %v787_v7  ;;  %v812_v6 = vmul.f32 %v8696_v51, %v788_v12  ;;  %v8698_v24 = vld [vmem:[#allocation114_spill] sm:$0xff]  ;;  %v8703_v19 = vld [vmem:[#allocation115_spill] sm:$0xff] }
 0x2f0   : > { %v741_v21 = vadd.f32 %v729_v47, %v8695_v26  ;;  %v889_v20 = vmul.f32 %v8691_v44, %v865_v50  ;;  %v890_v32 = vmul.f32 %v8691_v44, %v866_v18  ;;  %8697 = vst [vmem:[#allocation111_spill] sm:$0xff] %v5601_v62  ;;  %v891_v47 = vmul.f32 %v8691_v44, %v867_v56  ;;  %v5619_v50 = vpop.permute.xlu0 %2099  ;;  %v8702_v56 = vld [vmem:[#allocation116_spill] sm:$0xff]  ;;  %v8705_v26 = vld [vmem:[#allocation14_spill] sm:$0xff] }
 0x2f1   : > { %v954_v0 = vmul.f32 %v8564_v40, %v5588_v59  ;;  %v5610_v33 = vsel %vm928_vm12, %v8698_v24, %v8683_v49  ;;  %v5616_v7 = vsel %vm928_vm12, %v8692_v15, %v8698_v24  ;;  %v8020_v12 = vmov 24   ;;  %8701 = vst [vmem:[#allocation175_spill] sm:$0xff] %v5619_v50  ;;  %v5632_v15 = vld [vmem:[%s7625_s2] sm:$0xff]  ;;  %1976 = vrot.lane.b32.xlu1 %v8670_v38, %s3337_s17 }
 0x2f2   : > { %8699 = vst [vmem:[#allocation190_spill] sm:$0xff] %v5610_v33  ;;  %8700 = vst [vmem:[#allocation194_spill] sm:$0xff] %v5616_v7  ;;  %3162 = vset.pattern.permute.xlu0 %v8020_v12  ;;  %v813_v18 = vmul.f32 %v8696_v51, %v789_v16  ;;  %v814_v40 = vmul.f32 %v8696_v51, %v790_v42  ;;  %v900_v44 = vadd.f32 %v888_v4, %v738_v8  ;;  %v8706_v12 = vld [vmem:[#allocation113_spill] sm:$0xff]  ;;  %v8708_v51 = vld [vmem:[#allocation118_spill] sm:$0xff]  ;;  %v5660_v37 = vpop.permute.xlu1 %1705  ;;  %vm2786_vm12 = vcmask 195584  }
 0x2f3   : > { %v5627_v49 = vsel %vm1017_vm13, %v8703_v19, %v8702_v56  ;;  %2459 = vperm.xlu0 %3162, %v5632_v15   ;;  %v977_v24 = vmul.f32 %v8705_v26, %v953_v35  ;;  %v5640_v8 = vsel %vm1017_vm13, %v8702_v56, %v8706_v12  ;;  %v5646_v42 = vsel %vm1017_vm13, %v8706_v12, %v8708_v51 }
 0x2f4   : > { %8704 = vst [vmem:[#allocation184_spill] sm:$0xff] %v5627_v49  ;;  %8707 = vst [vmem:[#allocation12_spill] sm:$0xff] %v5640_v8  ;;  %v901_v16 = vadd.f32 %v889_v20, %v739_v41  ;;  %v955_v4 = vmul.f32 %v8588_v31, %v5616_v7  ;;  %v956_v35 = vmul.f32 %v8608_v10, %v5610_v33  ;;  %v5665_v41 = vpop.permute.xlu0 %1539  ;;  %v8713_v20 = vld [vmem:[#allocation130_spill] sm:$0xff]  ;;  %v8726_v33 = vld [vmem:[#allocation117_spill] sm:$0xff] }
 0x2f5   : > { %8709 = vst [vmem:[#allocation109_spill] sm:$0xff] %v5646_v42  ;;  %v5658_v56 = vsel %vm1017_vm13, %v8708_v51, %v8703_v19  ;;  %8711 = vst [vmem:[#allocation196_spill] sm:$0xff] %v5660_v37  ;;  %v902_v12 = vadd.f32 %v890_v32, %v740_v9  ;;  %v903_v59 = vadd.f32 %v891_v47, %v741_v21  ;;  %v8714_v19 = vld [vmem:[#allocation134_spill] sm:$0xff]  ;;  %v8716_v21 = vld [vmem:[#allocation65_spill] sm:$0xff] }
 0x2f6   : > { %8710 = vst [vmem:[#allocation195_spill] sm:$0xff] %v5658_v56  ;;  %v978_v50 = vmul.f32 %v8705_v26, %v954_v0  ;;  %v1038_v38 = vmul.f32 %v4328_v61, %v5627_v49  ;;  %8712 = vst [vmem:[#allocation10_spill] sm:$0xff] %v5665_v41  ;;  %v1039_v31 = vmul.f32 %v8599_v45, %v5640_v8  ;;  %v8025_v61 = vmov 23   ;;  %v8718_v45 = vld [vmem:[#allocation192_spill] sm:$0xff]  ;;  %v8725_v49 = vld [vmem:[#allocation18_spill] sm:$0xff] }
 0x2f7   : > { %v1040_v10 = vmul.f32 %v4289_v34, %v5646_v42  ;;  %v5675_v51 = vsel %vm1191_vm15, %v8714_v19, %v8713_v20  ;;  %v5681_v32 = vsel %vm1547_vm1, %v5665_v41, %v8716_v21  ;;  %3164 = vset.pattern.permute.xlu0 %v8025_v61  ;;  %v5684_v9 = vadd.f32 %v977_v24, %v811_v53  ;;  %v8720_v0 = vld [vmem:[#allocation16_spill] sm:$0xff]  ;;  %v8722_v24 = vld [vmem:[#allocation171_spill] sm:$0xff] }
 0x2f8   : > { %8715 = vst [vmem:[#allocation114_spill] sm:$0xff] %v5675_v51  ;;  %8717 = vst [vmem:[#allocation116_spill] sm:$0xff] %v5681_v32  ;;  %v1041_v34 = vmul.f32 %v4334_v54, %v5658_v56  ;;  %v5691_v47 = vmul.f32 %v8718_v45, %v8565_v55  ;;  %2043 = vrot.lane.b32.xlu1 %v8720_v0, %s3340_s20  ;;  %2411 = vperm.xlu0 %3164, %v5578_v14   ;;  %v8721_v53 = vld [vmem:[#allocation156_spill] sm:$0xff]  ;;  %v5704_v56 = vpop.permute.xlu1 %1717  ;;  %v5721_v62 = vpop.permute.xlu0 %1701  ;;  %v8741_v45 = vld [vmem:[#allocation37_spill] sm:$0xff] }
 0x2f9   : > { %v979_v42 = vmul.f32 %v8705_v26, %v955_v4  ;;  %v980_v61 = vmul.f32 %v8705_v26, %v956_v35  ;;  %v5702_v54 = vsel %vm1369_vm5, %v8722_v24, %v8721_v53  ;;  %8724 = vst [vmem:[#allocation113_spill] sm:$0xff] %v5704_v56  ;;  %v1062_v8 = vmul.f32 %v8725_v49, %v1038_v38  ;;  %v8727_v7 = vld [vmem:[#allocation120_spill] sm:$0xff]  ;;  %v8729_v4 = vld [vmem:[#allocation119_spill] sm:$0xff]  ;;  %v8731_v24 = vld [vmem:[#allocation234_spill] sm:$0xff] }
 0x2fa   : > { %8719 = vst [vmem:[#allocation115_spill] sm:$0xff] %v5691_v47  ;;  %8723 = vst [vmem:[#allocation14_spill] sm:$0xff] %v5702_v54  ;;  %v5711_v0 = vsel %vm1102_vm14, %v8727_v7, %v8726_v33  ;;  %v5717_v26 = vsel %vm1102_vm14, %v8729_v4, %v8727_v7  ;;  %v1220_v35 = vmul.f32 %v4675_v22, %v5675_v51  ;;  %v8732_v7 = vld [vmem:[#allocation122_spill] sm:$0xff]  ;;  %v8739_v53 = vld [vmem:[#allocation81_spill] sm:$0xff] }
 0x2fb   : > { %8728 = vst [vmem:[#allocation118_spill] sm:$0xff] %v5711_v0  ;;  %8730 = vst [vmem:[#allocation130_spill] sm:$0xff] %v5717_v26  ;;  %v5723_v32 = vadd.f32 %v978_v50, %v812_v6  ;;  %v1063_v38 = vmul.f32 %v8725_v49, %v1039_v31  ;;  %v1064_v41 = vmul.f32 %v8725_v49, %v1040_v10  ;;  %v8734_v50 = vld [vmem:[#allocation27_spill] sm:$0xff]  ;;  %v8037_v31 = vmov 25   ;;  %v8736_v51 = vld [vmem:[#allocation158_spill] sm:$0xff] }
 0x2fc   : > { %v1559_v37 = vsel %vm1547_vm1, %v8716_v21, %v8731_v24  ;;  %v1065_v56 = vmul.f32 %v8725_v49, %v1041_v34  ;;  %v5736_v22 = vsel %vm1102_vm14, %v8726_v33, %v8732_v7  ;;  %v1394_v6 = vmul.f32 %v5159_v39, %v5702_v54  ;;  %2049 = vrot.lane.b32.xlu1 %v8734_v50, %s3340_s20  ;;  %v8735_v49 = vld [vmem:[#allocation228_spill] sm:$0xff]  ;;  %v8737_v24 = vld [vmem:[#allocation191_spill] sm:$0xff]  ;;  %v5752_v54 = vpop.permute.xlu1 %1784 }
 0x2fd   : > { %8733 = vst [vmem:[#allocation65_spill] sm:$0xff] %v5736_v22  ;;  %3166 = vset.pattern.permute.xlu0 %v8037_v31  ;;  %v991_v10 = vadd.f32 %v979_v42, %v813_v18  ;;  %v1127_v21 = vmul.f32 %v4639_v52, %v5717_v26  ;;  %v1128_v34 = vmul.f32 %v8735_v49, %v5711_v0  ;;  %8740 = vst [vmem:[#allocation18_spill] sm:$0xff] %v5752_v54  ;;  %v1710_v42 = vpop.permute.xlu0 %1709  ;;  %v8743_v0 = vld [vmem:[#allocation85_spill] sm:$0xff]  ;;  %v8772_v54 = vld [vmem:[#allocation242_spill] sm:$0xff] }
 0x2fe   : > { %v5749_v33 = vmul.f32 %v8737_v24, %v8736_v51  ;;  %2511 = vperm.xlu0 %3166, %v8739_v53   ;;  %v5754_v19 = vadd.f32 %v980_v61, %v814_v40  ;;  %v1074_v50 = vadd.f32 %v1062_v8, %v900_v44  ;;  %v1244_v31 = vmul.f32 %v8741_v45, %v1220_v35  ;;  %v8750_v61 = vld [vmem:[#allocation22_spill] sm:$0xff] }
 0x2ff   : > { %v1568_v18 = vmul.f32 %v8736_v51, %v1559_v37  ;;  %v5758_v52 = vadd.f32 %v1063_v38, %v901_v16  ;;  %v1129_v49 = vmul.f32 %v4631_v23, %v5736_v22  ;;  %v5765_v26 = vsel %vm1721_vm3, %v1710_v42, %v5350_v28  ;;  %v8748_v23 = vld [vmem:[#allocation38_spill] sm:$0xff]  ;;  %v8749_v28 = vld [vmem:[#allocation17_spill] sm:$0xff]  ;;  %v8751_v38 = vld [vmem:[#allocation91_spill] sm:$0xff] }
 0x300   : > { %8738 = vst [vmem:[#allocation16_spill] sm:$0xff] %v5749_v33  ;;  %8742 = vst [vmem:[#allocation117_spill] sm:$0xff] %v5765_v26  ;;  %v5770_v40 = vsel %vm1721_vm3, %v8743_v0, %v1710_v42  ;;  %v5772_v44 = vadd.f32 %v1064_v41, %v902_v12  ;;  %v5774_v8 = vadd.f32 %v1065_v56, %v903_v59  ;;  %2055 = vrot.lane.b32.xlu1 %v8749_v28, %s3340_s20  ;;  %v8752_v12 = vld [vmem:[#allocation126_spill] sm:$0xff]  ;;  %v8754_v56 = vld [vmem:[#allocation89_spill] sm:$0xff] }
 0x301   : > { %8744 = vst [vmem:[#allocation120_spill] sm:$0xff] %v5770_v40  ;;  %v5780_v37 = vsel %vm1102_vm14, %v8732_v7, %v8729_v4  ;;  %v1418_v16 = vmul.f32 %v8748_v23, %v1394_v6  ;;  %v1151_v35 = vmul.f32 %v8750_v61, %v1127_v21  ;;  %v1152_v0 = vmul.f32 %v8750_v61, %v1128_v34  ;;  %v5800_v4 = vpop.permute.xlu1 %1790  ;;  %v8757_v7 = vld [vmem:[#allocation131_spill] sm:$0xff]  ;;  %v8758_v6 = vld [vmem:[#allocation72_spill] sm:$0xff]  ;;  %v8764_v40 = vld [vmem:[#allocation74_spill] sm:$0xff] }
 0x302   : > { %8745 = vst [vmem:[#allocation119_spill] sm:$0xff] %v5772_v44  ;;  %8746 = vst [vmem:[#allocation122_spill] sm:$0xff] %v5774_v8  ;;  %v5791_v59 = vsel %vm1191_vm15, %v8752_v12, %v8751_v38  ;;  %v5797_v41 = vsel %vm1191_vm15, %v8754_v56, %v8752_v12  ;;  %2515 = vperm.xlu0 %3166, %v5578_v14   ;;  %v5806_v21 = vsel %vm1284_vm0, %v8758_v6, %v8757_v7  ;;  %v8760_v34 = vld [vmem:[#allocation124_spill] sm:$0xff]  ;;  %v8762_v38 = vld [vmem:[#allocation154_spill] sm:$0xff]  ;;  %v5815_v56 = vpop.permute.xlu0 %1719 }
 0x303   : > { %8747 = vst [vmem:[#allocation27_spill] sm:$0xff] %v5780_v37  ;;  %8753 = vst [vmem:[#allocation228_spill] sm:$0xff] %v5791_v59  ;;  %v5812_v42 = vsel %vm1191_vm15, %v8713_v20, %v8760_v34  ;;  %v1256_v28 = vadd.f32 %v1244_v31, %v1074_v50  ;;  %v1592_v12 = vmul.f32 %v8762_v38, %v1568_v18  ;;  %v8766_v31 = vld [vmem:[#allocation200_spill] sm:$0xff] }
 0x304   : > { %8755 = vst [vmem:[#allocation191_spill] sm:$0xff] %v5797_v41  ;;  %8756 = vst [vmem:[#allocation81_spill] sm:$0xff] %v5800_v4  ;;  %v1130_v22 = vmul.f32 %v4654_v58, %v5780_v37  ;;  %v1153_v26 = vmul.f32 %v8750_v61, %v1129_v49  ;;  %v5824_v6 = vsel %vm1284_vm0, %v8757_v7, %v8764_v40  ;;  %v8767_v18 = vld [vmem:[#allocation132_spill] sm:$0xff]  ;;  %v8770_v37 = vld [vmem:[#allocation165_spill] sm:$0xff]  ;;  %2259 = vperm.xlu1 %3153, %v5578_v14  }
 0x305   : > { %8759 = vst [vmem:[#allocation37_spill] sm:$0xff] %v5806_v21  ;;  %8761 = vst [vmem:[#allocation85_spill] sm:$0xff] %v5812_v42  ;;  %v1733_v20 = vsel %vm1721_vm3, %v5815_v56, %v5721_v62  ;;  %v1218_v50 = vmul.f32 %v8766_v31, %v5797_v41  ;;  %v8768_v38 = vld [vmem:[#allocation68_spill] sm:$0xff]  ;;  %v1430_v49 = vadd.f32 %v1418_v16, %v1256_v28  ;;  %v8771_v7 = vld [vmem:[#allocation78_spill] sm:$0xff]  ;;  %v5849_v23 = vpop.permute.xlu1 %1796 }
 0x306   : > { %8763 = vst [vmem:[#allocation17_spill] sm:$0xff] %v5815_v56  ;;  %8765 = vst [vmem:[#allocation22_spill] sm:$0xff] %v5824_v6  ;;  %v5836_v58 = vsel %vm1191_vm15, %v8768_v38, %v8767_v18  ;;  %v1742_v4 = vmul.f32 %v8770_v37, %v1733_v20  ;;  %v5841_v40 = vadd.f32 %v1151_v35, %v5684_v9  ;;  %v8774_v38 = vmov 1   ;;  %v8775_v28 = vld [vmem:[#allocation70_spill] sm:$0xff]  ;;  %v8777_v20 = vld [vmem:[#allocation52_spill] sm:$0xff] }
 0x307   : > { %8769 = vst [vmem:[#allocation91_spill] sm:$0xff] %v5836_v58  ;;  %v1219_v56 = vmul.f32 %v8771_v7, %v5791_v59  ;;  %v1299_v41 = vmul.f32 %v5806_v21, %v5008_v46  ;;  %v1221_v8 = vmul.f32 %v8772_v54, %v5812_v42  ;;  %8773 = vst [vmem:[#allocation126_spill] sm:$0xff] %v5849_v23  ;;  %3168 = vset.pattern.permute.xlu0 %v8774_v38  ;;  %v5861_v21 = vpop.permute.xlu0 %1792  ;;  %v3285_v54 = vld [vmem:[%s7627_s4] sm:$0xff] }
 0x308   : > { %v1300_v16 = vmul.f32 %v5824_v6, %v4999_v29  ;;  %v5858_v9 = vsel %vm1191_vm15, %v8767_v18, %v8775_v28  ;;  %v1604_v35 = vadd.f32 %v1592_v12, %v1430_v49  ;;  %v1766_v59 = vmul.f32 %v8777_v20, %v1742_v4  ;;  %2607 = vperm.xlu0 %3168, %v3285_v54   ;;  %v8779_v18 = vld [vmem:[#allocation140_spill] sm:$0xff]  ;;  %v8780_v28 = vld [vmem:[#allocation145_spill] sm:$0xff]  ;;  %v8790_v23 = vld [vmem:[#allocation26_spill] sm:$0xff] }
 0x309   : > { %8776 = vst [vmem:[#allocation89_spill] sm:$0xff] %v5858_v9  ;;  %v5867_v42 = vadd.f32 %v1152_v0, %v5723_v32  ;;  %v1154_v6 = vmul.f32 %v8750_v61, %v1130_v22  ;;  %v1214_v38 = vmul.f32 %v8766_v31, %v5836_v58  ;;  %v5876_v4 = vsel %vm1369_vm5, %v8780_v28, %v8779_v18  ;;  %v8783_v20 = vld [vmem:[#allocation129_spill] sm:$0xff] }
 0x30a   : > { %8781 = vst [vmem:[#allocation72_spill] sm:$0xff] %v5876_v4  ;;  %v5878_v12 = vadd.f32 %v1153_v26, %v991_v10  ;;  %v1242_v49 = vmul.f32 %v8626_v17, %v1218_v50  ;;  %v8784_v54 = vld [vmem:[#allocation133_spill] sm:$0xff]  ;;  %v5888_v22 = vadd.f32 %v1766_v59, %v1604_v35  ;;  %v8787_v61 = vmov 21   ;;  %v8788_v10 = vld [vmem:[#allocation214_spill] sm:$0xff]  ;;  %v8791_v35 = vld [vmem:[#allocation143_spill] sm:$0xff] }
 0x30b   : > { %8778 = vst [vmem:[#allocation131_spill] sm:$0xff] %v5867_v42  ;;  %v5885_v32 = vsel %vm1284_vm0, %v8784_v54, %v8783_v20  ;;  %3156 = vset.pattern.permute.xlu1 %v8787_v61  ;;  %v1243_v0 = vmul.f32 %v8626_v17, %v1219_v56  ;;  %v1245_v58 = vmul.f32 %v8741_v45, %v1221_v8  ;;  %v8789_v50 = vld [vmem:[#allocation238_spill] sm:$0xff]  ;;  %v1801_v56 = vpop.permute.xlu0 %1800 }
 0x30c   : > { %8782 = vst [vmem:[#allocation124_spill] sm:$0xff] %v5878_v12  ;;  %8785 = vst [vmem:[#allocation74_spill] sm:$0xff] %v5885_v32  ;;  %v1215_v26 = vmul.f32 %v8771_v7, %v5858_v9  ;;  %v1557_v42 = vsel %vm1547_vm1, %v8789_v50, %v8788_v10  ;;  %2303 = vperm.xlu1 %3156, %v5632_v15   ;;  %v1323_v12 = vmul.f32 %v8790_v23, %v1299_v41  ;;  %v8793_v9 = vmov 3   ;;  %v8794_v50 = vld [vmem:[#allocation35_spill] sm:$0xff] }
 0x30d   : > { %8786 = vst [vmem:[#allocation200_spill] sm:$0xff] %v5888_v22  ;;  %v1324_v59 = vmul.f32 %v8790_v23, %v1300_v16  ;;  %v5906_v17 = vsel %vm1369_vm5, %v8779_v18, %v8791_v35  ;;  %v1386_v8 = vmul.f32 %v5159_v39, %v5876_v4  ;;  %3172 = vset.pattern.permute.xlu0 %v8793_v9  ;;  %v5924_v16 = vpop.permute.xlu1 %2014  ;;  %v8804_v4 = vmov 22  }
 0x30e   : > { %8792 = vst [vmem:[#allocation132_spill] sm:$0xff] %v5906_v17  ;;  %v1305_v22 = vmul.f32 %v5885_v32, %v8483_v63  ;;  %v1238_v44 = vmul.f32 %v8794_v50, %v1214_v38  ;;  %v5917_v23 = vsel %vm1806_vm4, %v5494_v2, %v1801_v56  ;;  %v5922_v41 = vsel %vm1806_vm4, %v1801_v56, %v5393_v48  ;;  %v8803_v56 = vld [vmem:[#allocation226_spill] sm:$0xff] }
 0x30f   : > { %8795 = vst [vmem:[#allocation68_spill] sm:$0xff] %v5917_v23  ;;  %8796 = vst [vmem:[#allocation78_spill] sm:$0xff] %v5922_v41  ;;  %v5927_v18 = vadd.f32 %v1154_v6, %v5754_v19  ;;  %v1560_v9 = vmul.f32 %v8736_v51, %v1557_v42  ;;  %v5933_v63 = vmul.f32 %v8646_v30, %v8656_v5  ;;  %v8802_v19 = vld [vmem:[#allocation4_spill] sm:$0xff]  ;;  %v8815_v41 = vld [vmem:[#allocation251_spill] sm:$0xff] }
 0x310   : > { %8797 = vst [vmem:[#allocation242_spill] sm:$0xff] %v5924_v16  ;;  %v5937_v2 = vmul.f32 %v8651_v3, %v8674_v27  ;;  %v5940_v48 = vadd.f32 %v1242_v49, %v5391_v36  ;;  %v1239_v38 = vmul.f32 %v8794_v50, %v1215_v26  ;;  %v1387_v6 = vmul.f32 %v8802_v19, %v5906_v17  ;;  %v8807_v36 = vld [vmem:[#allocation32_spill] sm:$0xff]  ;;  %v8808_v16 = vld [vmem:[#allocation87_spill] sm:$0xff]  ;;  %v5960_v50 = vpop.permute.xlu0 %1867  ;;  %v8836_v27 = vld [vmem:[#allocation146_spill] sm:$0xff] }
 0x311   : > { %8798 = vst [vmem:[#allocation70_spill] sm:$0xff] %v5927_v18  ;;  %8799 = vst [vmem:[#allocation140_spill] sm:$0xff] %v5933_v63  ;;  %v1554_v42 = vsel %vm1547_vm1, %v8788_v10, %v8803_v56  ;;  %3158 = vset.pattern.permute.xlu1 %v8804_v4  ;;  %v5951_v32 = vadd.f32 %v1243_v0, %v5444_v57  ;;  %v5954_v51 = vadd.f32 %v1245_v58, %v5758_v52  ;;  %v8810_v17 = vld [vmem:[#allocation76_spill] sm:$0xff]  ;;  %v8814_v57 = vld [vmem:[#allocation30_spill] sm:$0xff] }
 0x312   : > { %8800 = vst [vmem:[#allocation145_spill] sm:$0xff] %v5937_v2  ;;  %8801 = vst [vmem:[#allocation129_spill] sm:$0xff] %v5940_v48  ;;  %v1410_v49 = vmul.f32 %v8807_v36, %v1386_v8  ;;  %v1734_v26 = vmul.f32 %v8770_v37, %v8808_v16  ;;  %2351 = vperm.xlu1 %3158, %v5632_v15   ;;  %v5963_v39 = vadd.f32 %v1323_v12, %v8810_v17  ;;  %v8812_v10 = vld [vmem:[#allocation188_spill] sm:$0xff]  ;;  %v5974_v16 = vpop.permute.xlu1 %2095  ;;  %v8819_v56 = vld [vmem:[#allocation222_spill] sm:$0xff] }
 0x313   : > { %8805 = vst [vmem:[#allocation133_spill] sm:$0xff] %v5951_v32  ;;  %8806 = vst [vmem:[#allocation214_spill] sm:$0xff] %v5954_v51  ;;  %v5966_v4 = vadd.f32 %v1324_v59, %v8812_v10  ;;  %v1329_v0 = vmul.f32 %v8814_v57, %v1305_v22  ;;  %v5970_v52 = vadd.f32 %v1238_v44, %v8815_v41  ;;  %v8817_v8 = vld [vmem:[#allocation40_spill] sm:$0xff]  ;;  %v8821_v17 = vld [vmem:[#allocation254_spill] sm:$0xff] }
 0x314   : > { %8809 = vst [vmem:[#allocation26_spill] sm:$0xff] %v5960_v50  ;;  %8811 = vst [vmem:[#allocation143_spill] sm:$0xff] %v5963_v39  ;;  %v1561_v58 = vmul.f32 %v8565_v55, %v1554_v42  ;;  %v1584_v23 = vmul.f32 %v8817_v8, %v1560_v9  ;;  %v5979_v12 = vmul.f32 %v8770_v37, %v8819_v56  ;;  %v8823_v10 = vld [vmem:[#allocation136_spill] sm:$0xff]  ;;  %v8825_v22 = vld [vmem:[#allocation95_spill] sm:$0xff]  ;;  %v1874_v32 = vpop.permute.xlu0 %1873 }
 0x315   : > { %8813 = vst [vmem:[#allocation35_spill] sm:$0xff] %v5966_v4  ;;  %8816 = vst [vmem:[#allocation32_spill] sm:$0xff] %v5970_v52  ;;  %v5982_v59 = vadd.f32 %v1239_v38, %v8821_v17  ;;  %v5988_v44 = vsel %vm1284_vm0, %v8783_v20, %v8823_v10  ;;  %v8826_v41 = vld [vmem:[#allocation138_spill] sm:$0xff]  ;;  %v1411_v42 = vmul.f32 %v8807_v36, %v1387_v6  ;;  %v8828_v37 = vld [vmem:[#allocation93_spill] sm:$0xff] }
 0x316   : > { %8818 = vst [vmem:[#allocation87_spill] sm:$0xff] %v5974_v16  ;;  %8820 = vst [vmem:[#allocation76_spill] sm:$0xff] %v5979_v12  ;;  %v5994_v9 = vsel %vm1284_vm0, %v8826_v41, %v8825_v22  ;;  %v6001_v38 = vsel %vm1284_vm0, %v8828_v37, %v8826_v41  ;;  %v8830_v17 = vld [vmem:[#allocation260_spill] sm:$0xff]  ;;  %v8832_v4 = vld [vmem:[#allocation166_spill] sm:$0xff]  ;;  %2355 = vperm.xlu1 %3158, %v8739_v53  }
 0x317   : > { %8822 = vst [vmem:[#allocation188_spill] sm:$0xff] %v5982_v59  ;;  %8824 = vst [vmem:[#allocation30_spill] sm:$0xff] %v5988_v44  ;;  %v1422_v55 = vadd.f32 %v1410_v49, %v8830_v17  ;;  %v8831_v16 = vld [vmem:[#allocation96_spill] sm:$0xff]  ;;  %v8833_v39 = vld [vmem:[#allocation161_spill] sm:$0xff]  ;;  %v1585_v17 = vmul.f32 %v8817_v8, %v1561_v58 }
 0x318   : > { %8827 = vst [vmem:[#allocation251_spill] sm:$0xff] %v5994_v9  ;;  %8829 = vst [vmem:[#allocation222_spill] sm:$0xff] %v6001_v38  ;;  %v1735_v20 = vmul.f32 %v8832_v4, %v8831_v16  ;;  %v1758_v5 = vmul.f32 %v8833_v39, %v1734_v26  ;;  %v8834_v22 = vld [vmem:[#allocation144_spill] sm:$0xff]  ;;  %v8835_v48 = vld [vmem:[#allocation141_spill] sm:$0xff]  ;;  %v1898_v26 = vsel %vm1891_vm8, %v5960_v50, %v1874_v32 }
 0x319   : > { %v1466_v6 = vsel %vm1458_vm6, %v8835_v48, %v8834_v22  ;;  %v1469_v37 = vsel %vm1458_vm6, %v8836_v27, %v8835_v48  ;;  %v8837_v41 = vld [vmem:[#allocation147_spill] sm:$0xff]  ;;  %v1596_v3 = vadd.f32 %v1584_v23, %v1422_v55  ;;  %v1908_v30 = vmul.f32 %v5979_v12, %v1898_v26  ;;  %v8842_v2 = vld [vmem:[#allocation149_spill] sm:$0xff]  ;;  %v6040_v23 = vpop.permute.xlu1 %2151 }
 0x31a   : > { %v8838_v49 = vld [vmem:[#allocation151_spill] sm:$0xff]  ;;  %v1303_v48 = vmul.f32 %v6001_v38, %v5008_v46  ;;  %v8844_v63 = vld [vmem:[#allocation173_spill] sm:$0xff]  ;;  %v1759_v12 = vmul.f32 %v8833_v39, %v1735_v20  ;;  %1978 = vrot.lane.b32.xlu1 %v8628_v13, %s3337_s17  ;;  %v6062_v39 = vadd.f32 %v1329_v0, %v5841_v40 }
 0x31b   : > { %v1468_v16 = vsel %vm1458_vm6, %v8838_v49, %v8837_v41  ;;  %v8839_v51 = vld [vmem:[#allocation223_spill] sm:$0xff]  ;;  %v1465_v49 = vsel %vm1458_vm6, %v8837_v41, %v8842_v2  ;;  %v8845_v58 = vld [vmem:[#allocation209_spill] sm:$0xff]  ;;  %v8848_v41 = vld [vmem:[#allocation88_spill] sm:$0xff]  ;;  %3159 = vset.pattern.permute.xlu1 %v8787_v61 }
 0x31c   : > { %v6027_v18 = vmul.f32 %v8832_v4, %v8839_v51  ;;  %v8841_v59 = vld [vmem:[#allocation259_spill] sm:$0xff]  ;;  %v1475_v26 = vmul.f32 %v8845_v58, %v1468_v16  ;;  %v1770_v4 = vadd.f32 %v1758_v5, %v1596_v3  ;;  %v8846_v38 = vld [vmem:[#allocation153_spill] sm:$0xff]  ;;  %v1480_v2 = vmul.f32 %v8848_v41, %v1466_v6  ;;  %8850 = vst [vmem:[#allocation138_spill] sm:$0xff] %v6062_v39 }
 0x31d   : > { %v1423_v52 = vadd.f32 %v1411_v42, %v8841_v59  ;;  %v8843_v50 = vld [vmem:[#allocation247_spill] sm:$0xff]  ;;  %v1932_v8 = vmul.f32 %v8846_v38, %v1908_v30  ;;  %v6047_v59 = vpop.permute.xlu0 %1879  ;;  %v1304_v42 = vmul.f32 %v5994_v9, %v4999_v29  ;;  %v8851_v9 = vld [vmem:[#allocation232_spill] sm:$0xff]  ;;  %v6071_v61 = vpop.permute.xlu1 %2155 }
 0x31e   : > { %8840 = vst [vmem:[#allocation254_spill] sm:$0xff] %v6027_v18  ;;  %v1642_v55 = vsel %vm1632_vm7, %v8844_v63, %v8843_v50  ;;  %8847 = vst [vmem:[#allocation136_spill] sm:$0xff] %v6047_v59  ;;  %v1479_v63 = vmul.f32 %v8845_v58, %v1469_v37  ;;  %v1895_v16 = vsel %vm1891_vm8, %v1874_v32, %v6047_v59  ;;  %v8852_v58 = vld [vmem:[#allocation46_spill] sm:$0xff]  ;;  %2051 = vrot.lane.b32.xlu1 %v8487_v25, %s3340_s20  ;;  %v8858_v25 = vld [vmem:[#allocation135_spill] sm:$0xff] }
 0x31f   : > { %v1597_v3 = vadd.f32 %v1585_v17, %v1423_v52  ;;  %v1649_v30 = vmul.f32 %v5749_v33, %v1642_v55  ;;  %v6058_v5 = vadd.f32 %v1932_v8, %v1770_v4  ;;  %v1909_v20 = vmul.f32 %v6027_v18, %v1895_v16  ;;  %v8853_v52 = vld [vmem:[#allocation34_spill] sm:$0xff]  ;;  %v8871_v59 = vld [vmem:[#allocation267_spill] sm:$0xff] }
 0x320   : > { %v1306_v6 = vmul.f32 %v5988_v44, %v8851_v9  ;;  %v1476_v37 = vmul.f32 %v8848_v41, %v1465_v49  ;;  %v1639_v32 = vsel %vm1632_vm7, %v8843_v50, %v8852_v58  ;;  %v1499_v4 = vmul.f32 %v8853_v52, %v1475_v26  ;;  %v8854_v50 = vld [vmem:[#allocation36_spill] sm:$0xff]  ;;  %v8855_v26 = vld [vmem:[#allocation121_spill] sm:$0xff] }
 0x321   : > { %8849 = vst [vmem:[#allocation95_spill] sm:$0xff] %v6058_v5  ;;  %v1771_v8 = vadd.f32 %v1759_v12, %v1597_v3  ;;  %v1819_v17 = vmul.f32 %v8737_v24, %v5454_v60  ;;  %v1933_v40 = vmul.f32 %v8846_v38, %v1909_v20  ;;  %v6079_v0 = vpop.permute.xlu0 %1956  ;;  %v1327_v9 = vmul.f32 %v8639_v1, %v1303_v48  ;;  %v8857_v20 = vld [vmem:[#allocation137_spill] sm:$0xff]  ;;  %v8875_v5 = vld [vmem:[#allocation134_spill] sm:$0xff] }
 0x322   : > { %v1328_v49 = vmul.f32 %v8639_v1, %v1304_v42  ;;  %v1504_v55 = vmul.f32 %v8854_v50, %v1480_v2  ;;  %v1503_v16 = vmul.f32 %v8854_v50, %v1479_v63  ;;  %v1650_v12 = vmul.f32 %v5691_v47, %v1639_v32  ;;  %v8861_v2 = vld [vmem:[#allocation139_spill] sm:$0xff]  ;;  %v6106_v42 = vpop.permute.xlu1 %1624 }
 0x323   : > { %v1673_v3 = vmul.f32 %v8855_v26, %v1649_v30  ;;  %v6087_v60 = vadd.f32 %v1933_v40, %v1771_v8  ;;  %v6094_v44 = vsel %vm1369_vm5, %v8858_v25, %v8857_v20  ;;  %v6097_v1 = vmul.f32 %v8814_v57, %v1306_v6  ;;  %8863 = vst [vmem:[#allocation141_spill] sm:$0xff] %v6106_v42  ;;  %v8864_v30 = vld [vmem:[#allocation19_spill] sm:$0xff]  ;;  %v8865_v8 = vld [vmem:[#allocation152_spill] sm:$0xff] }
 0x324   : > { %8859 = vst [vmem:[#allocation260_spill] sm:$0xff] %v6094_v44  ;;  %v6103_v63 = vsel %vm1369_vm5, %v8861_v2, %v8858_v25  ;;  %v1500_v48 = vmul.f32 %v8853_v52, %v1476_v37  ;;  %v1511_v32 = vadd.f32 %v1499_v4, %v8864_v30  ;;  %v6113_v40 = vsel %vm1191_vm15, %v8760_v34, %v8865_v8  ;;  %v8867_v6 = vld [vmem:[#allocation172_spill] sm:$0xff]  ;;  %v8870_v37 = vld [vmem:[#allocation266_spill] sm:$0xff] }
 0x325   : > { %8856 = vst [vmem:[#allocation93_spill] sm:$0xff] %v6087_v60  ;;  %8860 = vst [vmem:[#allocation96_spill] sm:$0xff] %v6097_v1  ;;  %v1843_v44 = vmul.f32 %v8867_v6, %v1819_v17  ;;  %v8868_v1 = vld [vmem:[#allocation192_spill] sm:$0xff]  ;;  %v6121_v39 = vadd.f32 %v1327_v9, %v8870_v37  ;;  %v6124_v4 = vadd.f32 %v1328_v49, %v8871_v59  ;;  %v8874_v9 = vld [vmem:[#allocation261_spill] sm:$0xff] }
 0x326   : > { %8862 = vst [vmem:[#allocation144_spill] sm:$0xff] %v6103_v63  ;;  %8866 = vst [vmem:[#allocation146_spill] sm:$0xff] %v6113_v40  ;;  %v1820_v38 = vmul.f32 %v8868_v1, %v5519_v43  ;;  %v8869_v25 = vld [vmem:[#allocation8_spill] sm:$0xff]  ;;  %v1963_v63 = vpop.permute.xlu0 %1962  ;;  %v1674_v43 = vmul.f32 %v8855_v26, %v1650_v12  ;;  %v1512_v37 = vadd.f32 %v1500_v48, %v8874_v9  ;;  %v6152_v12 = vpop.permute.xlu1 %1707 }
 0x327   : > { %2059 = vrot.lane.b32.xlu1 %v8869_v25, %s3340_s20  ;;  %v8872_v30 = vld [vmem:[#allocation268_spill] sm:$0xff]  ;;  %v1987_v34 = vsel %vm1980_vm9, %v6079_v0, %v1963_v63  ;;  %v1685_v25 = vadd.f32 %v1673_v3, %v1511_v32  ;;  %v6142_v59 = vsel %vm1191_vm15, %v8865_v8, %v8875_v5  ;;  %v1222_v49 = vmul.f32 %v8766_v31, %v6113_v40  ;;  %v8880_v32 = vld [vmem:[#allocation142_spill] sm:$0xff]  ;;  %v8886_v40 = vld [vmem:[#allocation199_spill] sm:$0xff] }
 0x328   : > { %v6127_v18 = vadd.f32 %v1504_v55, %v8872_v30  ;;  %v8873_v17 = vld [vmem:[#allocation104_spill] sm:$0xff]  ;;  %v1993_v42 = vmul.f32 %v8819_v56, %v1987_v34  ;;  %8876 = vst [vmem:[#allocation147_spill] sm:$0xff] %v6142_v59  ;;  %8879 = vst [vmem:[#allocation247_spill] sm:$0xff] %v6152_v12  ;;  %v1844_v48 = vmul.f32 %v8867_v6, %v1820_v38  ;;  %v8884_v34 = vld [vmem:[#allocation245_spill] sm:$0xff] }
 0x329   : > { %v6133_v60 = vadd.f32 %v1503_v16, %v8873_v17  ;;  %v8877_v55 = vld [vmem:[#allocation164_spill] sm:$0xff]  ;;  %v1855_v3 = vadd.f32 %v1843_v44, %v1685_v25  ;;  %v6160_v5 = vsel %vm1721_vm3, %v5721_v62, %v6152_v12  ;;  %v8883_v44 = vld [vmem:[#allocation198_spill] sm:$0xff]  ;;  %v1686_v8 = vadd.f32 %v1674_v43, %v1512_v37  ;;  %v8889_v37 = vld [vmem:[#allocation215_spill] sm:$0xff] }
 0x32a   : > { %v6150_v16 = vsel %vm1369_vm5, %v8791_v35, %v8877_v55  ;;  %v2017_v30 = vmul.f32 %v8880_v32, %v1993_v42  ;;  %8881 = vst [vmem:[#allocation88_spill] sm:$0xff] %v6160_v5  ;;  %v6163_v31 = vpop.permute.xlu0 %1968  ;;  %v6169_v35 = vsel %vm1369_vm5, %v8877_v55, %v8780_v28  ;;  %v1460_v38 = vsel %vm1458_vm6, %v8883_v44, %v8836_v27  ;;  %v8885_v27 = vld [vmem:[#allocation265_spill] sm:$0xff]  ;;  %v6201_v43 = vpop.permute.xlu1 %1711  ;;  %v8897_v12 = vld [vmem:[#allocation270_spill] sm:$0xff] }
 0x32b   : > { %8878 = vst [vmem:[#allocation259_spill] sm:$0xff] %v6150_v16  ;;  %2311 = vperm.xlu1 %3159, %v5578_v14   ;;  %8882 = vst [vmem:[#allocation232_spill] sm:$0xff] %v6169_v35  ;;  %v1463_v62 = vsel %vm1458_vm6, %v8834_v22, %v8883_v44  ;;  %v1984_v42 = vsel %vm1980_vm9, %v1963_v63, %v6163_v31  ;;  %v2162_v17 = vmul.f32 %v6040_v23, %v8884_v34 }
 0x32c   : > { %v2029_v28 = vadd.f32 %v2017_v30, %v1855_v3  ;;  %v1994_v25 = vmul.f32 %v8839_v51, %v1984_v42  ;;  %v1223_v9 = vmul.f32 %v8771_v7, %v6142_v59  ;;  %v1388_v55 = vmul.f32 %v8885_v27, %v6150_v16  ;;  %v8890_v3 = vld [vmem:[#allocation156_spill] sm:$0xff]  ;;  %v8896_v59 = vld [vmem:[#allocation107_spill] sm:$0xff] }
 0x32d   : > { %v6193_v22 = vsel %vm1284_vm0, %v8886_v40, %v8784_v54  ;;  %v6199_v63 = vsel %vm1284_vm0, %v8823_v10, %v8886_v40  ;;  %v6207_v7 = vsel %vm1369_vm5, %v8890_v3, %v8889_v37  ;;  %v1856_v30 = vadd.f32 %v1844_v48, %v1686_v8  ;;  %v8895_v40 = vld [vmem:[#allocation269_spill] sm:$0xff] }
 0x32e   : > { %8887 = vst [vmem:[#allocation46_spill] sm:$0xff] %v6193_v22  ;;  %8888 = vst [vmem:[#allocation34_spill] sm:$0xff] %v6199_v63  ;;  %v6209_v44 = vadd.f32 %v2162_v17, %v2029_v28  ;;  %v2018_v54 = vmul.f32 %v8880_v32, %v1994_v25  ;;  %v8893_v42 = vmov 23   ;;  %v6213_v34 = vpop.permute.xlu0 %2103  ;;  %v1246_v10 = vmul.f32 %v8741_v45, %v1222_v49  ;;  %v8898_v17 = vld [vmem:[#allocation246_spill] sm:$0xff] }
 0x32f   : > { %8891 = vst [vmem:[#allocation36_spill] sm:$0xff] %v6207_v7  ;;  %3161 = vset.pattern.permute.xlu1 %v8893_v42  ;;  %8894 = vst [vmem:[#allocation137_spill] sm:$0xff] %v6213_v34  ;;  %v1389_v16 = vmul.f32 %v8895_v40, %v6169_v35  ;;  %v1481_v5 = vmul.f32 %v8896_v59, %v1463_v62  ;;  %v1482_v51 = vmul.f32 %v8897_v12, %v1460_v38  ;;  %v8899_v38 = vld [vmem:[#allocation73_spill] sm:$0xff] }
 0x330   : > { %8892 = vst [vmem:[#allocation121_spill] sm:$0xff] %v6209_v44  ;;  %2403 = vperm.xlu1 %3161, %v5632_v15   ;;  %v1307_v48 = vmul.f32 %v6199_v63, %v5008_v46  ;;  %v1308_v8 = vmul.f32 %v6193_v22, %v4999_v29  ;;  %v2163_v28 = vmul.f32 %v6040_v23, %v8898_v17  ;;  %v8900_v42 = vld [vmem:[#allocation253_spill] sm:$0xff]  ;;  %v6235_v46 = vpop.permute.xlu1 %1786  ;;  %v8902_v63 = vld [vmem:[#allocation227_spill] sm:$0xff]  ;;  %v8908_v22 = vld [vmem:[#allocation248_spill] sm:$0xff] }
 0x331   : > { %v2030_v25 = vadd.f32 %v2018_v54, %v1856_v30  ;;  %v1247_v49 = vmul.f32 %v8741_v45, %v1223_v9  ;;  %v1412_v3 = vmul.f32 %v8807_v36, %v1388_v55  ;;  %v1395_v62 = vmul.f32 %v8802_v19, %v6207_v7  ;;  %8901 = vst [vmem:[#allocation135_spill] sm:$0xff] %v6235_v46  ;;  %v8904_v30 = vld [vmem:[#allocation63_spill] sm:$0xff] }
 0x332   : > { %v1637_v34 = vsel %vm1632_vm7, %v8900_v42, %v8899_v38  ;;  %v6241_v29 = vsel %vm1369_vm5, %v8857_v20, %v8902_v63  ;;  %v1634_v45 = vsel %vm1632_vm7, %v8899_v38, %v8904_v30  ;;  %v6253_v55 = vsel %vm1806_vm4, %v6235_v46, %v5861_v21 }
 0x333   : > { %8903 = vst [vmem:[#allocation139_spill] sm:$0xff] %v6241_v29  ;;  %v6247_v9 = vadd.f32 %v2163_v28, %v2030_v25  ;;  %8906 = vst [vmem:[#allocation152_spill] sm:$0xff] %v6253_v55  ;;  %v1413_v54 = vmul.f32 %v8807_v36, %v1389_v16  ;;  %v1505_v17 = vmul.f32 %v8854_v50, %v1481_v5  ;;  %v6265_v28 = vpop.permute.xlu0 %2255  ;;  %v8909_v36 = vld [vmem:[#allocation149_spill] sm:$0xff]  ;;  %v8911_v5 = vld [vmem:[#allocation119_spill] sm:$0xff] }
 0x334   : > { %v1506_v20 = vmul.f32 %v8854_v50, %v1482_v51  ;;  %v6262_v7 = vsel %vm1369_vm5, %v8902_v63, %v8861_v2  ;;  %2407 = vperm.xlu1 %3161, %v8739_v53   ;;  %v1331_v25 = vmul.f32 %v8814_v57, %v1307_v48  ;;  %v1332_v38 = vmul.f32 %v8814_v57, %v1308_v8  ;;  %v8910_v51 = vld [vmem:[#allocation140_spill] sm:$0xff]  ;;  %v8913_v2 = vld [vmem:[#allocation38_spill] sm:$0xff]  ;;  %v8914_v55 = vld [vmem:[#allocation145_spill] sm:$0xff]  ;;  %v6281_v48 = vpop.permute.xlu1 %1798 }
 0x335   : > { %8905 = vst [vmem:[#allocation19_spill] sm:$0xff] %v6247_v9  ;;  %8907 = vst [vmem:[#allocation172_spill] sm:$0xff] %v6262_v7  ;;  %v1462_v16 = vsel %vm1458_vm6, %v8909_v36, %v8908_v22  ;;  %v1655_v50 = vmul.f32 %v8910_v51, %v1637_v34  ;;  %v6275_v35 = vadd.f32 %v1246_v10, %v8911_v5  ;;  %v8916_v57 = vld [vmem:[#allocation122_spill] sm:$0xff]  ;;  %v8918_v9 = vld [vmem:[#allocation32_spill] sm:$0xff] }
 0x336   : > { %v1419_v63 = vmul.f32 %v8913_v2, %v1395_v62  ;;  %v1392_v19 = vmul.f32 %v8885_v27, %v6241_v29  ;;  %v1656_v46 = vmul.f32 %v8914_v55, %v1634_v45  ;;  %8915 = vst [vmem:[#allocation8_spill] sm:$0xff] %v6281_v48  ;;  %v6284_v8 = vadd.f32 %v1247_v49, %v8916_v57  ;;  %v8921_v62 = vld [vmem:[#allocation188_spill] sm:$0xff] }
 0x337   : > { %8912 = vst [vmem:[#allocation192_spill] sm:$0xff] %v6275_v35  ;;  %v6287_v44 = vadd.f32 %v1412_v3, %v8918_v9  ;;  %v1393_v34 = vmul.f32 %v8895_v40, %v6262_v7  ;;  %v6295_v10 = vsel %vm1806_vm4, %v5861_v21, %v6281_v48  ;;  %v6298_v36 = vadd.f32 %v1413_v54, %v8921_v62  ;;  %v8924_v9 = vld [vmem:[#allocation124_spill] sm:$0xff]  ;;  %v8926_v7 = vld [vmem:[#allocation70_spill] sm:$0xff] }
 0x338   : > { %8917 = vst [vmem:[#allocation266_spill] sm:$0xff] %v6284_v8  ;;  %8920 = vst [vmem:[#allocation268_spill] sm:$0xff] %v6295_v10  ;;  %v1517_v45 = vadd.f32 %v1505_v17, %v6121_v39  ;;  %v1518_v49 = vadd.f32 %v1506_v20, %v6124_v4  ;;  %v1477_v5 = vmul.f32 %v8896_v59, %v1462_v16  ;;  %v8923_v3 = vmov 24   ;;  %v8928_v8 = vld [vmem:[#allocation151_spill] sm:$0xff]  ;;  %v8929_v54 = vld [vmem:[#allocation128_spill] sm:$0xff]  ;;  %v6316_v39 = vpop.permute.xlu0 %2199 }
 0x339   : > { %8919 = vst [vmem:[#allocation267_spill] sm:$0xff] %v6287_v44  ;;  %8922 = vst [vmem:[#allocation104_spill] sm:$0xff] %v6298_v36  ;;  %3163 = vset.pattern.permute.xlu1 %v8923_v3  ;;  %v6305_v57 = vadd.f32 %v1331_v25, %v8924_v9  ;;  %v6308_v29 = vadd.f32 %v1332_v38, %v8926_v7  ;;  %v1459_v21 = vsel %vm1458_vm6, %v8908_v22, %v8928_v8  ;;  %v8931_v4 = vld [vmem:[#allocation214_spill] sm:$0xff]  ;;  %v8933_v20 = vld [vmem:[#allocation39_spill] sm:$0xff]  ;;  %v1803_v9 = vpop.permute.xlu1 %1802 }
 0x33a   : > { %v1679_v62 = vmul.f32 %v8929_v54, %v1655_v50  ;;  %2463 = vperm.xlu1 %3163, %v8739_v53   ;;  %8930 = vst [vmem:[#allocation164_spill] sm:$0xff] %v6316_v39  ;;  %v6319_v17 = vadd.f32 %v1419_v63, %v8931_v4  ;;  %v1416_v25 = vmul.f32 %v8933_v20, %v1392_v19  ;;  %v8934_v7 = vld [vmem:[#allocation54_spill] sm:$0xff]  ;;  %v8935_v38 = vld [vmem:[#allocation20_spill] sm:$0xff]  ;;  %v8937_v8 = vld [vmem:[#allocation239_spill] sm:$0xff] }
 0x33b   : > { %8925 = vst [vmem:[#allocation261_spill] sm:$0xff] %v6305_v57  ;;  %8927 = vst [vmem:[#allocation134_spill] sm:$0xff] %v6308_v29  ;;  %v1680_v16 = vmul.f32 %v8929_v54, %v1656_v46  ;;  %v1549_v3 = vsel %vm1547_vm1, %v8935_v38, %v8934_v7  ;;  %v1417_v22 = vmul.f32 %v8933_v20, %v1393_v34  ;;  %v8936_v50 = vld [vmem:[#allocation182_spill] sm:$0xff]  ;;  %v8941_v34 = vld [vmem:[#allocation197_spill] sm:$0xff] }
 0x33c   : > { %8932 = vst [vmem:[#allocation142_spill] sm:$0xff] %v6319_v17  ;;  %v1467_v53 = vsel %vm1458_vm6, %v8937_v8, %v8936_v50  ;;  %v8938_v10 = vld [vmem:[#allocation126_spill] sm:$0xff]  ;;  %v1478_v4 = vmul.f32 %v8897_v12, %v1459_v21  ;;  %v1501_v7 = vmul.f32 %v8853_v52, %v1477_v5  ;;  %v8940_v17 = vld [vmem:[#allocation193_spill] sm:$0xff]  ;;  %v8942_v29 = vld [vmem:[#allocation60_spill] sm:$0xff]  ;;  %v1691_v35 = vadd.f32 %v1679_v62, %v1517_v45  ;;  %v6353_v5 = vpop.permute.xlu0 %1871 }
 0x33d   : > { %v1808_v63 = vsel %vm1806_vm4, %v8938_v10, %v1803_v9  ;;  %v8939_v19 = vld [vmem:[#allocation18_spill] sm:$0xff]  ;;  %v1640_v57 = vsel %vm1632_vm7, %v8942_v29, %v8900_v42  ;;  %8945 = vst [vmem:[#allocation198_spill] sm:$0xff] %v6353_v5  ;;  %v1692_v21 = vadd.f32 %v1680_v16, %v1518_v49  ;;  %v8947_v42 = vld [vmem:[#allocation183_spill] sm:$0xff]  ;;  %v1870_v12 = vpop.permute.xlu1 %1869  ;;  %v8948_v59 = vld [vmem:[#allocation129_spill] sm:$0xff]  ;;  %v6364_v2 = vmul.f32 %v8848_v41, %v1467_v53 }
 0x33e   : > { %v1817_v46 = vsel %vm1806_vm4, %v1803_v9, %v8939_v19  ;;  %v1825_v48 = vmul.f32 %v8940_v17, %v1808_v63  ;;  %v8943_v36 = vld [vmem:[#allocation50_spill] sm:$0xff]  ;;  %2063 = vrot.lane.b32.xlu1 %v8628_v13, %s3340_s20  ;;  %v8946_v63 = vld [vmem:[#allocation113_spill] sm:$0xff]  ;;  %v8951_v13 = vld [vmem:[#allocation196_spill] sm:$0xff]  ;;  %v1654_v16 = vmul.f32 %v5691_v47, %v1640_v57  ;;  %v1643_v41 = vsel %vm1632_vm7, %v8904_v30, %v8942_v29 }
 0x33f   : > { %v1826_v20 = vmul.f32 %v8941_v34, %v1817_v46  ;;  %v1552_v44 = vsel %vm1547_vm1, %v8943_v36, %v8935_v38  ;;  %v8944_v9 = vld [vmem:[#allocation178_spill] sm:$0xff]  ;;  %v1723_v46 = vsel %vm1721_vm3, %v6201_v43, %v8946_v63  ;;  %v1428_v38 = vadd.f32 %v1416_v25, %v8948_v59  ;;  %v8949_v36 = vld [vmem:[#allocation133_spill] sm:$0xff]  ;;  %8950 = vst [vmem:[#allocation245_spill] sm:$0xff] %v6364_v2  ;;  %v8952_v63 = vld [vmem:[#allocation167_spill] sm:$0xff] }
 0x340   : > { %v1567_v39 = vmul.f32 %v8944_v9, %v1549_v3  ;;  %v1849_v45 = vmul.f32 %v8947_v42, %v1825_v48  ;;  %v1429_v3 = vadd.f32 %v1417_v22, %v8949_v36  ;;  %v1726_v49 = vsel %vm1721_vm3, %v8951_v13, %v6201_v43  ;;  %v8955_v36 = vld [vmem:[#allocation125_spill] sm:$0xff]  ;;  %v6384_v43 = vpop.permute.xlu0 %1883  ;;  %v8959_v57 = vld [vmem:[#allocation179_spill] sm:$0xff] }
 0x341   : > { %v1850_v62 = vmul.f32 %v8947_v42, %v1826_v20  ;;  %v1566_v5 = vmul.f32 %v8952_v63, %v1552_v44  ;;  %v1502_v59 = vmul.f32 %v8853_v52, %v1478_v4  ;;  %v8956_v22 = vld [vmem:[#allocation189_spill] sm:$0xff]  ;;  %8957 = vst [vmem:[#allocation215_spill] sm:$0xff] %v6384_v43  ;;  %v8958_v44 = vld [vmem:[#allocation143_spill] sm:$0xff]  ;;  %v1470_v52 = vsel %vm1458_vm6, %v8959_v57, %v8937_v8  ;;  %v8960_v4 = vld [vmem:[#allocation174_spill] sm:$0xff] }
 0x342   : > { %v6372_v48 = vadd.f32 %v1849_v45, %v1691_v35  ;;  %v1591_v25 = vmul.f32 %v8955_v36, %v1567_v39  ;;  %v1741_v53 = vmul.f32 %v8956_v22, %v1723_v46  ;;  %2467 = vperm.xlu1 %3163, %v5578_v14   ;;  %v1513_v35 = vadd.f32 %v1501_v7, %v8958_v44  ;;  %v1876_v45 = vpop.permute.xlu1 %1875  ;;  %v8962_v30 = vld [vmem:[#allocation173_spill] sm:$0xff]  ;;  %v8963_v39 = vld [vmem:[#allocation103_spill] sm:$0xff]  ;;  %v8969_v43 = vld [vmem:[#allocation150_spill] sm:$0xff] }
 0x343   : > { %v6374_v20 = vadd.f32 %v1850_v62, %v1692_v21  ;;  %v1740_v21 = vmul.f32 %v8960_v4, %v1726_v49  ;;  %v8961_v62 = vld [vmem:[#allocation225_spill] sm:$0xff]  ;;  %v1633_v46 = vsel %vm1632_vm7, %v8963_v39, %v8962_v30  ;;  %v1636_v7 = vsel %vm1632_vm7, %v8852_v58, %v8963_v39  ;;  %v8966_v30 = vld [vmem:[#allocation238_spill] sm:$0xff] }
 0x344   : > { %8953 = vst [vmem:[#allocation265_spill] sm:$0xff] %v6372_v48  ;;  %v6394_v29 = vmul.f32 %v8956_v22, %v8961_v62  ;;  %v6406_v8 = vsel %vm1891_vm8, %v1870_v12, %v1876_v45  ;;  %v8965_v49 = vld [vmem:[#allocation257_spill] sm:$0xff]  ;;  %v1653_v48 = vmul.f32 %v5749_v33, %v1643_v41  ;;  %v1590_v13 = vmul.f32 %v8955_v36, %v1566_v5  ;;  %v8968_v58 = vld [vmem:[#allocation226_spill] sm:$0xff] }
 0x345   : > { %8954 = vst [vmem:[#allocation199_spill] sm:$0xff] %v6374_v20  ;;  %8964 = vst [vmem:[#allocation156_spill] sm:$0xff] %v6406_v8  ;;  %v6410_v44 = vmul.f32 %v8960_v4, %v8965_v49  ;;  %v1678_v20 = vmul.f32 %v8929_v54, %v1654_v16  ;;  %v8967_v2 = vld [vmem:[#allocation169_spill] sm:$0xff]  ;;  %v1603_v8 = vadd.f32 %v1591_v25, %v1429_v3  ;;  %v8970_v4 = vmov 25   ;;  %v1888_v16 = vpop.permute.xlu0 %1887 }
 0x346   : > { %v1548_v47 = vsel %vm1547_vm1, %v8967_v2, %v8966_v30  ;;  %v1551_v39 = vsel %vm1547_vm1, %v8968_v58, %v8967_v2  ;;  %v1765_v22 = vmul.f32 %v8969_v43, %v1741_v53  ;;  %3165 = vset.pattern.permute.xlu1 %v8970_v4  ;;  %v1651_v41 = vmul.f32 %v8910_v51, %v1636_v7  ;;  %v1882_v33 = vpop.permute.xlu1 %1881  ;;  %v8971_v57 = vld [vmem:[#allocation81_spill] sm:$0xff]  ;;  %v8974_v58 = vld [vmem:[#allocation78_spill] sm:$0xff] }
 0x347   : > { %v1652_v5 = vmul.f32 %v8914_v55, %v1633_v46  ;;  %v1764_v36 = vmul.f32 %v8969_v43, %v1740_v21  ;;  %v1902_v30 = vsel %vm1891_vm8, %v1888_v16, %v1870_v12  ;;  %2507 = vperm.xlu1 %3165, %v5632_v15   ;;  %v1814_v2 = vsel %vm1806_vm4, %v8939_v19, %v8971_v57  ;;  %v8973_v19 = vld [vmem:[#allocation68_spill] sm:$0xff]  ;;  %v8975_v43 = vld [vmem:[#allocation71_spill] sm:$0xff] }
 0x348   : > { %v1915_v3 = vmul.f32 %v6394_v29, %v1902_v30  ;;  %v1893_v25 = vsel %vm1891_vm8, %v1882_v33, %v1888_v16  ;;  %v6440_v53 = vsel %vm1891_vm8, %v1876_v45, %v1882_v33  ;;  %v1677_v4 = vmul.f32 %v8929_v54, %v1653_v48 }
 0x349   : > { %8972 = vst [vmem:[#allocation269_spill] sm:$0xff] %v6440_v53  ;;  %v1602_v12 = vadd.f32 %v1590_v13, %v1428_v38  ;;  %v1811_v21 = vsel %vm1806_vm4, %v8971_v57, %v8938_v10  ;;  %v1914_v46 = vmul.f32 %v6410_v44, %v1893_v25  ;;  %v1821_v7 = vmul.f32 %v8940_v17, %v8973_v19  ;;  %v6453_v45 = vpop.permute.xlu0 %1966  ;;  %v8976_v25 = vld [vmem:[#allocation35_spill] sm:$0xff]  ;;  %v8977_v53 = vld [vmem:[#allocation209_spill] sm:$0xff] }
 0x34a   : > { %v1822_v16 = vmul.f32 %v8941_v34, %v8974_v58  ;;  %v1777_v30 = vadd.f32 %v1765_v22, %v1603_v8  ;;  %v1939_v33 = vmul.f32 %v8975_v43, %v1915_v3  ;;  %v1675_v54 = vmul.f32 %v8855_v26, %v1651_v41  ;;  %v6458_v57 = vpop.permute.xlu1 %1958 }
 0x34b   : > { %v1823_v38 = vmul.f32 %v8737_v24, %v1814_v2  ;;  %v1776_v13 = vadd.f32 %v1764_v36, %v1602_v12  ;;  %v1938_v10 = vmul.f32 %v8975_v43, %v1914_v46  ;;  %v3346_v48 = vmov 26  }
 0x34c   : > { %3167 = vset.pattern.permute.xlu1 %v3346_v48  ;;  %v1514_v19 = vadd.f32 %v1502_v59, %v8976_v25  ;;  %v6462_v58 = vmul.f32 %v8977_v53, %v1470_v52  ;;  %v1676_v22 = vmul.f32 %v8855_v26, %v1652_v5  ;;  %v6465_v8 = vadd.f32 %v1939_v33, %v1777_v30  ;;  %v8985_v48 = vld [vmem:[#allocation57_spill] sm:$0xff] }
 0x34d   : > { %2559 = vperm.xlu1 %3167, %v5632_v15   ;;  %v1690_v41 = vadd.f32 %v1678_v20, %v6127_v18  ;;  %v1562_v36 = vmul.f32 %v8952_v63, %v1551_v39  ;;  %v1824_v2 = vmul.f32 %v8868_v1, %v1811_v21  ;;  %v6471_v3 = vadd.f32 %v1938_v10, %v1776_v13  ;;  %v1975_v5 = vpop.permute.xlu0 %1974  ;;  %v8984_v13 = vld [vmem:[#allocation249_spill] sm:$0xff] }
 0x34e   : > { %8978 = vst [vmem:[#allocation246_spill] sm:$0xff] %v6465_v8  ;;  %v1689_v12 = vadd.f32 %v1677_v4, %v6133_v60  ;;  %v1563_v59 = vmul.f32 %v8944_v9, %v1548_v47  ;;  %v1845_v52 = vmul.f32 %v8867_v6, %v1821_v7  ;;  %v1846_v26 = vmul.f32 %v8867_v6, %v1822_v16  ;;  %v1965_v39 = vpop.permute.xlu1 %1964 }
 0x34f   : > { %8979 = vst [vmem:[#allocation73_spill] sm:$0xff] %v6471_v3  ;;  %v1687_v53 = vadd.f32 %v1675_v54, %v1513_v35  ;;  %v1847_v15 = vmul.f32 %v8947_v42, %v1823_v38  ;;  %v1981_v18 = vsel %vm1980_vm9, %v6163_v31, %v1975_v5  ;;  %v1990_v20 = vsel %vm1980_vm9, %v1975_v5, %v6079_v0  ;;  %v3286_v35 = vld [vmem:[%s7625_s2 + $0x8] sm:$0xff]  ;;  %v8989_v5 = vld [vmem:[#allocation262_spill] sm:$0xff]  ;;  %v9057_v3 = vld [vmem:[#allocation204_spill] sm:$0xff] }
 0x350   : > { %v1688_v60 = vadd.f32 %v1676_v22, %v1514_v19  ;;  %v1995_v47 = vmul.f32 %v8965_v49, %v1981_v18  ;;  %v1996_v4 = vmul.f32 %v8961_v62, %v1990_v20  ;;  %v1988_v6 = vsel %vm1980_vm9, %v6458_v57, %v1965_v39  ;;  %v8982_v54 = vld [vmem:[#allocation75_spill] sm:$0xff]  ;;  %v8986_v22 = vld [vmem:[#allocation250_spill] sm:$0xff] }
 0x351   : > { %2563 = vperm.xlu1 %3167, %v3286_v35   ;;  %v1848_v31 = vmul.f32 %v8947_v42, %v1824_v2  ;;  %v1997_v21 = vmul.f32 %v8819_v56, %v1988_v6  ;;  %v6497_v0 = vmul.f32 %v8737_v24, %v8819_v56  ;;  %v1857_v46 = vadd.f32 %v1845_v52, %v1687_v53  ;;  %v6501_v33 = vpop.permute.xlu0 %2041  ;;  %v8990_v18 = vld [vmem:[#allocation223_spill] sm:$0xff] }
 0x352   : > { %v1858_v7 = vadd.f32 %v1846_v26, %v1688_v60  ;;  %v2019_v16 = vmul.f32 %v8880_v32, %v1995_v47  ;;  %v2020_v30 = vmul.f32 %v8880_v32, %v1996_v4  ;;  %8981 = vst [vmem:[#allocation227_spill] sm:$0xff] %v6501_v33  ;;  %v6507_v42 = vsel %vm1369_vm5, %v8889_v37, %v8982_v54  ;;  %v6512_v19 = vpop.permute.xlu1 %1970  ;;  %v8987_v37 = vld [vmem:[#allocation171_spill] sm:$0xff]  ;;  %v8991_v4 = vld [vmem:[#allocation21_spill] sm:$0xff] }
 0x353   : > { %8980 = vst [vmem:[#allocation253_spill] sm:$0xff] %v6497_v0  ;;  %8983 = vst [vmem:[#allocation63_spill] sm:$0xff] %v6507_v42  ;;  %v1859_v38 = vadd.f32 %v1847_v15, %v1689_v12  ;;  %v2164_v10 = vmul.f32 %v6040_v23, %v8984_v13  ;;  %v2021_v25 = vmul.f32 %v8985_v48, %v1997_v21 }
 0x354   : > { %v2165_v2 = vmul.f32 %v6040_v23, %v8986_v22  ;;  %v2031_v32 = vadd.f32 %v2019_v16, %v1857_v46  ;;  %v2032_v52 = vadd.f32 %v2020_v30, %v1858_v7  ;;  %v1985_v26 = vsel %vm1980_vm9, %v1965_v39, %v6512_v19  ;;  %v8992_v16 = vld [vmem:[#allocation40_spill] sm:$0xff] }
 0x355   : > { %2567 = vperm.xlu1 %3167, %v5578_v14   ;;  %v6524_v12 = vsel %vm1369_vm5, %v8982_v54, %v8987_v37  ;;  %v2166_v53 = vmul.f32 %v6071_v61, %v8989_v5  ;;  %v2033_v15 = vadd.f32 %v2021_v25, %v1859_v38  ;;  %v1998_v23 = vmul.f32 %v8990_v18, %v1985_v26  ;;  %v2048_v14 = vpop.permute.xlu0 %2047  ;;  %v9000_v26 = vld [vmem:[#allocation83_spill] sm:$0xff] }
 0x356   : > { %8988 = vst [vmem:[#allocation248_spill] sm:$0xff] %v6524_v12  ;;  %v1396_v20 = vmul.f32 %v8885_v27, %v6507_v42  ;;  %v1860_v60 = vadd.f32 %v1848_v31, %v1690_v41  ;;  %v6531_v47 = vadd.f32 %v2164_v10, %v2031_v32  ;;  %v6533_v39 = vadd.f32 %v2165_v2, %v2032_v52  ;;  %v6541_v7 = vpop.permute.xlu1 %2159  ;;  %v8993_v41 = vld [vmem:[#allocation157_spill] sm:$0xff]  ;;  %v8996_v10 = vld [vmem:[#allocation84_spill] sm:$0xff]  ;;  %v8998_v32 = vld [vmem:[#allocation179_spill] sm:$0xff] }
 0x357   : > { %v2266_v6 = vmul.f32 %v6265_v28, %v8991_v4  ;;  %v2178_v35 = vadd.f32 %v2166_v53, %v2033_v15  ;;  %v2022_v21 = vmul.f32 %v8985_v48, %v1998_v23  ;;  %v2072_v46 = vsel %vm2065_vm10, %v6501_v33, %v2048_v14  ;;  %v9001_v5 = vld [vmem:[#allocation87_spill] sm:$0xff]  ;;  %v9003_v23 = vld [vmem:[#allocation38_spill] sm:$0xff]  ;;  %v9029_v33 = vld [vmem:[#allocation49_spill] sm:$0xff] }
 0x358   : > { %v1586_v27 = vmul.f32 %v8992_v16, %v1562_v36  ;;  %v1464_v31 = vsel %vm1458_vm6, %v8936_v50, %v8993_v41  ;;  %v2082_v30 = vmul.f32 %v6497_v0, %v2072_v46  ;;  %v8994_v54 = vmov 1   ;;  %v3287_v36 = vld [vmem:[%s7627_s4 + $0x8] sm:$0xff] }
 0x359   : > { %3169 = vset.pattern.permute.xlu1 %v8994_v54  ;;  %v6552_v38 = vmul.f32 %v8868_v1, %v8990_v18  ;;  %v1587_v13 = vmul.f32 %v8992_v16, %v1563_v59  ;;  %v2167_v25 = vmul.f32 %v6071_v61, %v8996_v10  ;;  %v2034_v22 = vadd.f32 %v2022_v21, %v1860_v60  ;;  %v8999_v59 = vld [vmem:[#allocation10_spill] sm:$0xff]  ;;  %v6573_v15 = vpop.permute.xlu0 %2053  ;;  %v9004_v4 = vld [vmem:[#allocation107_spill] sm:$0xff] }
 0x35a   : > { %2611 = vperm.xlu1 %3169, %v3287_v36   ;;  %v6560_v50 = vadd.f32 %v2266_v6, %v2178_v35  ;;  %v1397_v2 = vmul.f32 %v8895_v40, %v6524_v12  ;;  %v1461_v52 = vsel %vm1458_vm6, %v8993_v41, %v8998_v32  ;;  %v1553_v37 = vsel %vm1547_vm1, %v9000_v26, %v8999_v59  ;;  %v9005_v21 = vld [vmem:[#allocation23_spill] sm:$0xff]  ;;  %v9007_v41 = vld [vmem:[#allocation164_spill] sm:$0xff]  ;;  %v6586_v32 = vpop.permute.xlu1 %2203 }
 0x35b   : > { %8995 = vst [vmem:[#allocation149_spill] sm:$0xff] %v6552_v38  ;;  %v2106_v53 = vmul.f32 %v9001_v5, %v2082_v30  ;;  %9002 = vst [vmem:[#allocation119_spill] sm:$0xff] %v6573_v15  ;;  %v1420_v60 = vmul.f32 %v9003_v23, %v1396_v20  ;;  %v1485_v6 = vmul.f32 %v9004_v4, %v1464_v31  ;;  %v9006_v16 = vld [vmem:[#allocation47_spill] sm:$0xff]  ;;  %v9009_v20 = vld [vmem:[#allocation41_spill] sm:$0xff] }
 0x35c   : > { %8997 = vst [vmem:[#allocation140_spill] sm:$0xff] %v6560_v50  ;;  %v2179_v35 = vadd.f32 %v2167_v25, %v2034_v22  ;;  %v2069_v40 = vsel %vm2065_vm10, %v2048_v14, %v6573_v15  ;;  %v2267_v46 = vmul.f32 %v6265_v28, %v9005_v21  ;;  %v2210_v54 = vmul.f32 %v9007_v41, %v9006_v16  ;;  %v9008_v10 = vld [vmem:[#allocation95_spill] sm:$0xff]  ;;  %v9011_v14 = vld [vmem:[#allocation270_spill] sm:$0xff]  ;;  %v3288_v21 = vld [vmem:[%s7627_s4 + $0x10] sm:$0xff] }
 0x35d   : > { %v2118_v36 = vadd.f32 %v2106_v53, %v9008_v10  ;;  %v2083_v30 = vmul.f32 %v6552_v38, %v2069_v40  ;;  %v6590_v31 = vmul.f32 %v9009_v20, %v6462_v58  ;;  %v9010_v25 = vld [vmem:[#allocation267_spill] sm:$0xff]  ;;  %v1486_v59 = vmul.f32 %v9011_v14, %v1461_v52  ;;  %v9012_v53 = vld [vmem:[#allocation234_spill] sm:$0xff]  ;;  %v9016_v52 = vld [vmem:[#allocation104_spill] sm:$0xff] }
 0x35e   : > { %v6593_v22 = vadd.f32 %v1586_v27, %v9010_v25  ;;  %v1570_v4 = vmul.f32 %v8952_v63, %v1553_v37  ;;  %2615 = vperm.xlu1 %3169, %v3288_v21   ;;  %v1556_v40 = vsel %vm1547_vm1, %v9012_v53, %v9000_v26  ;;  %v6607_v27 = vpop.permute.xlu0 %2207  ;;  %v6609_v10 = vadd.f32 %v2267_v46, %v2179_v35  ;;  %v9017_v25 = vld [vmem:[#allocation192_spill] sm:$0xff]  ;;  %v9021_v53 = vld [vmem:[#allocation45_spill] sm:$0xff]  ;;  %v9031_v15 = vld [vmem:[#allocation266_spill] sm:$0xff] }
 0x35f   : > { %v6604_v16 = vadd.f32 %v2210_v54, %v2118_v36  ;;  %v2107_v58 = vmul.f32 %v9001_v5, %v2083_v30  ;;  %9014 = vst [vmem:[#allocation122_spill] sm:$0xff] %v6607_v27  ;;  %v6612_v63 = vadd.f32 %v1587_v13, %v9016_v52  ;;  %v1421_v37 = vmul.f32 %v9003_v23, %v1397_v2  ;;  %v9018_v21 = vld [vmem:[#allocation116_spill] sm:$0xff]  ;;  %v9019_v54 = vld [vmem:[#allocation141_spill] sm:$0xff]  ;;  %v9020_v36 = vld [vmem:[#allocation82_spill] sm:$0xff] }
 0x360   : > { %9015 = vst [vmem:[#allocation32_spill] sm:$0xff] %v6609_v10  ;;  %v1432_v14 = vadd.f32 %v1420_v60, %v9017_v25  ;;  %v1571_v50 = vmul.f32 %v8944_v9, %v9018_v21  ;;  %v1509_v26 = vmul.f32 %v9009_v20, %v1485_v6  ;;  %v1638_v30 = vsel %vm1632_vm7, %v9020_v36, %v9019_v54  ;;  %v9022_v46 = vld [vmem:[#allocation93_spill] sm:$0xff]  ;;  %v9023_v2 = vld [vmem:[#allocation159_spill] sm:$0xff]  ;;  %v9024_v60 = vld [vmem:[#allocation154_spill] sm:$0xff]  ;;  %v2252_v6 = vpop.permute.xlu1 %2251 }
 0x361   : > { %9013 = vst [vmem:[#allocation145_spill] sm:$0xff] %v6604_v16  ;;  %v2211_v35 = vmul.f32 %v9007_v41, %v9021_v53  ;;  %v2119_v13 = vadd.f32 %v2107_v58, %v9022_v46  ;;  %v1510_v52 = vmul.f32 %v9009_v20, %v1486_v59  ;;  %v1569_v23 = vmul.f32 %v9023_v2, %v1556_v40  ;;  %v9025_v10 = vld [vmem:[#allocation206_spill] sm:$0xff]  ;;  %v9028_v5 = vld [vmem:[#allocation9_spill] sm:$0xff]  ;;  %v9030_v46 = vld [vmem:[#allocation51_spill] sm:$0xff] }
 0x362   : > { %v1594_v25 = vmul.f32 %v9024_v60, %v1570_v4  ;;  %v1635_v9 = vsel %vm1632_vm7, %v9019_v54, %v9025_v10  ;;  %v9026_v21 = vmov 2   ;;  %v2262_v53 = vmul.f32 %v2252_v6, %v9028_v5  ;;  %v9032_v41 = vld [vmem:[#allocation53_spill] sm:$0xff]  ;;  %v6643_v54 = vpop.permute.xlu0 %2307  ;;  %v9036_v5 = vld [vmem:[#allocation19_spill] sm:$0xff] }
 0x363   : > { %3170 = vset.pattern.permute.xlu1 %v9026_v21  ;;  %v6634_v16 = vadd.f32 %v2211_v35, %v2119_v13  ;;  %v2263_v58 = vmul.f32 %v2252_v6, %v9029_v33  ;;  %v2264_v59 = vmul.f32 %v2252_v6, %v9030_v46  ;;  %v1433_v40 = vadd.f32 %v1421_v37, %v9031_v15  ;;  %v9034_v35 = vld [vmem:[#allocation121_spill] sm:$0xff]  ;;  %v9056_v42 = vld [vmem:[#allocation135_spill] sm:$0xff] }
 0x364   : > { %v1595_v4 = vmul.f32 %v9024_v60, %v1571_v50  ;;  %v1659_v27 = vmul.f32 %v8910_v51, %v1638_v30  ;;  %v2265_v12 = vmul.f32 %v2252_v6, %v9032_v41  ;;  %9033 = vst [vmem:[#allocation124_spill] sm:$0xff] %v6643_v54  ;;  %v1660_v21 = vmul.f32 %v8914_v55, %v1635_v9  ;;  %v9039_v15 = vld [vmem:[#allocation261_spill] sm:$0xff]  ;;  %v9040_v50 = vld [vmem:[#allocation134_spill] sm:$0xff]  ;;  %v1714_v30 = vpop.permute.xlu1 %1713  ;;  %v9042_v55 = vld [vmem:[#allocation264_spill] sm:$0xff] }
 0x365   : > { %9027 = vst [vmem:[#allocation188_spill] sm:$0xff] %v6634_v16  ;;  %v6647_v13 = vadd.f32 %v2262_v53, %v9034_v35  ;;  %v6650_v16 = vadd.f32 %v2263_v58, %v9036_v5  ;;  %v6653_v33 = vadd.f32 %v2264_v59, %v6531_v47  ;;  %v1521_v37 = vadd.f32 %v1509_v26, %v9039_v15  ;;  %v9043_v53 = vld [vmem:[#allocation17_spill] sm:$0xff]  ;;  %v9044_v58 = vld [vmem:[#allocation247_spill] sm:$0xff] }
 0x366   : > { %v1522_v46 = vadd.f32 %v1510_v52, %v9040_v50  ;;  %v1593_v51 = vmul.f32 %v9024_v60, %v1569_v23  ;;  %v6659_v41 = vadd.f32 %v2265_v12, %v6533_v39  ;;  %v1644_v9 = vsel %vm1632_vm7, %v9025_v10, %v9042_v55  ;;  %v9045_v23 = vld [vmem:[#allocation148_spill] sm:$0xff]  ;;  %v9046_v12 = vld [vmem:[#allocation174_spill] sm:$0xff]  ;;  %v9047_v59 = vld [vmem:[#allocation189_spill] sm:$0xff]  ;;  %v1890_v5 = vpop.permute.xlu0 %1889 }
 0x367   : > { %9035 = vst [vmem:[#allocation70_spill] sm:$0xff] %v6647_v13  ;;  %9037 = vst [vmem:[#allocation151_spill] sm:$0xff] %v6650_v16  ;;  %v1606_v6 = vadd.f32 %v1594_v25, %v1432_v14  ;;  %v1724_v47 = vsel %vm1721_vm3, %v1714_v30, %v9043_v53  ;;  %v1727_v26 = vsel %vm1721_vm3, %v9044_v58, %v1714_v30  ;;  %v9048_v10 = vld [vmem:[#allocation88_spill] sm:$0xff]  ;;  %v9049_v14 = vld [vmem:[#allocation166_spill] sm:$0xff] }
 0x368   : > { %9038 = vst [vmem:[#allocation128_spill] sm:$0xff] %v6653_v33  ;;  %9041 = vst [vmem:[#allocation214_spill] sm:$0xff] %v6659_v41  ;;  %v1607_v52 = vadd.f32 %v1595_v4, %v1433_v40  ;;  %v1683_v60 = vmul.f32 %v9045_v23, %v1659_v27  ;;  %v1744_v39 = vmul.f32 %v9046_v12, %v1727_v26  ;;  %v9050_v50 = vld [vmem:[#allocation215_spill] sm:$0xff]  ;;  %v9051_v41 = vld [vmem:[#allocation198_spill] sm:$0xff] }
 0x369   : > { %v1745_v35 = vmul.f32 %v9047_v59, %v1724_v47  ;;  %v1684_v15 = vmul.f32 %v9045_v23, %v1660_v21  ;;  %v1743_v25 = vmul.f32 %v9049_v14, %v9048_v10  ;;  %v1894_v53 = vsel %vm1891_vm8, %v9050_v50, %v1890_v5  ;;  %v9052_v4 = vld [vmem:[#allocation52_spill] sm:$0xff]  ;;  %v1805_v21 = vpop.permute.xlu1 %1804  ;;  %v9058_v38 = vld [vmem:[#allocation117_spill] sm:$0xff] }
 0x36a   : > { %v1903_v40 = vsel %vm1891_vm8, %v1890_v5, %v9051_v41  ;;  %v1768_v27 = vmul.f32 %v9052_v4, %v1744_v39  ;;  %v1918_v47 = vmul.f32 %v6410_v44, %v1894_v53  ;;  %v9053_v26 = vld [vmem:[#allocation16_spill] sm:$0xff]  ;;  %v1818_v39 = vsel %vm1806_vm4, %v1805_v21, %v9056_v42 }
 0x36b   : > { %v1769_v30 = vmul.f32 %v9052_v4, %v1745_v35  ;;  %v1919_v58 = vmul.f32 %v6394_v29, %v1903_v40  ;;  %v1657_v33 = vmul.f32 %v9053_v26, %v1644_v9  ;;  %v9054_v10 = vld [vmem:[#allocation120_spill] sm:$0xff]  ;;  %v1737_v9 = vmul.f32 %v9047_v59, %v9058_v38 }
 0x36c   : > { %v1736_v16 = vmul.f32 %v9046_v12, %v9054_v10  ;;  %v9055_v13 = vld [vmem:[#allocation8_spill] sm:$0xff]  ;;  %v1780_v5 = vadd.f32 %v1768_v27, %v1606_v6  ;;  %v1942_v53 = vmul.f32 %v9057_v3, %v1918_v47  ;;  %v1695_v26 = vadd.f32 %v1683_v60, %v1521_v37  ;;  %v9062_v37 = vld [vmem:[#allocation142_spill] sm:$0xff] }
 0x36d   : > { %v1809_v54 = vsel %vm1806_vm4, %v9055_v13, %v1805_v21  ;;  %v1781_v35 = vadd.f32 %v1769_v30, %v1607_v52  ;;  %v1943_v40 = vmul.f32 %v9057_v3, %v1919_v58  ;;  %v1830_v12 = vmul.f32 %v8941_v34, %v1818_v39  ;;  %v1878_v6 = vpop.permute.xlu1 %1877  ;;  %v9061_v52 = vld [vmem:[#allocation201_spill] sm:$0xff]  ;;  %v9063_v59 = vld [vmem:[#allocation76_spill] sm:$0xff] }
 0x36e   : > { %v1829_v10 = vmul.f32 %v8940_v17, %v1809_v54  ;;  %v1696_v0 = vadd.f32 %v1684_v15, %v1522_v46  ;;  %v1767_v13 = vmul.f32 %v9052_v4, %v1743_v25  ;;  %v6703_v8 = vadd.f32 %v1942_v53, %v1780_v5  ;;  %v9064_v25 = vld [vmem:[#allocation254_spill] sm:$0xff]  ;;  %v9066_v39 = vld [vmem:[#allocation152_spill] sm:$0xff] }
 0x36f   : > { %v6705_v42 = vadd.f32 %v1943_v40, %v1781_v35  ;;  %v1854_v30 = vmul.f32 %v9061_v52, %v1830_v12  ;;  %v1897_v38 = vsel %vm1891_vm8, %v1878_v6, %v9050_v50  ;;  %v1900_v54 = vsel %vm1891_vm8, %v9051_v41, %v1878_v6  ;;  %v9065_v12 = vld [vmem:[#allocation161_spill] sm:$0xff]  ;;  %v9067_v35 = vld [vmem:[#allocation115_spill] sm:$0xff] }
 0x370   : > { %9059 = vst [vmem:[#allocation20_spill] sm:$0xff] %v6703_v8  ;;  %v1853_v27 = vmul.f32 %v9061_v52, %v1829_v10  ;;  %v1605_v46 = vadd.f32 %v1593_v51, %v9062_v37  ;;  %v1641_v60 = vsel %vm1632_vm7, %v9042_v55, %v9020_v36  ;;  %v1916_v15 = vmul.f32 %v9063_v59, %v1900_v54  ;;  %v9070_v10 = vld [vmem:[#allocation200_spill] sm:$0xff]  ;;  %v9149_v8 = vld [vmem:[#allocation213_spill] sm:$0xff] }
 0x371   : > { %9060 = vst [vmem:[#allocation182_spill] sm:$0xff] %v6705_v42  ;;  %v1917_v4 = vmul.f32 %v9064_v25, %v1897_v38  ;;  %v1760_v47 = vmul.f32 %v9065_v12, %v1736_v16  ;;  %v1761_v58 = vmul.f32 %v9065_v12, %v1737_v9  ;;  %v6726_v21 = vadd.f32 %v1854_v30, %v1696_v0  ;;  %v1886_v55 = vpop.permute.xlu1 %1885  ;;  %v9068_v16 = vld [vmem:[#allocation136_spill] sm:$0xff]  ;;  %v9073_v30 = vld [vmem:[#allocation245_spill] sm:$0xff]  ;;  %v9074_v38 = vld [vmem:[#allocation138_spill] sm:$0xff]  ;;  %v6756_v12 = vpop.permute.xlu0 %2045 }
 0x372   : > { %v6724_v50 = vadd.f32 %v1853_v27, %v1695_v26  ;;  %v1779_v41 = vadd.f32 %v1767_v13, %v1605_v46  ;;  %v1827_v51 = vmul.f32 %v8737_v24, %v9066_v39  ;;  %v1940_v5 = vmul.f32 %v9057_v3, %v1916_v15  ;;  %v9069_v26 = vld [vmem:[#allocation26_spill] sm:$0xff]  ;;  %v9075_v15 = vld [vmem:[#allocation268_spill] sm:$0xff] }
 0x373   : > { %v1941_v36 = vmul.f32 %v9057_v3, %v1917_v4  ;;  %v1658_v53 = vmul.f32 %v9067_v35, %v1641_v60  ;;  %v1681_v40 = vmul.f32 %v9045_v23, %v1657_v33  ;;  %v1892_v9 = vsel %vm1891_vm8, %v9068_v16, %v1886_v55 }
 0x374   : > { %v1901_v0 = vsel %vm1891_vm8, %v1886_v55, %v9069_v26  ;;  %v6741_v13 = vadd.f32 %v1940_v5, %v9070_v10  ;;  %v1910_v3 = vmul.f32 %v6410_v44, %v1892_v9  ;;  %v1508_v33 = vmul.f32 %v9009_v20, %v9073_v30  ;;  %v9076_v44 = vld [vmem:[#allocation153_spill] sm:$0xff]  ;;  %v9077_v20 = vld [vmem:[#allocation216_spill] sm:$0xff]  ;;  %v9078_v5 = vld [vmem:[#allocation99_spill] sm:$0xff] }
 0x375   : > { %v6743_v6 = vadd.f32 %v1941_v36, %v1779_v41  ;;  %v1911_v27 = vmul.f32 %v6394_v29, %v1901_v0  ;;  %v1519_v54 = vadd.f32 %v6590_v31, %v9074_v38  ;;  %v1772_v37 = vadd.f32 %v1760_v47, %v6593_v22  ;;  %v6760_v39 = vpop.permute.xlu1 %1960  ;;  %v9079_v36 = vld [vmem:[#allocation131_spill] sm:$0xff]  ;;  %v9080_v22 = vld [vmem:[#allocation96_spill] sm:$0xff]  ;;  %v9083_v9 = vld [vmem:[#allocation97_spill] sm:$0xff] }
 0x376   : > { %9071 = vst [vmem:[#allocation239_spill] sm:$0xff] %v6741_v13  ;;  %v1773_v46 = vadd.f32 %v1761_v58, %v6612_v63  ;;  %v1851_v60 = vmul.f32 %v9061_v52, %v1827_v51  ;;  %v1828_v4 = vmul.f32 %v8868_v1, %v9075_v15  ;;  %v1934_v41 = vmul.f32 %v9076_v44, %v1910_v3  ;;  %v9084_v26 = vld [vmem:[#allocation170_spill] sm:$0xff]  ;;  %v9085_v10 = vld [vmem:[#allocation260_spill] sm:$0xff]  ;;  %v9089_v15 = vld [vmem:[#allocation187_spill] sm:$0xff] }
 0x377   : > { %9072 = vst [vmem:[#allocation126_spill] sm:$0xff] %v6743_v6  ;;  %v1935_v29 = vmul.f32 %v9076_v44, %v1911_v27  ;;  %v1070_v31 = vadd.f32 %v9078_v5, %v9077_v20  ;;  %v1342_v47 = vadd.f32 %v9080_v22, %v9079_v36  ;;  %v1682_v63 = vmul.f32 %v9045_v23, %v1658_v53  ;;  %v9086_v3 = vld [vmem:[#allocation4_spill] sm:$0xff]  ;;  %v9088_v23 = vld [vmem:[#allocation5_spill] sm:$0xff]  ;;  %v9090_v44 = vld [vmem:[#allocation54_spill] sm:$0xff] }
 0x378   : > { %v1989_v58 = vsel %vm1980_vm9, %v6760_v39, %v6453_v45  ;;  %v1693_v51 = vadd.f32 %v1681_v40, %v1519_v54  ;;  %v6771_v55 = vadd.f32 %v1934_v41, %v1772_v37  ;;  %v2146_v0 = vmul.f32 %v9084_v26, %v9083_v9  ;;  %v9087_v30 = vld [vmem:[#allocation144_spill] sm:$0xff]  ;;  %v9094_v36 = vld [vmem:[#allocation43_spill] sm:$0xff]  ;;  %v9096_v9 = vld [vmem:[#allocation113_spill] sm:$0xff] }
 0x379   : > { %v6773_v35 = vadd.f32 %v1935_v29, %v1773_v46  ;;  %v2001_v16 = vmul.f32 %v8819_v56, %v1989_v58  ;;  %v1391_v27 = vmul.f32 %v9086_v3, %v9085_v10  ;;  %v1390_v53 = vmul.f32 %v9088_v23, %v9087_v30  ;;  %v9091_v46 = vld [vmem:[#allocation242_spill] sm:$0xff]  ;;  %v6788_v41 = vpop.permute.xlu1 %1972  ;;  %v9092_v29 = vld [vmem:[#allocation263_spill] sm:$0xff]  ;;  %v9093_v20 = vld [vmem:[#allocation180_spill] sm:$0xff] }
 0x37a   : > { %9081 = vst [vmem:[#allocation18_spill] sm:$0xff] %v6771_v55  ;;  %v1520_v38 = vadd.f32 %v1508_v33, %v1342_v47  ;;  %v1558_v40 = vsel %vm1547_vm1, %v9090_v44, %v9089_v15  ;;  %v1863_v54 = vadd.f32 %v1851_v60, %v1693_v51  ;;  %v1852_v37 = vmul.f32 %v9061_v52, %v1828_v4  ;;  %v9095_v47 = vld [vmem:[#allocation111_spill] sm:$0xff]  ;;  %v6802_v4 = vpop.permute.xlu0 %2057  ;;  %v9098_v3 = vld [vmem:[#allocation50_spill] sm:$0xff]  ;;  %v9100_v44 = vld [vmem:[#allocation196_spill] sm:$0xff] }
 0x37b   : > { %9082 = vst [vmem:[#allocation193_spill] sm:$0xff] %v6773_v35  ;;  %v2025_v56 = vmul.f32 %v9091_v46, %v2001_v16  ;;  %v2147_v5 = vmul.f32 %v9093_v20, %v9092_v29  ;;  %v1252_v22 = vadd.f32 %v9094_v36, %v1070_v31  ;;  %v1986_v33 = vsel %vm1980_vm9, %v6453_v45, %v6788_v41  ;;  %v9097_v26 = vld [vmem:[#allocation39_spill] sm:$0xff]  ;;  %v9099_v23 = vld [vmem:[#allocation158_spill] sm:$0xff]  ;;  %v9166_v6 = vld [vmem:[#allocation160_spill] sm:$0xff] }
 0x37c   : > { %v1694_v58 = vadd.f32 %v1682_v63, %v1520_v38  ;;  %v1732_v52 = vsel %vm1721_vm3, %v9096_v9, %v9095_v47  ;;  %v2170_v60 = vmul.f32 %v6541_v7, %v2146_v0  ;;  %v2002_v16 = vmul.f32 %v8990_v18, %v1986_v33  ;;  %v9104_v9 = vld [vmem:[#allocation125_spill] sm:$0xff] }
 0x37d   : > { %v2037_v51 = vadd.f32 %v2025_v56, %v1863_v54  ;;  %v1415_v31 = vmul.f32 %v9097_v26, %v1391_v27  ;;  %v1414_v63 = vmul.f32 %v9097_v26, %v1390_v53  ;;  %v1555_v45 = vsel %vm1547_vm1, %v9089_v15, %v9098_v3  ;;  %v1977_v27 = vpop.permute.xlu1 %1976  ;;  %v9102_v56 = vld [vmem:[#allocation165_spill] sm:$0xff] }
 0x37e   : > { %v1564_v38 = vmul.f32 %v9099_v23, %v1558_v40  ;;  %v1729_v0 = vsel %vm1721_vm3, %v9095_v47, %v9100_v44  ;;  %v1864_v29 = vadd.f32 %v1852_v37, %v1694_v58  ;;  %v2026_v18 = vmul.f32 %v9091_v46, %v2002_v16  ;;  %v2062_v26 = vpop.permute.xlu0 %2061  ;;  %v9182_v13 = vld [vmem:[#allocation237_spill] sm:$0xff] }
 0x37f   : > { %v6816_v54 = vadd.f32 %v2170_v60, %v2037_v51  ;;  %v1738_v53 = vmul.f32 %v9102_v56, %v1732_v52  ;;  %v1982_v20 = vsel %vm1980_vm9, %v6512_v19, %v1977_v27  ;;  %v1991_v15 = vsel %vm1980_vm9, %v1977_v27, %v6458_v57  ;;  %v9105_v60 = vld [vmem:[#allocation156_spill] sm:$0xff]  ;;  %v9106_v51 = vld [vmem:[#allocation33_spill] sm:$0xff] }
 0x380   : > { %v6828_v40 = vmul.f32 %v8941_v34, %v8961_v62  ;;  %v2171_v37 = vmul.f32 %v6541_v7, %v2147_v5  ;;  %v2038_v36 = vadd.f32 %v2026_v18, %v1864_v29  ;;  %v1999_v58 = vmul.f32 %v8965_v49, %v1982_v20  ;;  %v9108_v18 = vld [vmem:[#allocation150_spill] sm:$0xff]  ;;  %v9111_v27 = vld [vmem:[#allocation265_spill] sm:$0xff]  ;;  %v9112_v20 = vld [vmem:[#allocation199_spill] sm:$0xff] }
 0x381   : > { %9101 = vst [vmem:[#allocation197_spill] sm:$0xff] %v6816_v54  ;;  %v2000_v33 = vmul.f32 %v8961_v62, %v1991_v15  ;;  %v1565_v47 = vmul.f32 %v9023_v2, %v1555_v45  ;;  %v1588_v52 = vmul.f32 %v9104_v9, %v1564_v38  ;;  %v1739_v19 = vmul.f32 %v9049_v14, %v1729_v0  ;;  %v2044_v44 = vpop.permute.xlu1 %2043  ;;  %v9109_v45 = vld [vmem:[#allocation224_spill] sm:$0xff] }
 0x382   : > { %9103 = vst [vmem:[#allocation60_spill] sm:$0xff] %v6828_v40  ;;  %v1912_v57 = vmul.f32 %v9063_v59, %v9105_v60  ;;  %v1427_v16 = vadd.f32 %v1415_v31, %v9106_v51  ;;  %v6839_v3 = vadd.f32 %v2171_v37, %v2038_v36  ;;  %v2023_v5 = vmul.f32 %v8985_v48, %v1999_v58  ;;  %v9110_v59 = vld [vmem:[#allocation86_spill] sm:$0xff]  ;;  %v9113_v36 = vld [vmem:[#allocation269_spill] sm:$0xff]  ;;  %v9114_v51 = vld [vmem:[#allocation175_spill] sm:$0xff] }
 0x383   : > { %v2024_v23 = vmul.f32 %v8985_v48, %v2000_v33  ;;  %v1426_v29 = vadd.f32 %v1414_v63, %v1252_v22  ;;  %v1762_v2 = vmul.f32 %v9108_v18, %v1738_v53  ;;  %v2168_v38 = vmul.f32 %v6071_v61, %v9109_v45 }
 0x384   : > { %9107 = vst [vmem:[#allocation178_spill] sm:$0xff] %v6839_v3  ;;  %v2076_v0 = vsel %vm2065_vm10, %v2062_v26, %v2044_v44  ;;  %v2169_v31 = vmul.f32 %v6071_v61, %v9110_v59  ;;  %v2035_v56 = vadd.f32 %v2023_v5, %v9111_v27  ;;  %v1589_v48 = vmul.f32 %v9104_v9, %v1565_v47  ;;  %v9115_v59 = vld [vmem:[#allocation7_spill] sm:$0xff] }
 0x385   : > { %v2036_v15 = vadd.f32 %v2024_v23, %v9112_v20  ;;  %v2089_v37 = vmul.f32 %v6828_v40, %v2076_v0  ;;  %v1600_v22 = vadd.f32 %v1588_v52, %v1426_v29  ;;  %v1763_v63 = vmul.f32 %v9108_v18, %v1739_v19  ;;  %v2050_v45 = vpop.permute.xlu1 %2049  ;;  %v9116_v0 = vld [vmem:[#allocation92_spill] sm:$0xff]  ;;  %v9117_v52 = vld [vmem:[#allocation230_spill] sm:$0xff]  ;;  %v9119_v29 = vld [vmem:[#allocation253_spill] sm:$0xff] }
 0x386   : > { %v1936_v53 = vmul.f32 %v8975_v43, %v1912_v57  ;;  %v1913_v58 = vmul.f32 %v9064_v25, %v9113_v36  ;;  %v2180_v33 = vadd.f32 %v2168_v38, %v2035_v56  ;;  %v2268_v23 = vmul.f32 %v6265_v28, %v9115_v59  ;;  %v9118_v57 = vld [vmem:[#allocation246_spill] sm:$0xff]  ;;  %v9202_v40 = vld [vmem:[#allocation211_spill] sm:$0xff] }
 0x387   : > { %v2181_v60 = vadd.f32 %v2169_v31, %v2036_v15  ;;  %v2113_v61 = vmul.f32 %v9114_v51, %v2089_v37  ;;  %v1774_v5 = vadd.f32 %v1762_v2, %v1600_v22  ;;  %v2269_v47 = vmul.f32 %v6265_v28, %v9116_v0  ;;  %v9121_v2 = vld [vmem:[#allocation80_spill] sm:$0xff]  ;;  %v9122_v31 = vld [vmem:[#allocation163_spill] sm:$0xff] }
 0x388   : > { %v2073_v9 = vsel %vm2065_vm10, %v2044_v44, %v2050_v45  ;;  %v2217_v19 = vmul.f32 %v6586_v32, %v9117_v52  ;;  %v6871_v38 = vmul.f32 %v8940_v17, %v8965_v49  ;;  %v2190_v27 = vmul.f32 %v9122_v31, %v9121_v2  ;;  %v9132_v52 = vld [vmem:[#allocation168_spill] sm:$0xff] }
 0x389   : > { %v2125_v25 = vadd.f32 %v2113_v61, %v9118_v57  ;;  %v2086_v18 = vmul.f32 %v9119_v29, %v2073_v9  ;;  %v1601_v56 = vadd.f32 %v1589_v48, %v1427_v16  ;;  %v6875_v20 = vadd.f32 %v2268_v23, %v2180_v33  ;;  %v2056_v36 = vpop.permute.xlu1 %2055  ;;  %v9126_v61 = vld [vmem:[#allocation176_spill] sm:$0xff]  ;;  %v9129_v23 = vld [vmem:[#allocation243_spill] sm:$0xff]  ;;  %v9131_v9 = vld [vmem:[#allocation69_spill] sm:$0xff] }
 0x38a   : > { %9120 = vst [vmem:[#allocation183_spill] sm:$0xff] %v6871_v38  ;;  %v6877_v28 = vadd.f32 %v2269_v47, %v2181_v60  ;;  %v1948_v44 = vadd.f32 %v1936_v53, %v1774_v5  ;;  %v1937_v15 = vmul.f32 %v8975_v43, %v1913_v58  ;;  %v6885_v59 = vmul.f32 %v8965_v49, %v9126_v61  ;;  %v9127_v43 = vld [vmem:[#allocation149_spill] sm:$0xff]  ;;  %v9128_v5 = vld [vmem:[#allocation66_spill] sm:$0xff] }
 0x38b   : > { %9123 = vst [vmem:[#allocation129_spill] sm:$0xff] %v6875_v20  ;;  %v6880_v37 = vadd.f32 %v2217_v19, %v2125_v25  ;;  %v2110_v22 = vmul.f32 %v9114_v51, %v2086_v18  ;;  %v1775_v0 = vadd.f32 %v1763_v63, %v1601_v56  ;;  %v2067_v16 = vsel %vm2065_vm10, %v2056_v36, %v2062_v26  ;;  %v9133_v19 = vld [vmem:[#allocation67_spill] sm:$0xff]  ;;  %v9134_v57 = vld [vmem:[#allocation185_spill] sm:$0xff]  ;;  %v9135_v25 = vld [vmem:[#allocation258_spill] sm:$0xff] }
 0x38c   : > { %9124 = vst [vmem:[#allocation133_spill] sm:$0xff] %v6877_v28  ;;  %v2070_v48 = vsel %vm2065_vm10, %v2050_v45, %v2056_v36  ;;  %v2214_v53 = vmul.f32 %v6586_v32, %v2190_v27  ;;  %v2088_v60 = vmul.f32 %v6871_v38, %v2067_v16  ;;  %v6896_v47 = vmul.f32 %v9129_v23, %v9128_v5  ;;  %v9138_v36 = vld [vmem:[#allocation244_spill] sm:$0xff]  ;;  %v9141_v5 = vld [vmem:[#allocation233_spill] sm:$0xff]  ;;  %v9204_v38 = vld [vmem:[#allocation207_spill] sm:$0xff] }
 0x38d   : > { %9125 = vst [vmem:[#allocation167_spill] sm:$0xff] %v6880_v37  ;;  %v2122_v33 = vadd.f32 %v2110_v22, %v1948_v44  ;;  %v2087_v58 = vmul.f32 %v9127_v43, %v2070_v48  ;;  %v2191_v63 = vmul.f32 %v9132_v52, %v9131_v9  ;;  %v2192_v26 = vmul.f32 %v9134_v57, %v9133_v19  ;;  %v6910_v44 = vpop.permute.xlu1 %2259  ;;  %v9137_v22 = vld [vmem:[#allocation62_spill] sm:$0xff]  ;;  %v9140_v48 = vld [vmem:[#allocation64_spill] sm:$0xff]  ;;  %v9143_v19 = vld [vmem:[#allocation31_spill] sm:$0xff] }
 0x38e   : > { %9130 = vst [vmem:[#allocation143_spill] sm:$0xff] %v6896_v47  ;;  %v6904_v45 = vmul.f32 %v9049_v14, %v9135_v25  ;;  %v1949_v18 = vadd.f32 %v1937_v15, %v1775_v0  ;;  %v2112_v56 = vmul.f32 %v9114_v51, %v2088_v60  ;;  %v6914_v16 = vmul.f32 %v9138_v36, %v9137_v22  ;;  %v9144_v14 = vld [vmem:[#allocation236_spill] sm:$0xff]  ;;  %v9146_v15 = vld [vmem:[#allocation174_spill] sm:$0xff]  ;;  %v9148_v22 = vld [vmem:[#allocation229_spill] sm:$0xff] }
 0x38f   : > { %v6906_v2 = vadd.f32 %v2214_v53, %v2122_v33  ;;  %v2111_v27 = vmul.f32 %v9114_v51, %v2087_v58  ;;  %v6918_v9 = vmul.f32 %v9141_v5, %v9140_v48  ;;  %v6922_v42 = vmul.f32 %v9144_v14, %v9143_v19  ;;  %v9147_v58 = vld [vmem:[#allocation73_spill] sm:$0xff]  ;;  %v9150_v48 = vld [vmem:[#allocation231_spill] sm:$0xff]  ;;  %v9162_v37 = vld [vmem:[#allocation212_spill] sm:$0xff] }
 0x390   : > { %9139 = vst [vmem:[#allocation173_spill] sm:$0xff] %v6914_v16  ;;  %v6926_v0 = vmul.f32 %v9146_v15, %v6885_v59  ;;  %v2215_v51 = vmul.f32 %v6586_v32, %v2191_v63  ;;  %v2216_v53 = vmul.f32 %v6586_v32, %v2192_v26  ;;  %v2124_v60 = vadd.f32 %v2112_v56, %v9147_v58  ;;  %v9152_v32 = vld [vmem:[#allocation77_spill] sm:$0xff]  ;;  %v9196_v16 = vld [vmem:[#allocation186_spill] sm:$0xff] }
 0x391   : > { %9136 = vst [vmem:[#allocation225_spill] sm:$0xff] %v6906_v2  ;;  %9142 = vst [vmem:[#allocation103_spill] sm:$0xff] %v6918_v9  ;;  %v2123_v33 = vadd.f32 %v2111_v27, %v1949_v18  ;;  %v6933_v28 = vmul.f32 %v9149_v8, %v9148_v22  ;;  %v9151_v9 = vld [vmem:[#allocation217_spill] sm:$0xff]  ;;  %v6941_v19 = vmul.f32 %v8737_v24, %v9141_v5  ;;  %v9154_v18 = vld [vmem:[#allocation90_spill] sm:$0xff] }
 0x392   : > { %9145 = vst [vmem:[#allocation257_spill] sm:$0xff] %v6922_v42  ;;  %v6937_v20 = vmul.f32 %v9151_v9, %v9150_v48  ;;  %v6945_v63 = vmul.f32 %v8941_v34, %v9144_v14  ;;  %v6949_v26 = vmul.f32 %v9129_v23, %v9152_v32  ;;  %v9155_v27 = vld [vmem:[#allocation220_spill] sm:$0xff]  ;;  %v6957_v58 = vadd.f32 %v2216_v53, %v2124_v60  ;;  %v9159_v48 = vld [vmem:[#allocation221_spill] sm:$0xff]  ;;  %v9163_v2 = vld [vmem:[#allocation155_spill] sm:$0xff] }
 0x393   : > { %v6953_v56 = vmul.f32 %v9155_v27, %v9154_v18  ;;  %v6955_v15 = vadd.f32 %v2215_v51, %v2123_v33  ;;  %v9158_v22 = vld [vmem:[#allocation208_spill] sm:$0xff]  ;;  %v9160_v42 = vld [vmem:[#allocation25_spill] sm:$0xff]  ;;  %v6969_v32 = vmul.f32 %v9163_v2, %v9162_v37  ;;  %v6975_v51 = vpop.permute.xlu1 %2303  ;;  %v9171_v60 = vld [vmem:[#allocation127_spill] sm:$0xff] }
 0x394   : > { %9153 = vst [vmem:[#allocation238_spill] sm:$0xff] %v6949_v26  ;;  %9157 = vst [vmem:[#allocation226_spill] sm:$0xff] %v6957_v58  ;;  %v6961_v24 = vmul.f32 %v9159_v48, %v9158_v22  ;;  %v6965_v34 = vmul.f32 %v9138_v36, %v9160_v42  ;;  %v9165_v26 = vld [vmem:[#allocation123_spill] sm:$0xff]  ;;  %v9169_v53 = vld [vmem:[#allocation28_spill] sm:$0xff]  ;;  %v6983_v22 = vmul.f32 %v9126_v61, %v9171_v60 }
 0x395   : > { %9156 = vst [vmem:[#allocation169_spill] sm:$0xff] %v6955_v15  ;;  %9164 = vst [vmem:[#allocation68_spill] sm:$0xff] %v6969_v32  ;;  %v6973_v18 = vmul.f32 %v9166_v6, %v9165_v26  ;;  %v6979_v33 = vmul.f32 %v9141_v5, %v9169_v53  ;;  %v9173_v42 = vld [vmem:[#allocation94_spill] sm:$0xff]  ;;  %v9176_v37 = vld [vmem:[#allocation24_spill] sm:$0xff]  ;;  %v2543_v60 = vmul.f32 %v8868_v1, %v9135_v25 }
 0x396   : > { %9161 = vst [vmem:[#allocation81_spill] sm:$0xff] %v6965_v34  ;;  %9168 = vst [vmem:[#allocation71_spill] sm:$0xff] %v6975_v51  ;;  %v9174_v34 = vld [vmem:[#allocation177_spill] sm:$0xff]  ;;  %v6991_v15 = vmul.f32 %v9144_v14, %v9176_v37  ;;  %v9178_v26 = vld [vmem:[#allocation218_spill] sm:$0xff] }
 0x397   : > { %9167 = vst [vmem:[#allocation78_spill] sm:$0xff] %v6973_v18  ;;  %9170 = vst [vmem:[#allocation35_spill] sm:$0xff] %v6979_v33  ;;  %v6987_v58 = vmul.f32 %v9174_v34, %v9173_v42  ;;  %v9179_v18 = vld [vmem:[#allocation235_spill] sm:$0xff]  ;;  %v9184_v42 = vld [vmem:[#allocation98_spill] sm:$0xff] }
 0x398   : > { %9172 = vst [vmem:[#allocation209_spill] sm:$0xff] %v6983_v22  ;;  %9177 = vst [vmem:[#allocation249_spill] sm:$0xff] %v6991_v15  ;;  %v6995_v32 = vmul.f32 %v9179_v18, %v9178_v26  ;;  %v9181_v51 = vld [vmem:[#allocation219_spill] sm:$0xff]  ;;  %v2544_v22 = vmul.f32 %v8940_v17, %v6885_v59  ;;  %v9188_v15 = vld [vmem:[#allocation241_spill] sm:$0xff] }
 0x399   : > { %9175 = vst [vmem:[#allocation75_spill] sm:$0xff] %v6987_v58  ;;  %v6999_v53 = vmul.f32 %v9182_v13, %v9181_v51  ;;  %v9185_v58 = vld [vmem:[#allocation240_spill] sm:$0xff]  ;;  %v9187_v37 = vld [vmem:[#allocation79_spill] sm:$0xff]  ;;  %v9192_v51 = vld [vmem:[#allocation102_spill] sm:$0xff] }
 0x39a   : > { %9180 = vst [vmem:[#allocation57_spill] sm:$0xff] %v6995_v32  ;;  %v7007_v3 = vmul.f32 %v9185_v58, %v9184_v42  ;;  %v7011_v54 = vmul.f32 %v9188_v15, %v9187_v37  ;;  %v9190_v26 = vld [vmem:[#allocation100_spill] sm:$0xff]  ;;  %v9191_v32 = vld [vmem:[#allocation203_spill] sm:$0xff]  ;;  %v9194_v1 = vld [vmem:[#allocation101_spill] sm:$0xff] }
 0x39b   : > { %9183 = vst [vmem:[#allocation250_spill] sm:$0xff] %v6999_v53  ;;  %v7015_v33 = vmul.f32 %v9191_v32, %v9190_v26  ;;  %v9193_v53 = vld [vmem:[#allocation202_spill] sm:$0xff]  ;;  %v7023_v55 = vmul.f32 %v9122_v31, %v9194_v1  ;;  %v9199_v26 = vld [vmem:[#allocation105_spill] sm:$0xff] }
 0x39c   : > { %9186 = vst [vmem:[#allocation171_spill] sm:$0xff] %v7007_v3  ;;  %9189 = vst [vmem:[#allocation262_spill] sm:$0xff] %v7011_v54  ;;  %v7019_v35 = vmul.f32 %v9193_v53, %v9192_v51  ;;  %v9195_v17 = vld [vmem:[#allocation6_spill] sm:$0xff]  ;;  %v9197_v3 = vld [vmem:[#allocation29_spill] sm:$0xff] }
 0x39d   : > { %v7027_v42 = vmul.f32 %v9196_v16, %v9195_v17  ;;  %v7031_v37 = vmul.f32 %v9132_v52, %v9197_v3  ;;  %v9198_v54 = vld [vmem:[#allocation181_spill] sm:$0xff]  ;;  %v9201_v51 = vld [vmem:[#allocation108_spill] sm:$0xff]  ;;  %v9203_v1 = vld [vmem:[#allocation110_spill] sm:$0xff]  ;;  %v7053_v52 = vpop.permute.xlu0 %2359 }
 0x39e   : > { %v7035_v32 = vmul.f32 %v9134_v57, %v9198_v54  ;;  %v9200_v47 = vld [vmem:[#allocation205_spill] sm:$0xff]  ;;  %v7043_v31 = vmul.f32 %v9202_v40, %v9201_v51  ;;  %v7047_v16 = vmul.f32 %v9204_v38, %v9203_v1  ;;  %v9206_v17 = vld [vmem:[#allocation106_spill] sm:$0xff]  ;;  %v7055_v54 = vpop.permute.xlu1 %2351  ;;  %v9209_v57 = vld [vmem:[#allocation112_spill] sm:$0xff] }
 0x39f   : > { %v7039_v53 = vmul.f32 %v9200_v47, %v9199_v26  ;;  %v9207_v43 = vld [vmem:[#allocation210_spill] sm:$0xff]  ;;  %9208 = vst [vmem:[#allocation21_spill] sm:$0xff] %v7055_v54  ;;  %v7059_v47 = vmul.f32 %v9149_v8, %v9209_v57  ;;  %v9217_v54 = vld [vmem:[#allocation184_spill] sm:$0xff]  ;;  %v9218_v57 = vld [vmem:[#allocation109_spill] sm:$0xff] }
 0x3a0   : > { %9205 = vst [vmem:[#allocation223_spill] sm:$0xff] %v7047_v16  ;;  %v7051_v3 = vmul.f32 %v9207_v43, %v9206_v17  ;;  %v9210_v26 = vld [vmem:[#allocation162_spill] sm:$0xff]  ;;  %v9216_v17 = vld [vmem:[#allocation12_spill] sm:$0xff]  ;;  %v7079_v8 = vmul.f32 %v9174_v34, %v9217_v54  ;;  %v9223_v54 = vld [vmem:[#allocation27_spill] sm:$0xff] }
 0x3a1   : > { %v7063_v40 = vmul.f32 %v9159_v48, %v9210_v26  ;;  %v9212_v51 = vld [vmem:[#allocation194_spill] sm:$0xff]  ;;  %v7075_v16 = vmul.f32 %v9163_v2, %v9216_v17  ;;  %v7083_v48 = vmul.f32 %v9166_v6, %v9218_v57  ;;  %v9219_v26 = vld [vmem:[#allocation195_spill] sm:$0xff]  ;;  %v9222_v17 = vld [vmem:[#allocation65_spill] sm:$0xff]  ;;  %v7103_v6 = vmul.f32 %v9185_v58, %v9223_v54 }
 0x3a2   : > { %v7067_v38 = vmul.f32 %v9151_v9, %v9212_v51  ;;  %v9214_v1 = vld [vmem:[#allocation190_spill] sm:$0xff]  ;;  %v7087_v9 = vmul.f32 %v9126_v61, %v9219_v26  ;;  %v7099_v34 = vmul.f32 %v9182_v13, %v9222_v17  ;;  %v9224_v57 = vld [vmem:[#allocation191_spill] sm:$0xff]  ;;  %v9226_v26 = vld [vmem:[#allocation228_spill] sm:$0xff]  ;;  %v7121_v17 = vpop.permute.xlu1 %2355 }
 0x3a3   : > { %9211 = vst [vmem:[#allocation40_spill] sm:$0xff] %v7063_v40  ;;  %v7071_v43 = vmul.f32 %v9155_v27, %v9214_v1  ;;  %v9220_v51 = vld [vmem:[#allocation118_spill] sm:$0xff]  ;;  %v7107_v61 = vmul.f32 %v6904_v45, %v9224_v57  ;;  %9232 = vst [vmem:[#allocation107_spill] sm:$0xff] %v7121_v17  ;;  %v9252_v40 = vld [vmem:[#allocation259_spill] sm:$0xff] }
 0x3a4   : > { %9213 = vst [vmem:[#allocation157_spill] sm:$0xff] %v7067_v38  ;;  %v7091_v27 = vmul.f32 %v9179_v18, %v9220_v51  ;;  %v9221_v1 = vld [vmem:[#allocation130_spill] sm:$0xff]  ;;  %v7111_v18 = vmul.f32 %v6926_v0, %v9226_v26  ;;  %v9228_v51 = vld [vmem:[#allocation37_spill] sm:$0xff]  ;;  %v9236_v26 = vld [vmem:[#allocation91_spill] sm:$0xff] }
 0x3a5   : > { %9215 = vst [vmem:[#allocation84_spill] sm:$0xff] %v7071_v43  ;;  %v7095_v2 = vmul.f32 %v9188_v15, %v9221_v1  ;;  %9225 = vst [vmem:[#allocation179_spill] sm:$0xff] %v7107_v61  ;;  %v7115_v15 = vmul.f32 %v9135_v25, %v9228_v51  ;;  %v9230_v1 = vld [vmem:[#allocation85_spill] sm:$0xff]  ;;  %v9233_v58 = vld [vmem:[#allocation22_spill] sm:$0xff]  ;;  %v7182_v43 = vmul.f32 %v2543_v60, %v9252_v40 }
 0x3a6   : > { %9227 = vst [vmem:[#allocation10_spill] sm:$0xff] %v7111_v18  ;;  %v7119_v13 = vmul.f32 %v9129_v23, %v9230_v1  ;;  %v7125_v54 = vmul.f32 %v6885_v59, %v9233_v58  ;;  %v9235_v57 = vld [vmem:[#allocation74_spill] sm:$0xff]  ;;  %v7133_v18 = vmul.f32 %v6904_v45, %v9236_v26  ;;  %v9237_v51 = vld [vmem:[#allocation89_spill] sm:$0xff]  ;;  %v7145_v58 = vmul.f32 %v6941_v19, %v9085_v10  ;;  %v7155_v26 = vpop.permute.xlu0 %2459  ;;  %v9245_v10 = vld [vmem:[#allocation132_spill] sm:$0xff] }
 0x3a7   : > { %9229 = vst [vmem:[#allocation83_spill] sm:$0xff] %v7115_v15  ;;  %v7129_v61 = vmul.f32 %v9144_v14, %v9235_v57  ;;  %v7137_v15 = vmul.f32 %v6926_v0, %v9237_v51  ;;  %v9238_v23 = vld [vmem:[#allocation114_spill] sm:$0xff]  ;;  %v7153_v57 = vmul.f32 %v6945_v63, %v9087_v30  ;;  %9253 = vst [vmem:[#allocation104_spill] sm:$0xff] %v7182_v43  ;;  %v9271_v43 = vld [vmem:[#allocation164_spill] sm:$0xff] }
 0x3a8   : > { %9231 = vst [vmem:[#allocation38_spill] sm:$0xff] %v7119_v13  ;;  %9234 = vst [vmem:[#allocation23_spill] sm:$0xff] %v7125_v54  ;;  %v7141_v1 = vmul.f32 %v9138_v36, %v9238_v23  ;;  %v9241_v54 = vld [vmem:[#allocation30_spill] sm:$0xff]  ;;  %v9244_v36 = vld [vmem:[#allocation251_spill] sm:$0xff] }
 0x3a9   : > { %9240 = vst [vmem:[#allocation95_spill] sm:$0xff] %v7145_v58  ;;  %v7149_v14 = vmul.f32 %v9141_v5, %v9241_v54  ;;  %9242 = vst [vmem:[#allocation41_spill] sm:$0xff] %v7153_v57  ;;  %v9243_v51 = vld [vmem:[#allocation222_spill] sm:$0xff]  ;;  %v7163_v23 = vmul.f32 %v6885_v59, %v9244_v36  ;;  %v7167_v58 = vmul.f32 %v6941_v19, %v9245_v10  ;;  %v9247_v5 = vld [vmem:[#allocation72_spill] sm:$0xff]  ;;  %v1979_v10 = vpop.permute.xlu1 %1978 }
 0x3aa   : > { %9239 = vst [vmem:[#allocation47_spill] sm:$0xff] %v7141_v1  ;;  %v7159_v13 = vmul.f32 %v9135_v25, %v9243_v51  ;;  %v7171_v54 = vmul.f32 %v6945_v63, %v9247_v5  ;;  %v9249_v30 = vld [vmem:[#allocation146_spill] sm:$0xff]  ;;  %v9250_v1 = vld [vmem:[#allocation147_spill] sm:$0xff]  ;;  %v9254_v36 = vld [vmem:[#allocation232_spill] sm:$0xff] }
 0x3ab   : > { %9246 = vst [vmem:[#allocation267_spill] sm:$0xff] %v7167_v58  ;;  %v7175_v57 = vmul.f32 %v6904_v45, %v9249_v30  ;;  %v7179_v51 = vmul.f32 %v6926_v0, %v9250_v1  ;;  %v7185_v17 = vmul.f32 %v2544_v22, %v9254_v36  ;;  %v9256_v58 = vld [vmem:[#allocation14_spill] sm:$0xff]  ;;  %v1983_v45 = vsel %vm1980_vm9, %v6788_v41, %v1979_v10  ;;  %v9260_v30 = vld [vmem:[#allocation36_spill] sm:$0xff]  ;;  %v9262_v36 = vld [vmem:[#allocation139_spill] sm:$0xff] }
 0x3ac   : > { %9248 = vst [vmem:[#allocation270_spill] sm:$0xff] %v7171_v54  ;;  %v7189_v38 = vmul.f32 %v6945_v63, %v9256_v58  ;;  %v9258_v5 = vld [vmem:[#allocation34_spill] sm:$0xff]  ;;  %v1992_v0 = vsel %vm1980_vm9, %v1979_v10, %v6760_v39  ;;  %v7207_v63 = vmul.f32 %v6941_v19, %v9260_v30  ;;  %v2003_v58 = vmul.f32 %v8965_v49, %v1983_v45  ;;  %v9264_v41 = vld [vmem:[#allocation172_spill] sm:$0xff]  ;;  %v2412_v45 = vpop.permute.xlu0 %2411 }
 0x3ad   : > { %9251 = vst [vmem:[#allocation234_spill] sm:$0xff] %v7179_v51  ;;  %9255 = vst [vmem:[#allocation192_spill] sm:$0xff] %v7185_v17  ;;  %v7193_v54 = vmul.f32 %v9135_v25, %v9258_v5  ;;  %v9259_v40 = vld [vmem:[#allocation46_spill] sm:$0xff]  ;;  %v2004_v25 = vmul.f32 %v8961_v62, %v1992_v0  ;;  %v7212_v5 = vmul.f32 %v2543_v60, %v9262_v36  ;;  %v9266_v17 = vld [vmem:[#allocation63_spill] sm:$0xff]  ;;  %v2052_v36 = vpop.permute.xlu1 %2051 }
 0x3ae   : > { %9257 = vst [vmem:[#allocation116_spill] sm:$0xff] %v7189_v38  ;;  %v7203_v1 = vmul.f32 %v6885_v59, %v9259_v40  ;;  %9261 = vst [vmem:[#allocation141_spill] sm:$0xff] %v7207_v63  ;;  %v7215_v38 = vmul.f32 %v2544_v22, %v9264_v41  ;;  %v7218_v39 = vmul.f32 %v2543_v60, %v9266_v17  ;;  %v9268_v10 = vld [vmem:[#allocation248_spill] sm:$0xff]  ;;  %v9325_v51 = vld [vmem:[#allocation145_spill] sm:$0xff] }
 0x3af   : > { %9263 = vst [vmem:[#allocation82_spill] sm:$0xff] %v7212_v5  ;;  %v7221_v59 = vmul.f32 %v2544_v22, %v9268_v10  ;;  %v9270_v40 = vld [vmem:[#allocation48_spill] sm:$0xff]  ;;  %v2027_v62 = vmul.f32 %v9091_v46, %v2003_v58  ;;  %v2028_v0 = vmul.f32 %v9091_v46, %v2004_v25  ;;  %v2172_v41 = vmul.f32 %v6541_v7, %v7019_v35  ;;  %v9273_v22 = vld [vmem:[#allocation122_spill] sm:$0xff]  ;;  %v9308_v5 = vld [vmem:[#allocation157_spill] sm:$0xff] }
 0x3b0   : > { %9265 = vst [vmem:[#allocation45_spill] sm:$0xff] %v7215_v38  ;;  %9267 = vst [vmem:[#allocation93_spill] sm:$0xff] %v7218_v39  ;;  %v2212_v19 = vmul.f32 %v9271_v43, %v9270_v40  ;;  %v9272_v30 = vld [vmem:[#allocation44_spill] sm:$0xff]  ;;  %v2173_v60 = vmul.f32 %v6541_v7, %v7015_v33  ;;  %v7235_v17 = vmul.f32 %v9273_v22, %v7023_v55  ;;  %v9291_v39 = vld [vmem:[#allocation178_spill] sm:$0xff] }
 0x3b1   : > { %9269 = vst [vmem:[#allocation159_spill] sm:$0xff] %v7221_v59  ;;  %v2213_v49 = vmul.f32 %v9271_v43, %v9272_v30  ;;  %v7239_v10 = vmul.f32 %v9273_v22, %v7031_v37  ;;  %v7243_v43 = vmul.f32 %v9273_v22, %v7035_v32  ;;  %v7247_v46 = vmul.f32 %v9273_v22, %v7027_v42  ;;  %v9274_v33 = vld [vmem:[#allocation124_spill] sm:$0xff]  ;;  %v2060_v25 = vpop.permute.xlu1 %2059  ;;  %v9275_v30 = vld [vmem:[#allocation119_spill] sm:$0xff] }
 0x3b2   : > { %v2039_v35 = vadd.f32 %v2027_v62, %v6724_v50  ;;  %v2040_v7 = vadd.f32 %v2028_v0, %v6726_v21  ;;  %v2318_v55 = vmul.f32 %v9274_v33, %v6933_v28  ;;  %v7255_v58 = vmul.f32 %v9274_v33, %v6937_v20  ;;  %v9276_v0 = vld [vmem:[#allocation227_spill] sm:$0xff] }
 0x3b3   : > { %v2071_v37 = vsel %vm2065_vm10, %v2052_v36, %v6802_v4  ;;  %v2074_v42 = vsel %vm2065_vm10, %v6756_v12, %v2052_v36  ;;  %v2272_v50 = vmul.f32 %v6910_v44, %v7051_v3  ;;  %v2273_v21 = vmul.f32 %v6910_v44, %v7043_v31  ;;  %v2512_v36 = vpop.permute.xlu0 %2511 }
 0x3b4   : > { %v2184_v32 = vadd.f32 %v2172_v41, %v2039_v35  ;;  %v2185_v28 = vadd.f32 %v2173_v60, %v2040_v7  ;;  %v7269_v20 = vmul.f32 %v9274_v33, %v6953_v56  ;;  %v2321_v40 = vmul.f32 %v9274_v33, %v6961_v24  ;;  %v9277_v56 = vld [vmem:[#allocation149_spill] sm:$0xff]  ;;  %v9278_v7 = vld [vmem:[#allocation183_spill] sm:$0xff] }
 0x3b5   : > { %v2066_v62 = vsel %vm2065_vm10, %v9275_v30, %v2060_v25  ;;  %v2075_v3 = vsel %vm2065_vm10, %v2060_v25, %v9276_v0  ;;  %v2090_v60 = vmul.f32 %v9119_v29, %v2074_v42  ;;  %v2091_v22 = vmul.f32 %v9277_v56, %v2071_v37  ;;  %v9279_v30 = vld [vmem:[#allocation60_spill] sm:$0xff]  ;;  %v9280_v29 = vld [vmem:[#allocation143_spill] sm:$0xff] }
 0x3b6   : > { %v7279_v31 = vadd.f32 %v2272_v50, %v2184_v32  ;;  %v7281_v41 = vadd.f32 %v2273_v21, %v2185_v28  ;;  %v2370_v24 = vmul.f32 %v7053_v52, %v7075_v16  ;;  %v2371_v35 = vmul.f32 %v7053_v52, %v7083_v48  ;;  %v7307_v48 = vpop.permute.xlu1 %2311  ;;  %v9281_v32 = vld [vmem:[#allocation223_spill] sm:$0xff] }
 0x3b7   : > { %v2084_v33 = vmul.f32 %v9278_v7, %v2066_v62  ;;  %v2085_v59 = vmul.f32 %v9279_v30, %v2075_v3  ;;  %v7293_v50 = vmul.f32 %v7053_v52, %v7087_v9  ;;  %v7297_v21 = vmul.f32 %v7053_v52, %v7079_v8  ;;  %v9282_v28 = vld [vmem:[#allocation87_spill] sm:$0xff]  ;;  %v9283_v62 = vld [vmem:[#allocation173_spill] sm:$0xff] }
 0x3b8   : > { %v7301_v37 = vmul.f32 %v7155_v26, %v9280_v29  ;;  %v7305_v16 = vmul.f32 %v7155_v26, %v7133_v18  ;;  %v2270_v42 = vmul.f32 %v6910_v44, %v7039_v53  ;;  %v2271_v9 = vmul.f32 %v6910_v44, %v9281_v32  ;;  %v9284_v18 = vld [vmem:[#allocation137_spill] sm:$0xff]  ;;  %v9285_v44 = vld [vmem:[#allocation18_spill] sm:$0xff] }
 0x3b9   : > { %v2108_v25 = vmul.f32 %v9282_v28, %v2084_v33  ;;  %v2109_v52 = vmul.f32 %v9282_v28, %v2085_v59  ;;  %v2472_v8 = vmul.f32 %v7155_v26, %v7137_v15  ;;  %v2473_v0 = vmul.f32 %v7155_v26, %v9283_v62  ;;  %v9286_v32 = vld [vmem:[#allocation193_spill] sm:$0xff]  ;;  %v9289_v26 = vld [vmem:[#allocation35_spill] sm:$0xff] }
 0x3ba   : > { %v2114_v3 = vmul.f32 %v9284_v18, %v2090_v60  ;;  %v2115_v56 = vmul.f32 %v9284_v18, %v2091_v22  ;;  %v7322_v29 = vmul.f32 %v2412_v45, %v7091_v27  ;;  %v7325_v53 = vmul.f32 %v2412_v45, %v7099_v34  ;;  %v2516_v27 = vpop.permute.xlu0 %2515  ;;  %v9290_v62 = vld [vmem:[#allocation197_spill] sm:$0xff] }
 0x3bb   : > { %v2120_v33 = vadd.f32 %v2108_v25, %v9285_v44  ;;  %v2121_v59 = vadd.f32 %v2109_v52, %v9286_v32  ;;  %v7330_v28 = vmul.f32 %v2412_v45, %v7103_v6  ;;  %v7333_v15 = vmul.f32 %v2412_v45, %v7095_v2  ;;  %v7347_v6 = vpop.permute.xlu1 %2403  ;;  %v9293_v45 = vld [vmem:[#allocation249_spill] sm:$0xff]  ;;  %v9295_v32 = vld [vmem:[#allocation239_spill] sm:$0xff] }
 0x3bc   : > { %v7336_v60 = vmul.f32 %v2512_v36, %v9289_v26  ;;  %v7339_v22 = vmul.f32 %v2512_v36, %v7159_v13  ;;  %v2282_v34 = vadd.f32 %v2270_v42, %v9290_v62  ;;  %v2283_v63 = vadd.f32 %v2271_v9, %v9291_v39  ;;  %v9296_v26 = vld [vmem:[#allocation126_spill] sm:$0xff] }
 0x3bd   : > { %9287 = vst [vmem:[#allocation154_spill] sm:$0xff] %v7330_v28  ;;  %9288 = vst [vmem:[#allocation206_spill] sm:$0xff] %v7333_v15  ;;  %v7343_v25 = vadd.f32 %v2212_v19, %v2120_v33  ;;  %v7345_v52 = vadd.f32 %v2213_v49, %v2121_v59  ;;  %v7350_v2 = vmul.f32 %v2512_v36, %v7163_v23  ;;  %v9297_v19 = vld [vmem:[#allocation15_spill] sm:$0xff]  ;;  %v9298_v49 = vld [vmem:[#allocation21_spill] sm:$0xff] }
 0x3be   : > { %v7353_v44 = vmul.f32 %v2512_v36, %v9293_v45  ;;  %v2126_v13 = vadd.f32 %v2114_v3, %v9295_v32  ;;  %v2127_v38 = vadd.f32 %v2115_v56, %v9296_v26  ;;  %v7358_v42 = vmul.f32 %v2516_v27, %v7149_v14  ;;  %v9299_v33 = vld [vmem:[#allocation59_spill] sm:$0xff]  ;;  %v9302_v3 = vld [vmem:[#allocation58_spill] sm:$0xff]  ;;  %v9303_v14 = vld [vmem:[#allocation252_spill] sm:$0xff] }
 0x3bf   : > { %9292 = vst [vmem:[#allocation9_spill] sm:$0xff] %v7350_v2  ;;  %v7361_v39 = vmul.f32 %v2516_v27, %v7193_v54  ;;  %v2362_v9 = vmul.f32 %v9298_v49, %v9297_v19  ;;  %v2363_v23 = vmul.f32 %v9298_v49, %v9299_v33  ;;  %v7368_v59 = vmul.f32 %v2516_v27, %v7203_v1  ;;  %v9304_v54 = vld [vmem:[#allocation225_spill] sm:$0xff]  ;;  %v9305_v32 = vld [vmem:[#allocation167_spill] sm:$0xff]  ;;  %v2408_v19 = vpop.permute.xlu1 %2407  ;;  %v9318_v15 = vld [vmem:[#allocation78_spill] sm:$0xff] }
 0x3c0   : > { %9294 = vst [vmem:[#allocation49_spill] sm:$0xff] %v7353_v44  ;;  %v7371_v36 = vmul.f32 %v2516_v27, %v7129_v61  ;;  %v2364_v56 = vmul.f32 %v9298_v49, %v9302_v3  ;;  %v2365_v62 = vmul.f32 %v9298_v49, %v9303_v14  ;;  %v7378_v45 = vadd.f32 %v2318_v55, %v9304_v54  ;;  %v9309_v55 = vld [vmem:[#allocation11_spill] sm:$0xff]  ;;  %v9319_v28 = vld [vmem:[#allocation56_spill] sm:$0xff] }
 0x3c1   : > { %9300 = vst [vmem:[#allocation51_spill] sm:$0xff] %v7368_v59  ;;  %v7381_v26 = vadd.f32 %v2321_v40, %v9305_v32  ;;  %v7383_v33 = vadd.f32 %v2370_v24, %v2282_v34  ;;  %v7385_v1 = vadd.f32 %v2371_v35, %v2283_v63  ;;  %v2230_v61 = vadd.f32 %v7235_v17, %v2126_v13  ;;  %v9310_v14 = vld [vmem:[#allocation71_spill] sm:$0xff]  ;;  %v9312_v24 = vld [vmem:[#allocation70_spill] sm:$0xff]  ;;  %v9326_v44 = vld [vmem:[#allocation188_spill] sm:$0xff] }
 0x3c2   : > { %9301 = vst [vmem:[#allocation266_spill] sm:$0xff] %v7371_v36  ;;  %v2231_v27 = vadd.f32 %v7239_v10, %v2127_v38  ;;  %v2322_v3 = vmul.f32 %v7307_v48, %v7059_v47  ;;  %v2323_v49 = vmul.f32 %v7307_v48, %v9308_v5  ;;  %v2314_v54 = vmul.f32 %v9310_v14, %v9309_v55  ;;  %v9311_v40 = vld [vmem:[#allocation55_spill] sm:$0xff]  ;;  %v9314_v36 = vld [vmem:[#allocation128_spill] sm:$0xff]  ;;  %v9315_v13 = vld [vmem:[#allocation214_spill] sm:$0xff] }
 0x3c3   : > { %9306 = vst [vmem:[#allocation53_spill] sm:$0xff] %v7383_v33  ;;  %9307 = vst [vmem:[#allocation121_spill] sm:$0xff] %v7385_v1  ;;  %v2315_v32 = vmul.f32 %v9310_v14, %v9311_v40  ;;  %v2374_v34 = vadd.f32 %v2362_v9, %v9312_v24  ;;  %v9313_v63 = vld [vmem:[#allocation151_spill] sm:$0xff]  ;;  %v2376_v17 = vadd.f32 %v2364_v56, %v9314_v36  ;;  %v9316_v10 = vld [vmem:[#allocation68_spill] sm:$0xff] }
 0x3c4   : > { %v2375_v35 = vadd.f32 %v2363_v23, %v9313_v63  ;;  %v2377_v38 = vadd.f32 %v2365_v62, %v9315_v13  ;;  %v9317_v59 = vld [vmem:[#allocation107_spill] sm:$0xff]  ;;  %v2316_v55 = vmul.f32 %v9310_v14, %v9319_v28  ;;  %v9320_v1 = vld [vmem:[#allocation13_spill] sm:$0xff]  ;;  %v2334_v56 = vadd.f32 %v2322_v3, %v2230_v61  ;;  %v9324_v13 = vld [vmem:[#allocation226_spill] sm:$0xff] }
 0x3c5   : > { %v2366_v47 = vmul.f32 %v9317_v59, %v9316_v10  ;;  %v2367_v5 = vmul.f32 %v9317_v59, %v9318_v15  ;;  %v2317_v40 = vmul.f32 %v9310_v14, %v9320_v1  ;;  %v9321_v33 = vld [vmem:[#allocation209_spill] sm:$0xff]  ;;  %v9322_v23 = vld [vmem:[#allocation75_spill] sm:$0xff]  ;;  %v2335_v62 = vadd.f32 %v2323_v49, %v2231_v27  ;;  %v2464_v10 = vpop.permute.xlu1 %2463  ;;  %v9328_v27 = vld [vmem:[#allocation32_spill] sm:$0xff] }
 0x3c6   : > { %v2368_v9 = vmul.f32 %v9317_v59, %v9321_v33  ;;  %v2369_v36 = vmul.f32 %v9317_v59, %v9322_v23  ;;  %v9323_v24 = vld [vmem:[#allocation169_spill] sm:$0xff]  ;;  %v2332_v15 = vadd.f32 %v7269_v20, %v9324_v13  ;;  %v2326_v28 = vadd.f32 %v2314_v54, %v9325_v51  ;;  %v9327_v59 = vld [vmem:[#allocation140_spill] sm:$0xff]  ;;  %v9339_v13 = vld [vmem:[#allocation171_spill] sm:$0xff] }
 0x3c7   : > { %v2331_v63 = vadd.f32 %v7255_v58, %v9323_v24  ;;  %v2327_v2 = vadd.f32 %v2315_v32, %v9326_v44  ;;  %v7420_v1 = vadd.f32 %v7301_v37, %v2374_v34  ;;  %v7423_v33 = vadd.f32 %v7305_v16, %v2375_v35  ;;  %v9329_v20 = vld [vmem:[#allocation129_spill] sm:$0xff]  ;;  %v9331_v16 = vld [vmem:[#allocation84_spill] sm:$0xff] }
 0x3c8   : > { %v2378_v61 = vadd.f32 %v2366_v47, %v9327_v59  ;;  %v2379_v3 = vadd.f32 %v2367_v5, %v9328_v27  ;;  %v7427_v49 = vadd.f32 %v2472_v8, %v2376_v17  ;;  %v7429_v58 = vadd.f32 %v2473_v0, %v2377_v38  ;;  %v9330_v23 = vld [vmem:[#allocation133_spill] sm:$0xff]  ;;  %v9332_v32 = vld [vmem:[#allocation40_spill] sm:$0xff]  ;;  %v9333_v17 = vld [vmem:[#allocation255_spill] sm:$0xff] }
 0x3c9   : > { %v2380_v14 = vadd.f32 %v2368_v9, %v9329_v20  ;;  %v2381_v51 = vadd.f32 %v2369_v36, %v9330_v23  ;;  %v7435_v44 = vadd.f32 %v7293_v50, %v7279_v31  ;;  %v7439_v37 = vadd.f32 %v7297_v21, %v7281_v41  ;;  %v2064_v35 = vpop.permute.xlu1 %2063  ;;  %v9334_v31 = vld [vmem:[#allocation256_spill] sm:$0xff]  ;;  %v9337_v36 = vld [vmem:[#allocation61_spill] sm:$0xff]  ;;  %v9340_v59 = vld [vmem:[#allocation262_spill] sm:$0xff] }
 0x3ca   : > { %v2324_v54 = vmul.f32 %v7307_v48, %v9331_v16  ;;  %v2325_v8 = vmul.f32 %v7307_v48, %v9332_v32  ;;  %v2434_v0 = vadd.f32 %v7322_v29, %v2334_v56  ;;  %v2435_v34 = vadd.f32 %v7325_v53, %v2335_v62  ;;  %v9335_v48 = vld [vmem:[#allocation57_spill] sm:$0xff]  ;;  %v9336_v29 = vld [vmem:[#allocation250_spill] sm:$0xff] }
 0x3cb   : > { %v2414_v38 = vmul.f32 %v7347_v6, %v9333_v17  ;;  %v2415_v50 = vmul.f32 %v7347_v6, %v9334_v31  ;;  %v2068_v41 = vsel %vm2065_vm10, %v6802_v4, %v2064_v35  ;;  %v2077_v21 = vsel %vm2065_vm10, %v2064_v35, %v6756_v12  ;;  %v9338_v62 = vld [vmem:[#allocation42_spill] sm:$0xff]  ;;  %v9341_v17 = vld [vmem:[#allocation20_spill] sm:$0xff] }
 0x3cc   : > { %v2418_v47 = vmul.f32 %v2408_v19, %v9335_v48  ;;  %v2419_v5 = vmul.f32 %v2408_v19, %v9336_v29  ;;  %v2092_v53 = vmul.f32 %v9278_v7, %v2068_v41  ;;  %v2093_v9 = vmul.f32 %v9279_v30, %v2077_v21  ;;  %v9347_v21 = vld [vmem:[#allocation38_spill] sm:$0xff] }
 0x3cd   : > { %v2416_v56 = vmul.f32 %v7347_v6, %v9337_v36  ;;  %v2417_v24 = vmul.f32 %v7347_v6, %v9338_v62  ;;  %v2420_v4 = vmul.f32 %v2408_v19, %v9339_v13  ;;  %v2421_v27 = vmul.f32 %v2408_v19, %v9340_v59  ;;  %v2468_v23 = vpop.permute.xlu1 %2467  ;;  %v9350_v62 = vld [vmem:[#allocation234_spill] sm:$0xff] }
 0x3ce   : > { %v2328_v11 = vadd.f32 %v2316_v55, %v7343_v25  ;;  %v2329_v12 = vadd.f32 %v2317_v40, %v7345_v52  ;;  %v2116_v20 = vmul.f32 %v9284_v18, %v2092_v53  ;;  %v2117_v7 = vmul.f32 %v9284_v18, %v2093_v9  ;;  %v9342_v55 = vld [vmem:[#allocation182_spill] sm:$0xff] }
 0x3cf   : > { %v2426_v30 = vadd.f32 %v2414_v38, %v2326_v28  ;;  %v2427_v16 = vadd.f32 %v2415_v50, %v2327_v2  ;;  %v7472_v32 = vadd.f32 %v7358_v42, %v2434_v0  ;;  %v7475_v6 = vadd.f32 %v7361_v39, %v2435_v34  ;;  %v9343_v18 = vld [vmem:[#allocation238_spill] sm:$0xff]  ;;  %v9344_v28 = vld [vmem:[#allocation179_spill] sm:$0xff] }
 0x3d0   : > { %v2430_v35 = vadd.f32 %v2418_v47, %v7378_v45  ;;  %v2431_v19 = vadd.f32 %v2419_v5, %v2331_v63  ;;  %v2128_v25 = vadd.f32 %v2116_v20, %v9341_v17  ;;  %v2129_v52 = vadd.f32 %v2117_v7, %v9342_v55  ;;  %v9345_v34 = vld [vmem:[#allocation10_spill] sm:$0xff]  ;;  %v9346_v63 = vld [vmem:[#allocation81_spill] sm:$0xff] }
 0x3d1   : > { %v2432_v40 = vadd.f32 %v2420_v4, %v2332_v15  ;;  %v2433_v31 = vadd.f32 %v2421_v27, %v7381_v26  ;;  %v2474_v41 = vmul.f32 %v2464_v10, %v9343_v18  ;;  %v2475_v2 = vmul.f32 %v2464_v10, %v9344_v28  ;;  %v2508_v47 = vpop.permute.xlu1 %2507  ;;  %v9353_v4 = vld [vmem:[#allocation83_spill] sm:$0xff]  ;;  %v9357_v7 = vld [vmem:[#allocation257_spill] sm:$0xff]  ;;  %v9358_v17 = vld [vmem:[#allocation154_spill] sm:$0xff] }
 0x3d2   : > { %v2428_v38 = vadd.f32 %v2416_v56, %v2328_v11  ;;  %v2429_v42 = vadd.f32 %v2417_v24, %v2329_v12  ;;  %v2232_v0 = vadd.f32 %v7243_v43, %v2128_v25  ;;  %v2233_v39 = vadd.f32 %v7247_v46, %v2129_v52  ;;  %v9348_v46 = vld [vmem:[#allocation9_spill] sm:$0xff]  ;;  %v9356_v12 = vld [vmem:[#allocation23_spill] sm:$0xff]  ;;  %v9359_v55 = vld [vmem:[#allocation206_spill] sm:$0xff] }
 0x3d3   : > { %v2476_v45 = vmul.f32 %v2464_v10, %v9345_v34  ;;  %v2477_v50 = vmul.f32 %v2464_v10, %v9346_v63  ;;  %v2478_v48 = vmul.f32 %v2468_v23, %v9347_v21  ;;  %v2479_v15 = vmul.f32 %v2468_v23, %v7175_v57  ;;  %v9349_v56 = vld [vmem:[#allocation49_spill] sm:$0xff]  ;;  %v9351_v57 = vld [vmem:[#allocation47_spill] sm:$0xff] }
 0x3d4   : > { %v2336_v26 = vadd.f32 %v2324_v54, %v2232_v0  ;;  %v2337_v29 = vadd.f32 %v2325_v8, %v2233_v39  ;;  %v7490_v5 = vadd.f32 %v7336_v60, %v2430_v35  ;;  %v7493_v53 = vadd.f32 %v7339_v22, %v2431_v19  ;;  %v9352_v54 = vld [vmem:[#allocation103_spill] sm:$0xff]  ;;  %v9354_v22 = vld [vmem:[#allocation53_spill] sm:$0xff] }
 0x3d5   : > { %v2486_v43 = vadd.f32 %v2474_v41, %v2378_v61  ;;  %v2487_v9 = vadd.f32 %v2475_v2, %v2379_v3  ;;  %v7496_v36 = vadd.f32 %v9348_v46, %v2432_v40  ;;  %v7499_v10 = vadd.f32 %v9349_v56, %v2433_v31  ;;  %v9355_v61 = vld [vmem:[#allocation121_spill] sm:$0xff]  ;;  %v2560_v19 = vpop.permute.xlu1 %2559  ;;  %v9361_v31 = vld [vmem:[#allocation104_spill] sm:$0xff]  ;;  %v9365_v46 = vld [vmem:[#allocation266_spill] sm:$0xff] }
 0x3d6   : > { %v2480_v24 = vmul.f32 %v2468_v23, %v9350_v62  ;;  %v2481_v13 = vmul.f32 %v2468_v23, %v9351_v57  ;;  %v2518_v8 = vmul.f32 %v2508_v47, %v9352_v54  ;;  %v2519_v60 = vmul.f32 %v2508_v47, %v9353_v4  ;;  %v9360_v23 = vld [vmem:[#allocation267_spill] sm:$0xff]  ;;  %v9362_v41 = vld [vmem:[#allocation192_spill] sm:$0xff] }
 0x3d7   : > { %v2488_v59 = vadd.f32 %v2476_v45, %v2380_v14  ;;  %v2489_v27 = vadd.f32 %v2477_v50, %v2381_v51  ;;  %v2490_v11 = vadd.f32 %v2478_v48, %v9354_v22  ;;  %v2491_v3 = vadd.f32 %v2479_v15, %v9355_v61  ;;  %v9363_v51 = vld [vmem:[#allocation270_spill] sm:$0xff] }
 0x3d8   : > { %v2520_v20 = vmul.f32 %v2508_v47, %v9356_v12  ;;  %v2521_v35 = vmul.f32 %v2508_v47, %v9357_v7  ;;  %v2436_v25 = vadd.f32 %v9358_v17, %v2336_v26  ;;  %v2437_v52 = vadd.f32 %v9359_v55, %v2337_v29  ;;  %v9364_v26 = vld [vmem:[#allocation51_spill] sm:$0xff]  ;;  %v9370_v7 = vld [vmem:[#allocation141_spill] sm:$0xff] }
 0x3d9   : > { %v2570_v40 = vmul.f32 %v2560_v19, %v9360_v23  ;;  %v2571_v18 = vmul.f32 %v2560_v19, %v9361_v31  ;;  %v2572_v14 = vmul.f32 %v2560_v19, %v9362_v41  ;;  %v2573_v28 = vmul.f32 %v2560_v19, %v9363_v51  ;;  %v2564_v47 = vpop.permute.xlu1 %2563  ;;  %v9371_v19 = vld [vmem:[#allocation93_spill] sm:$0xff] }
 0x3da   : > { %v2492_v2 = vadd.f32 %v2480_v24, %v7435_v44  ;;  %v2493_v0 = vadd.f32 %v2481_v13, %v7439_v37  ;;  %v2530_v39 = vadd.f32 %v2518_v8, %v2426_v30  ;;  %v2531_v34 = vadd.f32 %v2519_v60, %v2427_v16  ;;  %v9366_v44 = vld [vmem:[#allocation95_spill] sm:$0xff]  ;;  %v9367_v37 = vld [vmem:[#allocation82_spill] sm:$0xff]  ;;  %v9368_v16 = vld [vmem:[#allocation45_spill] sm:$0xff] }
 0x3db   : > { %v2582_v45 = vadd.f32 %v2570_v40, %v7420_v1  ;;  %v2583_v63 = vadd.f32 %v2571_v18, %v7423_v33  ;;  %v2584_v50 = vadd.f32 %v2572_v14, %v7427_v49  ;;  %v2585_v21 = vadd.f32 %v2573_v28, %v7429_v58  ;;  %v9369_v1 = vld [vmem:[#allocation41_spill] sm:$0xff]  ;;  %v2608_v33 = vpop.permute.xlu0 %2607 }
 0x3dc   : > { %v2532_v48 = vadd.f32 %v2520_v20, %v2428_v38  ;;  %v2533_v15 = vadd.f32 %v2521_v35, %v2429_v42  ;;  %v2540_v29 = vadd.f32 %v9364_v26, %v2436_v25  ;;  %v2541_v56 = vadd.f32 %v9365_v46, %v2437_v52  ;;  %v9372_v25 = vld [vmem:[#allocation159_spill] sm:$0xff]  ;;  %v9373_v52 = vld [vmem:[#allocation116_spill] sm:$0xff] }
 0x3dd   : > { %v2574_v62 = vmul.f32 %v2564_v47, %v9366_v44  ;;  %v2575_v30 = vmul.f32 %v2564_v47, %v9367_v37  ;;  %v2576_v24 = vmul.f32 %v2564_v47, %v9368_v16  ;;  %v2577_v57 = vmul.f32 %v2564_v47, %v9369_v1  ;;  %v2568_v20 = vpop.permute.xlu1 %2567 }
 0x3de   : > { %v2594_v13 = vadd.f32 %v2582_v45, %v2530_v39  ;;  %v2595_v49 = vadd.f32 %v2583_v63, %v2531_v34  ;;  %v2596_v54 = vadd.f32 %v2584_v50, %v2532_v48  ;;  %v2597_v58 = vadd.f32 %v2585_v21, %v2533_v15 }
 0x3df   : > { %v2586_v38 = vadd.f32 %v2574_v62, %v2486_v43  ;;  %v2587_v42 = vadd.f32 %v2575_v30, %v2487_v9  ;;  %v2588_v8 = vadd.f32 %v2576_v24, %v2488_v59  ;;  %v2589_v4 = vadd.f32 %v2577_v57, %v2489_v27 }
 0x3e0   : > { %v7527_v60 = vadd.f32 %v2608_v33, %v2594_v13  ;;  %v7529_v22 = vadd.f32 %v2608_v33, %v2595_v49  ;;  %v7531_v61 = vadd.f32 %v2608_v33, %v2596_v54  ;;  %v7533_v12 = vadd.f32 %v2608_v33, %v2597_v58 }
 0x3e1   : > { %v2578_v35 = vmul.f32 %v2568_v20, %v9370_v7  ;;  %v2579_v17 = vmul.f32 %v2568_v20, %v9371_v19  ;;  %v2580_v55 = vmul.f32 %v2568_v20, %v9372_v25  ;;  %v2581_v43 = vmul.f32 %v2568_v20, %v9373_v52  ;;  %v2612_v21 = vpop.permute.xlu1 %2611 }
 0x3e2   : > { %v2630_v9 = vsub.f32 0.0, %v7527_v60  ;;  %v2631_v59 = vsub.f32 0.0, %v7529_v22  ;;  %v2632_v27 = vsub.f32 0.0, %v7531_v61  ;;  %v2633_v23 = vsub.f32 0.0, %v7533_v12 }
 0x3e3   : > { %v2590_v40 = vadd.f32 %v2578_v35, %v2490_v11  ;;  %v2591_v31 = vadd.f32 %v2579_v17, %v2491_v3  ;;  %v2592_v18 = vadd.f32 %v2580_v55, %v2492_v2  ;;  %v2593_v41 = vadd.f32 %v2581_v43, %v2493_v0 }
 0x3e4   : > { %v2642_v14 = vmul.f32 1.442695, %v2630_v9  ;;  %v2644_v51 = vmul.f32 1.442695, %v2631_v59  ;;  %v2646_v28 = vmul.f32 1.442695, %v2632_v27  ;;  %v2598_v39 = vadd.f32 %v2586_v38, %v7490_v5 }
 0x3e5   : > { %v2648_v34 = vmul.f32 1.442695, %v2633_v23  ;;  %v2599_v45 = vadd.f32 %v2587_v42, %v7493_v53  ;;  %v2600_v63 = vadd.f32 %v2588_v8, %v7496_v36  ;;  %v2601_v50 = vadd.f32 %v2589_v4, %v7499_v10 }
 0x3e6   : > { %3223 = vpow2.f32 %v2642_v14  ;;  %v7547_v48 = vadd.f32 %v2612_v21, %v2598_v39  ;;  %v2602_v11 = vadd.f32 %v2590_v40, %v7472_v32  ;;  %v2603_v3 = vadd.f32 %v2591_v31, %v7475_v6  ;;  %v2616_v6 = vpop.permute.xlu1 %2615 }
 0x3e7   : > { %3225 = vpow2.f32 %v2644_v51  ;;  %v7551_v2 = vadd.f32 %v2612_v21, %v2599_v45  ;;  %v7553_v0 = vadd.f32 %v2612_v21, %v2600_v63  ;;  %v7555_v5 = vadd.f32 %v2612_v21, %v2601_v50 }
 0x3e8   : > { %3227 = vpow2.f32 %v2646_v28  ;;  %v2634_v53 = vsub.f32 0.0, %v7547_v48  ;;  %v2604_v36 = vadd.f32 %v2592_v18, %v2540_v29  ;;  %v2605_v10 = vadd.f32 %v2593_v41, %v2541_v56 }
 0x3e9   : > { %3229 = vpow2.f32 %v2648_v34  ;;  %v2635_v15 = vsub.f32 0.0, %v7551_v2  ;;  %v2636_v47 = vsub.f32 0.0, %v7553_v0  ;;  %v2637_v32 = vsub.f32 0.0, %v7555_v5 }
 0x3ea   : > { %v2650_v26 = vmul.f32 1.442695, %v2634_v53  ;;  %v7561_v46 = vadd.f32 %v2616_v6, %v2602_v11  ;;  %v7563_v44 = vadd.f32 %v2616_v6, %v2603_v3  ;;  %v7565_v62 = vadd.f32 %v2616_v6, %v2604_v36 }
 0x3eb   : > { %v2652_v37 = vmul.f32 1.442695, %v2635_v15  ;;  %v2654_v30 = vmul.f32 1.442695, %v2636_v47  ;;  %v2656_v16 = vmul.f32 1.442695, %v2637_v32  ;;  %v7567_v29 = vadd.f32 %v2616_v6, %v2605_v10 }
 0x3ec   : > { %3231 = vpow2.f32 %v2650_v26  ;;  %v2638_v56 = vsub.f32 0.0, %v7561_v46  ;;  %v2639_v24 = vsub.f32 0.0, %v7563_v44  ;;  %v2640_v1 = vsub.f32 0.0, %v7565_v62 }
 0x3ed   : > { %3233 = vpow2.f32 %v2652_v37  ;;  %v2641_v49 = vsub.f32 0.0, %v7567_v29 }
 0x3ee   : > { %3235 = vpow2.f32 %v2654_v30  ;;  %v2658_v57 = vmul.f32 1.442695, %v2638_v56  ;;  %v2660_v33 = vmul.f32 1.442695, %v2639_v24  ;;  %v2662_v13 = vmul.f32 1.442695, %v2640_v1 }
 0x3ef   : > { %3237 = vpow2.f32 %v2656_v16  ;;  %v2664_v7 = vmul.f32 1.442695, %v2641_v49 }
 0x3f0   : > { %v3224_v54 = vpop.eup %3223  ;;  %3239 = vpow2.f32 %v2658_v57 }
 0x3f1   : > { %v3226_v58 = vpop.eup %3225  ;;  %v2666_v38 = vadd.f32 1.0, %v3224_v54  ;;  %3241 = vpow2.f32 %v2660_v33 }
 0x3f2   : > { %v3228_v42 = vpop.eup %3227  ;;  %v2667_v8 = vadd.f32 1.0, %v3226_v58  ;;  %3243 = vpow2.f32 %v2662_v13 }
 0x3f3   : > { %v3230_v4 = vpop.eup %3229  ;;  %v2668_v20 = vadd.f32 1.0, %v3228_v42  ;;  %3245 = vrcp.f32 %v2666_v38 }
 0x3f4   : > { %v2669_v35 = vadd.f32 1.0, %v3230_v4  ;;  %3247 = vrcp.f32 %v2667_v8  ;;  %v3289_v8 = vld [vmem:[%s7627_s4 + $0x8] sm:$0xff] }
 0x3f5   : > { %3249 = vrcp.f32 %v2668_v20 }
 0x3f6   : > { %v3232_v19 = vpop.eup %3231  ;;  %3251 = vrcp.f32 %v2669_v35 }
 0x3f7   : > { %v3234_v17 = vpop.eup %3233  ;;  %v2670_v25 = vadd.f32 1.0, %v3232_v19  ;;  %3253 = vpow2.f32 %v2664_v7 }
 0x3f8   : > { %v3236_v55 = vpop.eup %3235  ;;  %v2671_v52 = vadd.f32 1.0, %v3234_v17 }
 0x3f9   : > { %v3238_v43 = vpop.eup %3237  ;;  %v2672_v9 = vadd.f32 1.0, %v3236_v55  ;;  %3255 = vrcp.f32 %v2670_v25  ;;  %v3291_v25 = vld [vmem:[%s7627_s4 + $0x10] sm:$0xff] }
 0x3fa   : > { %v3240_v59 = vpop.eup %3239  ;;  %v2673_v27 = vadd.f32 1.0, %v3238_v43  ;;  %3257 = vrcp.f32 %v2671_v52 }
 0x3fb   : > { %v3242_v23 = vpop.eup %3241  ;;  %3259 = vrcp.f32 %v2672_v9  ;;  %v2674_v40 = vadd.f32 1.0, %v3240_v59 }
 0x3fc   : > { %v3244_v31 = vpop.eup %3243  ;;  %3261 = vrcp.f32 %v2673_v27  ;;  %v2675_v18 = vadd.f32 1.0, %v3242_v23 }
 0x3fd   : > { %v3246_v41 = vpop.eup %3245  ;;  %v2676_v14 = vadd.f32 1.0, %v3244_v31  ;;  %3263 = vrcp.f32 %v2674_v40 }
 0x3fe   : > { %v3248_v51 = vpop.eup %3247  ;;  %v2702_v28 = vmul.f32 %v3246_v41, %v7527_v60  ;;  %3265 = vrcp.f32 %v2675_v18 }
 0x3ff   : > { %v3250_v39 = vpop.eup %3249  ;;  %v2703_v34 = vmul.f32 %v3248_v51, %v7529_v22  ;;  %3267 = vrcp.f32 %v2676_v14 }
 0x400   : > { %v3252_v45 = vpop.eup %3251  ;;  %v2704_v50 = vmul.f32 %v3250_v39, %v7531_v61 }
 0x401   : > { %v3254_v63 = vpop.eup %3253  ;;  %v2714_v21 = vadd.f32 %v2703_v34, %v2702_v28  ;;  %v2705_v53 = vmul.f32 %v3252_v45, %v7533_v12 }
 0x402   : > { %v2677_v11 = vadd.f32 1.0, %v3254_v63 }
 0x403   : > { %v3256_v3 = vpop.eup %3255  ;;  %v2715_v36 = vadd.f32 %v2714_v21, %v2704_v50  ;;  %v230_v21 = vld [vmem:[%s7627_s4] sm:$0xf] }
 0x404   : > { %v3258_v10 = vpop.eup %3257  ;;  %v2706_v15 = vmul.f32 %v3256_v3, %v7547_v48  ;;  %3269 = vrcp.f32 %v2677_v11  ;;  %v2760_v11 = vld [vmem:[%s7626_s3 + $0x4] sm:$0x1]  ;;  %v2767_v3 = vld [vmem:[%s7626_s3 + $0x5] sm:$0x1] }
 0x405   : > { %v3260_v60 = vpop.eup %3259  ;;  %v2716_v47 = vadd.f32 %v2715_v36, %v2705_v53  ;;  %v2707_v32 = vmul.f32 %v3258_v10, %v7551_v2 }
 0x406   : > { %v3262_v22 = vpop.eup %3261  ;;  %v2708_v6 = vmul.f32 %v3260_v60, %v7553_v0  ;;  %v3054_v26 = vpack.c.bf16 %v2706_v15, %v2702_v28 }
 0x407   : > { %v3264_v37 = vpop.eup %3263  ;;  %2717 = vadd.xlane.f32.xlu0 %v2716_v47  ;;  %v3052_v61 = vpack.c.bf16 %v2707_v32, %v2703_v34  ;;  %v2709_v30 = vmul.f32 %v3262_v22, %v7555_v5  ;;  %v2719_v16 = vadd.f32 %v2707_v32, %v2706_v15  ;;  %v9375_v22 = vlaneseq }
 0x408   : > { %v3266_v12 = vpop.eup %3265  ;;  %v2710_v56 = vmul.f32 %v3264_v37, %v7561_v46  ;;  %v3058_v24 = vpack.c.bf16 %v2708_v6, %v2704_v50  ;;  %v9374_v50 = vmov 3  }
 0x409   : > { %v3268_v48 = vpop.eup %3267  ;;  %3053 = vmatprep.subr.bf16.mxu0 %v3052_v61  ;;  %v3056_v1 = vpack.c.bf16 %v2709_v30, %v2705_v53  ;;  %v2711_v57 = vmul.f32 %v3266_v12, %v7563_v44  ;;  %v2720_v2 = vadd.f32 %v2719_v16, %v2708_v6  ;;  %v2747_v44 = vld [vmem:[%s7626_s3 + $0x6] sm:$0x1]  ;;  %v2777_v6 = vshrl.u32 %v9375_v22, 7  ;;  %v2775_v61 = vld [vmem:[%s7626_s3] sm:$0xf] }
 0x40a   : > { %3055 = vmatpush1.bf16.msra.mxu0 %v3054_v26  ;;  %v2712_v13 = vmul.f32 %v3268_v48, %v7565_v62 }
 0x40b   : > { %3057 = vmatprep.subr.bf16.mxu1 %v3056_v1  ;;  %v2724_v0 = vadd.f32 %v2711_v57, %v2710_v56  ;;  %2794 = vmatprep.subr.mxu0 %v2711_v57  ;;  %v2721_v33 = vadd.f32 %v2720_v2, %v2709_v30  ;;  %v2778_v26 = vsub.s32 0, %v2777_v6 }
 0x40c   : > { %3059 = vmatpush1.bf16.msra.mxu1 %v3058_v24 }
 0x40d   : > { %2722 = vadd.xlane.f32.xlu1 %v2721_v33  ;;  %v2725_v5 = vadd.f32 %v2724_v0, %v2712_v13 }
 0x40e   : > { %v3270_v49 = vpop.eup %3269  ;;  %2795 = vmatpush1.msra.mxu0 %v2710_v56 }
 0x40f   : > { %v2713_v46 = vmul.f32 %v3270_v49, %v7567_v29  ;;  %v3290_v29 = vld [vmem:[%s7627_s4] sm:$0xff]  ;;  %v3293_v49 = vld [vmem:[%s3405_s27 + $0x8] sm:$0xff] }
 0x411   : > { %2865 = vmatprep.subr.mxu1 %v2713_v46  ;;  %v2726_v54 = vadd.f32 %v2725_v5, %v2713_v46 }
 0x412   : > { %2866 = vmatpush1.msra.mxu1 %v2712_v13  ;;  %v3292_v13 = vld [vmem:[%s3405_s27] sm:$0xff] }
 0x413   : > { %2727 = vadd.xlane.f32.xlu0 %v2726_v54  ;;  %v9376_v54 = vld [vmem:[#allocation2_spill] sm:$0xff] }
 0x429   : > { %2749 = vrot.lane.b32.xlu0 %v2747_v44, %s3347_s14 }
 0x494   : > { %v2718_v58 = vpop.xlane.xlu0 %2717 }
 0x495   : > { %v2729_v62 = vmul.f32 0.001953125, %v2718_v58  ;;  %v9377_v58 = vld [vmem:[#allocation3_spill] sm:$0xff] }
 0x497   : > { %v2732_v20 = vmul.f32 %v3290_v29, %v2729_v62 }
 0x499   : > { %v2736_v17 = vsel %vm2735_vm11, %v2732_v20, 0.0 }
 0x49a   : > { %v2723_v38 = vpop.xlane.xlu1 %2722 }
 0x49b   : > { %v2730_v42 = vmul.f32 0.001953125, %v2723_v38 }
 0x49d   : > { %v2733_v4 = vmul.f32 %v3289_v8, %v2730_v42 }
 0x49f   : > { %v2737_v35 = vsel %vm2735_vm11, %v2733_v4, 0.0 }
 0x4a0   : > { %v2728_v7 = vpop.xlane.xlu0 %2727  ;;  %v2738_v52 = vadd.f32 %v2737_v35, %v2736_v17 }
 0x4a1   : > { %v2731_v19 = vmul.f32 0.001953125, %v2728_v7 }
 0x4a3   : > { %v2734_v55 = vmul.f32 %v3291_v25, %v2731_v19 }
 0x4a4   : > { %v2750_v18 = vpop.permute.xlu0 %2749 }
 0x4a5   : > { %v2739_v43 = vsel %vm2735_vm11, %v2734_v55, 0.0 }
 0x4a6   : > { %v2740_v9 = vadd.f32 %v2739_v43, %v2738_v52 }
 0x4a8   : > { %v2741_v59 = vrot.slane %v2740_v9, 4 }
 0x4aa   : > { %v2742_v27 = vadd.f32 %v2741_v59, %v2740_v9 }
 0x4ac   : > { %v2743_v23 = vrot.slane %v2742_v27, 2 }
 0x4ae   : > { %v2744_v40 = vadd.f32 %v2743_v23, %v2742_v27 }
 0x4b0   : > { %v2745_v31 = vrot.slane %v2744_v40, 1 }
 0x4b2   : > { %v2746_v41 = vadd.f32 %v2745_v31, %v2744_v40 }
 0x4b4   : > { %v2752_v14 = vadd.f32 %v2750_v18, %v2746_v41 }
 0x4b6   : > { %v2753_v51 = vsub.f32 0.0, %v2752_v14 }
 0x4b8   : > { %v2754_v28 = vmul.f32 1.442695, %v2753_v51 }
 0x4ba   : > { %3271 = vpow2.f32 %v2754_v28 }
 0x4c4   : > { %v3272_v39 = vpop.eup %3271 }
 0x4c5   : > { %v2756_v34 = vadd.f32 1.0, %v3272_v39 }
 0x4c7   : > { %3273 = vrcp.f32 %v2756_v34 }
 0x4d1   : > { %v3274_v45 = vpop.eup %3273 }
 0x4d2   : > { %v2759_v63 = vmul.f32 %v3274_v45, %v2752_v14 }
 0x4d4   : > { %2763 = vperm.xlu1 %3170, %v2759_v63  }
 0x4d8   : > { %3171 = vset.pattern.permute.xlu1 %v9374_v50 }
 0x4d9   : > { %2783 = vperm.xlu1 %3171, %v230_v21  }
 0x553   : > { %v2764_v53 = vpop.permute.xlu1 %2763 }
 0x554   : > { %v2766_v36 = vmul.f32 %v2764_v53, %v2760_v11 }
 0x556   : > { %v2768_v10 = vadd.f32 %v2767_v3, %v2766_v36 }
 0x558   : > { %v2769_v15 = vsub.f32 0.0, %v2768_v10  ;;  %v2784_v12 = vpop.permute.xlu1 %2783 }
 0x55a   : > { %v2770_v60 = vmul.f32 1.442695, %v2769_v15 }
 0x55c   : > { %3275 = vpow2.f32 %v2770_v60 }
 0x566   : > { %v3276_v47 = vpop.eup %3275 }
 0x567   : > { %v2772_v32 = vadd.f32 1.0, %v3276_v47 }
 0x569   : > { %3277 = vrcp.f32 %v2772_v32 }
 0x573   : > { %v3278_v37 = vpop.eup %3277 }
 0x574   : > { %v2779_v30 = vrot.slane %v3278_v37, %v2778_v26 }
 0x576   : > { %v2780_v16 = vmul.f32 %v2779_v30, %v2775_v61 }
 0x578   : > { %3046 = vmatmul.mubr.msk.f32.vlgmr.msra.gmra.mrb[6].mxu0 %vm2786_vm12, %v2780_v16  ;;  %3047 = vmatmul.mubr.msk.f32.vlgmr.msra.gmra.mrb[6].mxu1 %vm2786_vm12, %v2780_v16 }
 0x64b   : > { %v2856_v56 = vpop.f32.mrb[6].mxu0  ;;  %v2927_v24 = vpop.f32.mrb[6].mxu1 }
 0x64c   : > { %v2857_v48 = vadd.f32 %v2856_v56, %v2784_v12  ;;  %v2928_v1 = vadd.f32 %v2927_v24, %v2784_v12  ;;  %v2858_v57 = vpop.f32.mrb[7].mxu0  ;;  %v2929_v2 = vpop.f32.mrb[7].mxu1 }
 0x64d   : > { %v2859_v0 = vadd.f32 %v2858_v57, %v2784_v12  ;;  %v2930_v33 = vadd.f32 %v2929_v2, %v2784_v12 }
 0x64e   : > { %v2934_v5 = vadd.f32 %v3292_v13, %v2857_v48  ;;  %v2936_v46 = vadd.f32 %v3293_v49, %v2928_v1 }
 0x64f   : > { %v2935_v44 = vadd.f32 %v2859_v0, %v9376_v54  ;;  %v2937_v38 = vadd.f32 %v2930_v33, %v9377_v58 }
 0x651   : > { %v2942_v62 = vcombine.low %v2934_v5, %v2935_v44  ;;  %v2943_v42 = vcombine.low %v2936_v46, %v2937_v38 }
 0x653   : > { %2946 = vst [vmem:[%s224_s10] sm:$0xff] %v2942_v62  ;;  %2947 = vst [vmem:[%s224_s10 + $0x8] sm:$0xff] %v2943_v42 }
 0x654 PF: > { %s15_s18 = sadd.s32 1, %s3300_s18  }
 0x655   : > { %p12_p4 = scmp.ge.s32.totalorder %s15_s18, 4  }
 0x657   :  { %14 = sbr.rel (!%p12_p4) target bundleno = 1 (0x1), region = 70 }

</bundles_post_ra>
